<compile_context>
chip_gen: v7x
topology: tpu7x:2x2x1
jax: 0.10.0
libtpu: 0.0.40
codegen_flags: <defaults>
</compile_context>

<pallas_src>
import functools

import jax
import jax.numpy as jnp
from jax.experimental import pallas as pl
from jax.experimental.pallas import tpu as pltpu


def mha_kernel(x_ref, wqkv_ref, wp_ref, bp_ref, bias_ref, o_ref,
               *, n_head, head_size):
    bblk, T, C = x_ref.shape
    hs = head_size
    HD = n_head * hs
    M = bblk * T

    # ---- Fused Q/K/V projection: ONE (M, C) x (C, 3*HD) MXU matmul --------
    x2 = x_ref[...].reshape(M, C)                        # bf16 (cast in wrapper)
    qkv = jnp.dot(x2, wqkv_ref[...],
                  preferred_element_type=jnp.float32)    # (M, 3*HD) f32
    qkv = qkv.reshape(bblk, T, 3 * HD)

    scale = float(hs) ** -0.5
    q = (qkv[:, :, 0 * HD:1 * HD] * scale).astype(jnp.bfloat16)   # (bblk, T, HD)
    k = qkv[:, :, 1 * HD:2 * HD].astype(jnp.bfloat16)
    v = qkv[:, :, 2 * HD:3 * HD].astype(jnp.bfloat16)

    bias = bias_ref[...][None]       # (1, T, T) additive window mask (0 / -1e30)

    # ---- Per-head attention core -------------------------------------------
    # Score / att@v matmuls are inherently (T,hs)x(hs,T) and (T,T)x(T,hs) per
    # head; a static unrolled loop over the (small) head count keeps layouts
    # simple (static lane slices, no 4-D transposes) at identical MXU cost to a
    # batched group einsum.
    head_outs = []
    for h in range(n_head):
        sl = slice(h * hs, (h + 1) * hs)
        s = jnp.einsum('btd,bsd->bts', q[:, :, sl], k[:, :, sl],
                       preferred_element_type=jnp.float32)        # (bblk, T, T)
        s = s + bias
        m = jnp.max(s, axis=-1, keepdims=True)
        p = jnp.exp(s - m)
        l = jnp.sum(p, axis=-1, keepdims=True)
        p = (p * pl.reciprocal(l, approx=True)).astype(jnp.bfloat16)
        # TODO(synk): attention-weight dropout is identity (eval mode).
        head_outs.append(jnp.einsum('bts,bsd->btd', p, v[:, :, sl],
                                    preferred_element_type=jnp.float32))

    # ---- Re-interleave heads + ONE fused output projection (K = HD) --------
    att = jnp.concatenate(head_outs, axis=-1).astype(jnp.bfloat16)  # (bblk,T,HD)
    out = jnp.dot(att.reshape(M, HD), wp_ref[...],
                  preferred_element_type=jnp.float32)               # (M, C) f32
    out = out + bp_ref[...]                                          # + (1, C)
    # TODO(synk): post-projection dropout is identity (eval mode).
    o_ref[...] = out.reshape(bblk, T, C).astype(o_ref.dtype)


def multi_head_attention(x, params, *, n_head, head_size, window, block_b=None):
    B, T, C = x.shape
    HD = n_head * head_size
    assert params["wq"].shape == (C, HD) and params["wp"].shape == (HD, C)

    if block_b is None:
        # grid >= 2 keeps both v7x TensorCores busy; the extra grid step only
        # costs ~0.35 us of per-step overhead on single-TC v5e/v6e.
        # TODO(synk): collapse to block_b = B (grid=1) when targeting
        #             single-TC parts if that last fraction of a us matters.
        block_b = B // 2 if (B % 2 == 0 and B >= 2) else B
    assert B % block_b == 0

    out_dtype = x.dtype
    x_bf16 = x.astype(jnp.bfloat16)

    # Wrapper-side layout plumbing (done once, outside the kernel):
    #  * Q/K/V weights fused into a single (C, 3*HD) bf16 slab (one K=C,
    #    N=3*HD matmul instead of 3*H tiny N=head_size ones).
    #  * Output projection kept 2-D (HD, C): one K=HD matmul, no head-sum.
    wqkv = jnp.concatenate([params["wq"], params["wk"], params["wv"]],
                           axis=1).astype(jnp.bfloat16)              # (C, 3*HD)
    wp = params["wp"].astype(jnp.bfloat16)                           # (HD, C)
    bp = params["bp"].astype(jnp.float32).reshape(1, C)              # (1, C)

    # Additive window-mask bias: 0 where allowed, -1e30 where col > row+window
    # (the module's triu(diagonal=1+window) mask).  The registered causal
    # `tril` buffer is unused in the module's forward, so no causal mask here.
    row = jnp.arange(T, dtype=jnp.int32)[:, None]
    col = jnp.arange(T, dtype=jnp.int32)[None, :]
    bias = jnp.where(col > row + window, -1e30, 0.0).astype(jnp.float32)  # (T,T)

    flops = int(2 * B * T * C * (3 * HD)        # fused q/k/v projection
                + 2 * B * T * T * HD * 2        # scores + att @ v
                + 2 * B * T * HD * C)           # fused output projection
    transcendentals = int(B * n_head * T * T)   # exp in softmax
    bytes_accessed = int(B * T * C * 2 + B * T * C * 4
                         + (C * 3 * HD + HD * C) * 2 + T * T * 4 + C * 4)
    cost = pl.CostEstimate(flops=flops, transcendentals=transcendentals,
                           bytes_accessed=bytes_accessed)

    kernel = functools.partial(mha_kernel, n_head=n_head, head_size=head_size)
    return pl.pallas_call(
        kernel,
        out_shape=jax.ShapeDtypeStruct((B, T, C), out_dtype),
        grid_spec=pltpu.PrefetchScalarGridSpec(
            num_scalar_prefetch=0,
            grid=(B // block_b,),
            in_specs=[
                pl.BlockSpec((block_b, T, C), lambda b: (b, 0, 0)),   # x (bf16)
                pl.BlockSpec((C, 3 * HD), lambda b: (0, 0)),          # Wqkv
                pl.BlockSpec((HD, C), lambda b: (0, 0)),              # Wproj
                pl.BlockSpec((1, C), lambda b: (0, 0)),               # bproj
                pl.BlockSpec((T, T), lambda b: (0, 0)),               # window bias
            ],
            out_specs=pl.BlockSpec((block_b, T, C), lambda b: (b, 0, 0)),
        ),
        compiler_params=pltpu.CompilerParams(
            dimension_semantics=("parallel",)),
        cost_estimate=cost,
    )(x_bf16, wqkv, wp, bp, bias)


# ----------------------- pure-JAX reference (for checking) -----------------------
def mha_ref(x, params, *, n_head, head_size, window):
    B, T, C = x.shape
    q = x @ params["wq"]
    k = x @ params["wk"]
    v = x @ params["wv"]
    mask = jnp.arange(T)[None, :] > (jnp.arange(T)[:, None] + window)
    heads = []
    for h in range(n_head):
        s = slice(h * head_size, (h + 1) * head_size)
        wei = jnp.einsum('btd,bsd->bts', q[..., s], k[..., s]) * head_size ** -0.5
        wei = jnp.where(mask[None], -jnp.inf, wei)
        wei = jax.nn.softmax(wei, axis=-1)
        heads.append(jnp.einsum('bts,bsd->btd', wei, v[..., s]))
    att = jnp.concatenate(heads, axis=-1)
    return att @ params["wp"] + params["bp"][0]


def init_params(key, n_embd, n_head, head_size):
    HD = n_head * head_size
    ks = jax.random.split(key, 5)
    w = lambda k, shp: jax.random.normal(k, shp, jnp.float32) * 0.02
    return {
        "wq": w(ks[0], (n_embd, HD)),
        "wk": w(ks[1], (n_embd, HD)),
        "wv": w(ks[2], (n_embd, HD)),
        "wp": w(ks[3], (HD, n_embd)),
        "bp": w(ks[4], (1, n_embd)),
    }


if __name__ == "__main__":
    # Small shapes consistent with the module: x is (B, T, n_embd), T <= block_size.
    B, T = 4, 128                     # T == block_size of the original module
    n_embd, n_head = 128, 4
    head_size = n_embd // n_head      # 32; proj input = n_head * head_size
    window = 32                       # < T so the window mask is exercised

    key = jax.random.PRNGKey(0)
    kx, kp = jax.random.split(key)
    x = jax.random.normal(kx, (B, T, n_embd), jnp.float32)
    params = init_params(kp, n_embd, n_head, head_size)

    out = multi_head_attention(x, params, n_head=n_head, head_size=head_size,
                               window=window, block_b=2)
    out = jax.block_until_ready(out)

    ref = mha_ref(x, params, n_head=n_head, head_size=head_size, window=window)
    err = jnp.max(jnp.abs(out - ref))
    assert out.shape == (B, T, n_embd)
    # bf16 MXU inputs with f32 accumulation -> slightly looser tolerance vs f32 ref.
    assert jnp.allclose(out, ref, atol=1e-2, rtol=1e-2), f"max abs err {err}"
    print("KERNEL_OK")
</pallas_src>

<mosaic_0001>
module attributes {stable_mosaic.version = 11 : i64} {
  func.func @mha_kernel(%arg0: i32, %arg1: memref<2x128x128xbf16, #tpu.memory_space<vmem>>, %arg2: memref<128x384xbf16, #tpu.memory_space<vmem>>, %arg3: memref<128x128xbf16, #tpu.memory_space<vmem>>, %arg4: memref<1x128xf32, #tpu.memory_space<vmem>>, %arg5: memref<128x128xf32, #tpu.memory_space<vmem>>, %arg6: memref<2x128x128xf32, #tpu.memory_space<vmem>>) attributes {dimension_semantics = [#tpu.dimension_semantics<parallel>], iteration_bounds = array<i64: 2>, scalar_prefetch = 0 : i64, scratch_operands = 0 : i64, tpu.core_type = #tpu.core_type<tc>, window_params = [{transform_indices = @transform_0, window_bounds = array<i64: 2, 128, 128>}, {pipeline_mode = #tpu.pipeline_mode<synchronous>, transform_indices = @transform_1, window_bounds = array<i64: 128, 384>}, {pipeline_mode = #tpu.pipeline_mode<synchronous>, transform_indices = @transform_2, window_bounds = array<i64: 128, 128>}, {pipeline_mode = #tpu.pipeline_mode<synchronous>, transform_indices = @transform_3, window_bounds = array<i64: 1, 128>}, {pipeline_mode = #tpu.pipeline_mode<synchronous>, transform_indices = @transform_4, window_bounds = array<i64: 128, 128>}, {transform_indices = @transform_5, window_bounds = array<i64: 2, 128, 128>}]} {
    %c0 = arith.constant 0 : index
    %c0_0 = arith.constant 0 : index
    %c0_1 = arith.constant 0 : index
    %0 = vector.load %arg1[%c0, %c0_0, %c0_1] : memref<2x128x128xbf16, #tpu.memory_space<vmem>>, vector<2x128x128xbf16>
    %1 = vector.shape_cast %0 : vector<2x128x128xbf16> to vector<256x128xbf16>
    %c0_2 = arith.constant 0 : index
    %c0_3 = arith.constant 0 : index
    %2 = vector.load %arg2[%c0_2, %c0_3] : memref<128x384xbf16, #tpu.memory_space<vmem>>, vector<128x384xbf16>
    %cst = arith.constant dense<0.000000e+00> : vector<256x384xf32>
    %3 = tpu.matmul %1, %2, %cst {dimension_numbers = #tpu.dot_dimension_numbers<[1], [0], [0], [1], [0, 0, 1, 1], [], []>} : vector<256x128xbf16>, vector<128x384xbf16>, vector<256x384xf32> -> vector<256x384xf32>
    %4 = vector.shape_cast %3 : vector<256x384xf32> to vector<2x128x384xf32>
    %5 = vector.extract_strided_slice %4 {offsets = [0, 0, 0], sizes = [2, 128, 128], strides = [1, 1, 1]} : vector<2x128x384xf32> to vector<2x128x128xf32>
    %cst_4 = arith.constant 0.176776692 : f32
    %6 = vector.broadcast %cst_4 : f32 to vector<2x128x128xf32>
    %7 = arith.mulf %5, %6 : vector<2x128x128xf32>
    %8 = arith.truncf %7 : vector<2x128x128xf32> to vector<2x128x128xbf16>
    %9 = vector.extract_strided_slice %4 {offsets = [0, 0, 128], sizes = [2, 128, 128], strides = [1, 1, 1]} : vector<2x128x384xf32> to vector<2x128x128xf32>
    %10 = arith.truncf %9 : vector<2x128x128xf32> to vector<2x128x128xbf16>
    %11 = vector.extract_strided_slice %4 {offsets = [0, 0, 256], sizes = [2, 128, 128], strides = [1, 1, 1]} : vector<2x128x384xf32> to vector<2x128x128xf32>
    %12 = arith.truncf %11 : vector<2x128x128xf32> to vector<2x128x128xbf16>
    %c0_5 = arith.constant 0 : index
    %c0_6 = arith.constant 0 : index
    %13 = vector.load %arg5[%c0_5, %c0_6] : memref<128x128xf32, #tpu.memory_space<vmem>>, vector<128x128xf32>
    %14 = vector.shape_cast %13 : vector<128x128xf32> to vector<1x128x128xf32>
    %15 = vector.extract_strided_slice %8 {offsets = [0, 0, 0], sizes = [2, 128, 32], strides = [1, 1, 1]} : vector<2x128x128xbf16> to vector<2x128x32xbf16>
    %16 = vector.extract_strided_slice %10 {offsets = [0, 0, 0], sizes = [2, 128, 32], strides = [1, 1, 1]} : vector<2x128x128xbf16> to vector<2x128x32xbf16>
    "tpu.trace_start"() <{level = 10 : i32, message = "btd,bsd->bts"}> : () -> ()
    %cst_7 = arith.constant dense<0.000000e+00> : vector<2x128x128xf32>
    %17 = tpu.matmul %15, %16, %cst_7 {dimension_numbers = #tpu.dot_dimension_numbers<[2], [2], [1], [1], [0, 0, 0, 1, 1, 1], [0], [0]>} : vector<2x128x32xbf16>, vector<2x128x32xbf16>, vector<2x128x128xf32> -> vector<2x128x128xf32>
    "tpu.trace_stop"() : () -> ()
    %18 = vector.broadcast %14 : vector<1x128x128xf32> to vector<2x128x128xf32>
    %19 = arith.addf %17, %18 : vector<2x128x128xf32>
    %cst_8 = arith.constant dense<0xFF800000> : vector<2x128xf32>
    %20 = vector.multi_reduction <maximumf>, %19, %cst_8 [2] : vector<2x128x128xf32> to vector<2x128xf32>
    %21 = vector.shape_cast %20 : vector<2x128xf32> to vector<2x128x1xf32>
    %22 = vector.broadcast %21 : vector<2x128x1xf32> to vector<2x128x128xf32>
    %23 = arith.subf %19, %22 : vector<2x128x128xf32>
    %24 = math.exp %23 : vector<2x128x128xf32>
    %cst_9 = arith.constant dense<0.000000e+00> : vector<2x128xf32>
    %25 = vector.multi_reduction <add>, %24, %cst_9 [2] : vector<2x128x128xf32> to vector<2x128xf32>
    %26 = vector.shape_cast %25 : vector<2x128xf32> to vector<2x128x1xf32>
    %27 = tpu.reciprocal %26 {approx = true} : vector<2x128x1xf32> -> vector<2x128x1xf32>
    %28 = vector.broadcast %27 : vector<2x128x1xf32> to vector<2x128x128xf32>
    %29 = arith.mulf %24, %28 : vector<2x128x128xf32>
    %30 = arith.truncf %29 : vector<2x128x128xf32> to vector<2x128x128xbf16>
    %31 = vector.extract_strided_slice %12 {offsets = [0, 0, 0], sizes = [2, 128, 32], strides = [1, 1, 1]} : vector<2x128x128xbf16> to vector<2x128x32xbf16>
    "tpu.trace_start"() <{level = 10 : i32, message = "bts,bsd->btd"}> : () -> ()
    %cst_10 = arith.constant dense<0.000000e+00> : vector<2x128x32xf32>
    %32 = tpu.matmul %30, %31, %cst_10 {dimension_numbers = #tpu.dot_dimension_numbers<[2], [1], [1], [2], [0, 0, 0, 1, 1, 2], [0], [0]>} : vector<2x128x128xbf16>, vector<2x128x32xbf16>, vector<2x128x32xf32> -> vector<2x128x32xf32>
    "tpu.trace_stop"() : () -> ()
    %33 = vector.extract_strided_slice %8 {offsets = [0, 0, 32], sizes = [2, 128, 32], strides = [1, 1, 1]} : vector<2x128x128xbf16> to vector<2x128x32xbf16>
    %34 = vector.extract_strided_slice %10 {offsets = [0, 0, 32], sizes = [2, 128, 32], strides = [1, 1, 1]} : vector<2x128x128xbf16> to vector<2x128x32xbf16>
    "tpu.trace_start"() <{level = 10 : i32, message = "btd,bsd->bts"}> : () -> ()
    %cst_11 = arith.constant dense<0.000000e+00> : vector<2x128x128xf32>
    %35 = tpu.matmul %33, %34, %cst_11 {dimension_numbers = #tpu.dot_dimension_numbers<[2], [2], [1], [1], [0, 0, 0, 1, 1, 1], [0], [0]>} : vector<2x128x32xbf16>, vector<2x128x32xbf16>, vector<2x128x128xf32> -> vector<2x128x128xf32>
    "tpu.trace_stop"() : () -> ()
    %36 = vector.broadcast %14 : vector<1x128x128xf32> to vector<2x128x128xf32>
    %37 = arith.addf %35, %36 : vector<2x128x128xf32>
    %cst_12 = arith.constant dense<0xFF800000> : vector<2x128xf32>
    %38 = vector.multi_reduction <maximumf>, %37, %cst_12 [2] : vector<2x128x128xf32> to vector<2x128xf32>
    %39 = vector.shape_cast %38 : vector<2x128xf32> to vector<2x128x1xf32>
    %40 = vector.broadcast %39 : vector<2x128x1xf32> to vector<2x128x128xf32>
    %41 = arith.subf %37, %40 : vector<2x128x128xf32>
    %42 = math.exp %41 : vector<2x128x128xf32>
    %cst_13 = arith.constant dense<0.000000e+00> : vector<2x128xf32>
    %43 = vector.multi_reduction <add>, %42, %cst_13 [2] : vector<2x128x128xf32> to vector<2x128xf32>
    %44 = vector.shape_cast %43 : vector<2x128xf32> to vector<2x128x1xf32>
    %45 = tpu.reciprocal %44 {approx = true} : vector<2x128x1xf32> -> vector<2x128x1xf32>
    %46 = vector.broadcast %45 : vector<2x128x1xf32> to vector<2x128x128xf32>
    %47 = arith.mulf %42, %46 : vector<2x128x128xf32>
    %48 = arith.truncf %47 : vector<2x128x128xf32> to vector<2x128x128xbf16>
    %49 = vector.extract_strided_slice %12 {offsets = [0, 0, 32], sizes = [2, 128, 32], strides = [1, 1, 1]} : vector<2x128x128xbf16> to vector<2x128x32xbf16>
    "tpu.trace_start"() <{level = 10 : i32, message = "bts,bsd->btd"}> : () -> ()
    %cst_14 = arith.constant dense<0.000000e+00> : vector<2x128x32xf32>
    %50 = tpu.matmul %48, %49, %cst_14 {dimension_numbers = #tpu.dot_dimension_numbers<[2], [1], [1], [2], [0, 0, 0, 1, 1, 2], [0], [0]>} : vector<2x128x128xbf16>, vector<2x128x32xbf16>, vector<2x128x32xf32> -> vector<2x128x32xf32>
    "tpu.trace_stop"() : () -> ()
    %51 = vector.extract_strided_slice %8 {offsets = [0, 0, 64], sizes = [2, 128, 32], strides = [1, 1, 1]} : vector<2x128x128xbf16> to vector<2x128x32xbf16>
    %52 = vector.extract_strided_slice %10 {offsets = [0, 0, 64], sizes = [2, 128, 32], strides = [1, 1, 1]} : vector<2x128x128xbf16> to vector<2x128x32xbf16>
    "tpu.trace_start"() <{level = 10 : i32, message = "btd,bsd->bts"}> : () -> ()
    %cst_15 = arith.constant dense<0.000000e+00> : vector<2x128x128xf32>
    %53 = tpu.matmul %51, %52, %cst_15 {dimension_numbers = #tpu.dot_dimension_numbers<[2], [2], [1], [1], [0, 0, 0, 1, 1, 1], [0], [0]>} : vector<2x128x32xbf16>, vector<2x128x32xbf16>, vector<2x128x128xf32> -> vector<2x128x128xf32>
    "tpu.trace_stop"() : () -> ()
    %54 = vector.broadcast %14 : vector<1x128x128xf32> to vector<2x128x128xf32>
    %55 = arith.addf %53, %54 : vector<2x128x128xf32>
    %cst_16 = arith.constant dense<0xFF800000> : vector<2x128xf32>
    %56 = vector.multi_reduction <maximumf>, %55, %cst_16 [2] : vector<2x128x128xf32> to vector<2x128xf32>
    %57 = vector.shape_cast %56 : vector<2x128xf32> to vector<2x128x1xf32>
    %58 = vector.broadcast %57 : vector<2x128x1xf32> to vector<2x128x128xf32>
    %59 = arith.subf %55, %58 : vector<2x128x128xf32>
    %60 = math.exp %59 : vector<2x128x128xf32>
    %cst_17 = arith.constant dense<0.000000e+00> : vector<2x128xf32>
    %61 = vector.multi_reduction <add>, %60, %cst_17 [2] : vector<2x128x128xf32> to vector<2x128xf32>
    %62 = vector.shape_cast %61 : vector<2x128xf32> to vector<2x128x1xf32>
    %63 = tpu.reciprocal %62 {approx = true} : vector<2x128x1xf32> -> vector<2x128x1xf32>
    %64 = vector.broadcast %63 : vector<2x128x1xf32> to vector<2x128x128xf32>
    %65 = arith.mulf %60, %64 : vector<2x128x128xf32>
    %66 = arith.truncf %65 : vector<2x128x128xf32> to vector<2x128x128xbf16>
    %67 = vector.extract_strided_slice %12 {offsets = [0, 0, 64], sizes = [2, 128, 32], strides = [1, 1, 1]} : vector<2x128x128xbf16> to vector<2x128x32xbf16>
    "tpu.trace_start"() <{level = 10 : i32, message = "bts,bsd->btd"}> : () -> ()
    %cst_18 = arith.constant dense<0.000000e+00> : vector<2x128x32xf32>
    %68 = tpu.matmul %66, %67, %cst_18 {dimension_numbers = #tpu.dot_dimension_numbers<[2], [1], [1], [2], [0, 0, 0, 1, 1, 2], [0], [0]>} : vector<2x128x128xbf16>, vector<2x128x32xbf16>, vector<2x128x32xf32> -> vector<2x128x32xf32>
    "tpu.trace_stop"() : () -> ()
    %69 = vector.extract_strided_slice %8 {offsets = [0, 0, 96], sizes = [2, 128, 32], strides = [1, 1, 1]} : vector<2x128x128xbf16> to vector<2x128x32xbf16>
    %70 = vector.extract_strided_slice %10 {offsets = [0, 0, 96], sizes = [2, 128, 32], strides = [1, 1, 1]} : vector<2x128x128xbf16> to vector<2x128x32xbf16>
    "tpu.trace_start"() <{level = 10 : i32, message = "btd,bsd->bts"}> : () -> ()
    %cst_19 = arith.constant dense<0.000000e+00> : vector<2x128x128xf32>
    %71 = tpu.matmul %69, %70, %cst_19 {dimension_numbers = #tpu.dot_dimension_numbers<[2], [2], [1], [1], [0, 0, 0, 1, 1, 1], [0], [0]>} : vector<2x128x32xbf16>, vector<2x128x32xbf16>, vector<2x128x128xf32> -> vector<2x128x128xf32>
    "tpu.trace_stop"() : () -> ()
    %72 = vector.broadcast %14 : vector<1x128x128xf32> to vector<2x128x128xf32>
    %73 = arith.addf %71, %72 : vector<2x128x128xf32>
    %cst_20 = arith.constant dense<0xFF800000> : vector<2x128xf32>
    %74 = vector.multi_reduction <maximumf>, %73, %cst_20 [2] : vector<2x128x128xf32> to vector<2x128xf32>
    %75 = vector.shape_cast %74 : vector<2x128xf32> to vector<2x128x1xf32>
    %76 = vector.broadcast %75 : vector<2x128x1xf32> to vector<2x128x128xf32>
    %77 = arith.subf %73, %76 : vector<2x128x128xf32>
    %78 = math.exp %77 : vector<2x128x128xf32>
    %cst_21 = arith.constant dense<0.000000e+00> : vector<2x128xf32>
    %79 = vector.multi_reduction <add>, %78, %cst_21 [2] : vector<2x128x128xf32> to vector<2x128xf32>
    %80 = vector.shape_cast %79 : vector<2x128xf32> to vector<2x128x1xf32>
    %81 = tpu.reciprocal %80 {approx = true} : vector<2x128x1xf32> -> vector<2x128x1xf32>
    %82 = vector.broadcast %81 : vector<2x128x1xf32> to vector<2x128x128xf32>
    %83 = arith.mulf %78, %82 : vector<2x128x128xf32>
    %84 = arith.truncf %83 : vector<2x128x128xf32> to vector<2x128x128xbf16>
    %85 = vector.extract_strided_slice %12 {offsets = [0, 0, 96], sizes = [2, 128, 32], strides = [1, 1, 1]} : vector<2x128x128xbf16> to vector<2x128x32xbf16>
    "tpu.trace_start"() <{level = 10 : i32, message = "bts,bsd->btd"}> : () -> ()
    %cst_22 = arith.constant dense<0.000000e+00> : vector<2x128x32xf32>
    %86 = tpu.matmul %84, %85, %cst_22 {dimension_numbers = #tpu.dot_dimension_numbers<[2], [1], [1], [2], [0, 0, 0, 1, 1, 2], [0], [0]>} : vector<2x128x128xbf16>, vector<2x128x32xbf16>, vector<2x128x32xf32> -> vector<2x128x32xf32>
    "tpu.trace_stop"() : () -> ()
    %87 = tpu.concatenate %32, %50, %68, %86 in 2 : vector<2x128x32xf32>, vector<2x128x32xf32>, vector<2x128x32xf32>, vector<2x128x32xf32> -> vector<2x128x128xf32>
    %88 = arith.truncf %87 : vector<2x128x128xf32> to vector<2x128x128xbf16>
    %89 = vector.shape_cast %88 : vector<2x128x128xbf16> to vector<256x128xbf16>
    %c0_23 = arith.constant 0 : index
    %c0_24 = arith.constant 0 : index
    %90 = vector.load %arg3[%c0_23, %c0_24] : memref<128x128xbf16, #tpu.memory_space<vmem>>, vector<128x128xbf16>
    %cst_25 = arith.constant dense<0.000000e+00> : vector<256x128xf32>
    %91 = tpu.matmul %89, %90, %cst_25 {dimension_numbers = #tpu.dot_dimension_numbers<[1], [0], [0], [1], [0, 0, 1, 1], [], []>} : vector<256x128xbf16>, vector<128x128xbf16>, vector<256x128xf32> -> vector<256x128xf32>
    %c0_26 = arith.constant 0 : index
    %c0_27 = arith.constant 0 : index
    %92 = vector.load %arg4[%c0_26, %c0_27] : memref<1x128xf32, #tpu.memory_space<vmem>>, vector<1x128xf32>
    %93 = vector.broadcast %92 : vector<1x128xf32> to vector<256x128xf32>
    %94 = arith.addf %91, %93 : vector<256x128xf32>
    %95 = vector.shape_cast %94 : vector<256x128xf32> to vector<2x128x128xf32>
    %c0_28 = arith.constant 0 : index
    %c0_29 = arith.constant 0 : index
    %c0_30 = arith.constant 0 : index
    %96 = vector.load %arg6[%c0_28, %c0_29, %c0_30] : memref<2x128x128xf32, #tpu.memory_space<vmem>>, vector<2x128x128xf32>
    tpu.vector_store %arg6[%c0_28, %c0_29, %c0_30], %95 {strides = array<i32>} : memref<2x128x128xf32, #tpu.memory_space<vmem>>, vector<2x128x128xf32>,
    return
  }
  func.func @transform_0(%arg0: i32) -> (i32, i32, i32) {
    %c0_i32 = arith.constant 0 : i32
    %c0_i32_0 = arith.constant 0 : i32
    %c0_i32_1 = arith.constant 0 : i32
    return %arg0, %c0_i32, %c0_i32_0 : i32, i32, i32
  }
  func.func @transform_1(%arg0: i32) -> (i32, i32) {
    %c0_i32 = arith.constant 0 : i32
    %c0_i32_0 = arith.constant 0 : i32
    %c0_i32_1 = arith.constant 0 : i32
    return %c0_i32, %c0_i32_0 : i32, i32
  }
  func.func @transform_2(%arg0: i32) -> (i32, i32) {
    %c0_i32 = arith.constant 0 : i32
    %c0_i32_0 = arith.constant 0 : i32
    %c0_i32_1 = arith.constant 0 : i32
    return %c0_i32, %c0_i32_0 : i32, i32
  }
  func.func @transform_3(%arg0: i32) -> (i32, i32) {
    %c0_i32 = arith.constant 0 : i32
    %c0_i32_0 = arith.constant 0 : i32
    %c0_i32_1 = arith.constant 0 : i32
    return %c0_i32, %c0_i32_0 : i32, i32
  }
  func.func @transform_4(%arg0: i32) -> (i32, i32) {
    %c0_i32 = arith.constant 0 : i32
    %c0_i32_0 = arith.constant 0 : i32
    %c0_i32_1 = arith.constant 0 : i32
    return %c0_i32, %c0_i32_0 : i32, i32
  }
  func.func @transform_5(%arg0: i32) -> (i32, i32, i32) {
    %c0_i32 = arith.constant 0 : i32
    %c0_i32_0 = arith.constant 0 : i32
    %c0_i32_1 = arith.constant 0 : i32
    return %arg0, %c0_i32, %c0_i32_0 : i32, i32, i32
  }
}

</mosaic_0001>

<bundles_post_ra>
// kernel: tpu_custom_call.1
= control target key start
LH: loop header
LB: loop body
LE: loop exit
PB: predicated region body
PF: predicated region fallthrough
CT: control target
= control target key end

     0   :  { %10 = vsyncpa [#allocation3], 0  ;;  %s10852_s0 = inlined_call_operand.hbm [shape: bf16[4,128,128], index: 0, kind: input, shape index: {}]   ;;  %s10853_s1 = inlined_call_operand.hbm [shape: bf16[128,384], index: 1, kind: input, shape index: {}]   ;;  %s10854_s2 = inlined_call_operand.hbm [shape: bf16[128,128], index: 2, kind: input, shape index: {}]   ;;  %s10855_s3 = inlined_call_operand.vmem [shape: f32[1,128], index: 3, kind: input, shape index: {}]   ;;  %s10856_s4 = inlined_call_operand.hbm [shape: f32[128,128], index: 4, kind: input, shape index: {}]   ;;  %s10857_s5 = inlined_call_operand.hbm [shape: f32[4,128,128], index: 5, kind: output, shape index: {}]  }
   0x1   :  { %12 = vsyncpa [#allocation3 + $0x1], 0 }
   0x2   :  { %13 = vsyncpa [#allocation6], 0 }
   0x3   :  { %14 = vsyncpa [#allocation9], 0 }
   0x4   :  { %15 = vsyncpa [#allocation4], 0 }
   0x5   :  { %17 = vsyncpa [#allocation4 + $0x1], 0  ;;  %s7758_s18 = smov 0   ;;  %s7760_s19 = smov 0  }
   0x6   :  { %s7762_s20 = smov 0   ;;  %s7764_s21 = smov 0  }
   0x7 LB: > { %s7779_s22 = sadd.s32 4294967295, %s7709_s21   ;;  %s5445_s23 = sadd.s32 4294967294, %s7709_s21   ;;  %s7709_s21 = sphi %s7764_s21, %s11436_s21   ;;  %s7705_s20 = sphi %s7762_s20, %s11435_s20   ;;  %s7701_s19 = sphi %s7760_s19, %s11434_s19   ;;  %s7697_s18 = sphi %s7758_s18, %s11433_s18  }
   0x8   : > { %p43_p0 = scmp.ne.s32.totalorder %s7701_s19, %s7697_s18  ;;  %p10858_p1 = scmp.eq.s32.totalorder %s7779_s22, 0 }
   0x9   : > { %p157_p3 = scmp.eq.s32.totalorder %s5445_s23, 1  ;;  %p5446_p5 = scmp.ge.s32.totalorder %s7709_s21, 1 }
   0xa   : > { %p7788_p4 = por %p10858_p1, %p43_p0  ;;  %p164_p7 = scmp.lt.s32.totalorder %s7709_s21, 3 }
   0xb   : > { %p7793_p6 = por %p157_p3, %p43_p0  ;;  %s7711_s27 = smov [#allocation5]  }
   0xc   : > { %s11024_s24 = scalar_select %p7788_p4, 1, 0 }
   0xd   : > { %s11025_s25 = scalar_select %p7793_p6, 1, 0 }
   0xe   : > { %p7798_p8 = pnand %p5446_p5, %p164_p7  ;;  %s176_s28 = sshll.u32 %s7711_s27, 4  ;;  %s7802_s28 = int_to_ptr.vmem [resolvable:$true] %s176_s28 }
   0xf   : > { %s7712_s30 = smov [#allocation7]   ;;  %s7521_s9 = scalar_lea.hbm %s10853_s1, 3072 }
  0x10   : > { %s11026_s26 = scalar_select %p7798_p8, 1, 0 }
  0x11   : > { %p6592_p9 = pneg %p7798_p8  ;;  %s189_s6 = sshll.u32 %s7712_s30, 4  ;;  %s7813_s6 = int_to_ptr.vmem [resolvable:$true] %s189_s6 }
  0x12   : > { %p7522_p12 = scmp.ne.s32.totalorder %s10853_s1, %s7521_s9  ;;  %p7528_p5 = scmp.lt.u32.totalorder %s7521_s9, %s10853_s1 }
  0x13   : > { %p7809_p11 = pnand %p6592_p9, %p10858_p1 }
  0x15   : > { %p7823_p13 = pneg %p7809_p11 }
  0x17   : > { %p7524_p0 = pnand %p7823_p13, %p7522_p12 }
  0x19   : > { %p7525_p3 = pneg %p7524_p0 }
  0x1b   : > { %p7530_p7 = pnand %p7528_p5, %p7525_p3 }
  0x1d   : > { %7533 = shalt.err (!%p7530_p7)
}
  0x1e   : > { %s7534_s15 = scalar_lea.vmem %s7802_s28, 3072  ;;  %p7542_p2 = scmp.lt.s32.totalorder %s7802_s28, %s7802_s28 }
  0x1f   : > { %p7535_p9 = scmp.ne.s32.totalorder %s7802_s28, %s7534_s15  ;;  %p7543_p6 = scmp.lt.s32.totalorder %s7534_s15, %s7534_s15 }
  0x21   : > { %p7537_p10 = pnand %p7535_p9, %p7823_p13  ;;  %p7544_p12 = por %p7543_p6, %p7542_p2 }
  0x23   : > { %p7538_p1 = pneg %p7537_p10 }
  0x25   : > { %p7545_p0 = pnand %p7544_p12, %p7538_p1 }
  0x27   : > { %7548 = shalt.err (!%p7545_p0)
}
  0x28   : > { %s7713_s16 = smov 192   ;;  %s7714_s17 = smov 12  }
  0x29   : > { %6595 = dma.hbm_to_vmem [thread:$0]  (!%p7809_p11), %s10853_s1, 3072, %s7802_s28, [#allocation6], %s7713_s16, %s7713_s16, %s7714_s17  }
  0x2a   : > { %s7549_s8 = scalar_lea.hbm %s10854_s2, 1024 }
  0x2b   : > { %p7550_p2 = scmp.ne.s32.totalorder %s10854_s2, %s7549_s8  ;;  %p7556_p10 = scmp.lt.u32.totalorder %s7549_s8, %s10854_s2 }
  0x2d   : > { %p7552_p1 = pnand %p7550_p2, %p7823_p13 }
  0x2f   : > { %p7553_p6 = pneg %p7552_p1 }
  0x31   : > { %p7558_p3 = pnand %p7556_p10, %p7553_p6 }
  0x33   : > { %7561 = shalt.err (!%p7558_p3)
}
  0x34   : > { %s7562_s28 = scalar_lea.vmem %s7813_s6, 1024  ;;  %p7570_p12 = scmp.lt.s32.totalorder %s7813_s6, %s7813_s6 }
  0x35   : > { %p7563_p5 = scmp.ne.s32.totalorder %s7813_s6, %s7562_s28  ;;  %p7571_p0 = scmp.lt.s32.totalorder %s7562_s28, %s7562_s28 }
  0x37   : > { %p7565_p7 = pnand %p7563_p5, %p7823_p13  ;;  %p7572_p2 = por %p7571_p0, %p7570_p12 }
  0x39   : > { %p7566_p9 = pneg %p7565_p7 }
  0x3b   : > { %p7573_p1 = pnand %p7572_p2, %p7566_p9 }
  0x3d   : > { %7576 = shalt.err (!%p7573_p1)
}
  0x3e   : > { %s7715_s14 = smov 64   ;;  %s7716_s15 = smov 4  }
  0x3f   : > { %6598 = dma.hbm_to_vmem [thread:$0]  (!%p7809_p11), %s10854_s2, 1024, %s7813_s6, [#allocation6], %s7715_s14, %s7715_s14, %s7716_s15  }
  0x40   : > { %s7717_s23 = smov [#allocation8]   ;;  %s7577_s8 = scalar_lea.hbm %s10856_s4, 2048 }
  0x41   : > { %s205_s27 = sshll.u32 %s7717_s23, 4  ;;  %p7578_p6 = scmp.ne.s32.totalorder %s10856_s4, %s7577_s8  ;;  %s206_s27 = int_to_ptr.vmem [resolvable:$true] %s205_s27 }
  0x42   : > { %p7584_p5 = scmp.lt.u32.totalorder %s7577_s8, %s10856_s4 }
  0x43   : > { %p7580_p10 = pnand %p7578_p6, %p7823_p13 }
  0x45   : > { %p7581_p3 = pneg %p7580_p10 }
  0x47   : > { %p7586_p7 = pnand %p7584_p5, %p7581_p3 }
  0x49   : > { %7589 = shalt.err (!%p7586_p7)
}
  0x4a   : > { %s7590_s6 = scalar_lea.vmem %s206_s27, 2048  ;;  %p7598_p2 = scmp.lt.s32.totalorder %s206_s27, %s206_s27 }
  0x4b   : > { %p7591_p9 = scmp.ne.s32.totalorder %s206_s27, %s7590_s6  ;;  %p7599_p1 = scmp.lt.s32.totalorder %s7590_s6, %s7590_s6 }
  0x4d   : > { %p7593_p12 = pnand %p7591_p9, %p7823_p13  ;;  %p7600_p4 = por %p7599_p1, %p7598_p2 }
  0x4f   : > { %p7594_p0 = pneg %p7593_p12 }
  0x51   : > { %p7601_p8 = pnand %p7600_p4, %p7594_p0 }
  0x53   : > { %7604 = shalt.err (!%p7601_p8)
}
  0x54   : > { %s7718_s28 = smov 128   ;;  %s7719_s12 = smov 8  }
  0x55   : > { %6601 = dma.hbm_to_vmem [thread:$0]  (!%p7809_p11), %s10856_s4, 2048, %s206_s27, [#allocation9], %s7718_s28, %s7718_s28, %s7719_s12  }
  0x56   : > { %s7889_s23 = sadd.s32 1, %s7709_s21   ;;  %s30_s7 = sadd.s32 1, %s7705_s20 }
  0x57   : > { %s27_s30 = ssub.s32 %s7709_s21, %s7889_s23  ;;  %p37_p8 = scmp.ne.s32.totalorder %s7705_s20, %s7701_s19 }
  0x58   : > { %p28_p4 = scmp.eq.s32.totalorder %s27_s30, 0  ;;  %p38_p13 = scmp.eq.s32.totalorder %s7709_s21, 0 }
  0x59   : > { %p6613_p6 = scmp.lt.s32.totalorder %s7709_s21, 2  ;;  %p11029_p3 = scmp.eq.s32.totalorder %s7779_s22, 1 }
  0x5a   : > { %s7899_s8 = scalar_select %p28_p4, %s7705_s20, %s30_s7  }
  0x5b   : > { %p39_p10 = por %p38_p13, %p37_p8  ;;  %p7903_p5 = por %p11029_p3, %p37_p8 }
  0x5c   : > { %s219_s29 = sand.u32 1, %s7705_s20   ;;  %s5581_s10 = sshll.u32 %s7709_s21, 11 }
  0x5d   : > { %s5451_s27 = sshll.u32 %s219_s29, 7  ;;  %s7912_s6 = scalar_lea.hbm %s10852_s0, %s5581_s10 }
  0x5e   : > { %s223_s28 = scalar_lea.vmem [#allocation2], %s5451_s27  ;;  %p7914_p11 = pnand %p6613_p6, %p39_p10 }
  0x5f   : > { %s231_s12 = sshll.u32 %s223_s28, 4  ;;  %s7920_s17 = scalar_lea.sflag [#allocation3], %s219_s29  ;;  %s7918_s12 = int_to_ptr.vmem [resolvable:$true] %s231_s12 }
  0x60   : > { %s7605_s30 = scalar_lea.hbm %s7912_s6, 2048  ;;  %p7607_p9 = pneg %p7914_p11 }
  0x61   : > { %p7606_p7 = scmp.ne.s32.totalorder %s7912_s6, %s7605_s30  ;;  %s7610_s27 = scalar_lea.hbm %s10852_s0, 4096 }
  0x62   : > { %p7611_p2 = scmp.lt.u32.totalorder %s7912_s6, %s10852_s0  ;;  %p7612_p1 = scmp.lt.u32.totalorder %s7610_s27, %s7605_s30 }
  0x63   : > { %p7608_p12 = pnand %p7607_p9, %p7606_p7  ;;  %p7614_p8 = scmp.lt.u32.totalorder %s7605_s30, %s7912_s6 }
  0x64   : > { %p7613_p4 = por %p7612_p1, %p7611_p2 }
  0x65   : > { %p7609_p0 = pneg %p7608_p12 }
  0x66   : > { %p7615_p13 = por %p7614_p8, %p7613_p4 }
  0x68   : > { %p7616_p6 = pnand %p7615_p13, %p7609_p0 }
  0x6a   : > { %7619 = shalt.err (!%p7616_p6)
}
  0x6b   : > { %s7620_s29 = scalar_lea.vmem %s7918_s12, 2048  ;;  %s7720_s28 = smov [#allocation2]  }
  0x6c   : > { %p7621_p10 = scmp.ne.s32.totalorder %s7918_s12, %s7620_s29  ;;  %s7625_s7 = sshll.u32 %s7720_s28, 4  ;;  %s7626_s7 = int_to_ptr.vmem [resolvable:$false] %s7625_s7 }
  0x6d   : > { %s7627_s10 = scalar_lea.vmem %s7626_s7, 4096  ;;  %p7628_p12 = scmp.lt.s32.totalorder %s7918_s12, %s7626_s7 }
  0x6e   : > { %p7623_p3 = pnand %p7621_p10, %p7607_p9  ;;  %p7629_p2 = scmp.lt.s32.totalorder %s7627_s10, %s7620_s29 }
  0x70   : > { %p7624_p7 = pneg %p7623_p3  ;;  %p7630_p1 = por %p7629_p2, %p7628_p12 }
  0x72   : > { %p7631_p4 = pnand %p7630_p1, %p7624_p7 }
  0x74   : > { %7634 = shalt.err (!%p7631_p4)
}
  0x75   : > { %6605 = dma.hbm_to_vmem [thread:$0]  (!%p7914_p11), %s7912_s6, 2048, %s7918_s12, %s7920_s17, %s7715_s14, %s7715_s14, %s7716_s15  }
  0x76   : > { %p11032_p9 = scmp.ne.s32.totalorder %s11026_s26, 0 }
  0x78   : > { %243 = sbr.rel (%p11032_p9) target bundleno = 4128 (0x1020), region = 40 }
  0x7f   : > { %s7954_s30 = sand.u32 1, %s7701_s19   ;;  %p11033_p0 = scmp.ne.s32.totalorder %s11024_s24, 0 }
  0x80   : > { %s5456_s27 = sshll.u32 %s7954_s30, 7  ;;  %s246_s11 = scalar_lea.sflag [#allocation3], %s7954_s30 }
  0x81   : > { %s7958_s13 = scalar_lea.vmem [#allocation2], %s5456_s27 }
  0x82   : > { %7680 = dma.done.wait (%p11033_p0), %s246_s11, 2048  }
  0x83   : > { %7682 = vsyncadd (%p11033_p0), %s246_s11, 4294965248  ;;  %p11034_p11 = scmp.eq.s32.totalorder %s7779_s22, 0 }
  0x85   : > { %7684 = dma.done.wait (%p11034_p11), [#allocation6], 4096   ;;  %p11035_p8 = pmov %p11034_p11 }
  0x87   : > { %7686 = vsyncadd (%p11035_p8), [#allocation6], 4294963200  ;;  %p11036_p13 = pmov %p11035_p8 }
  0x88   : > { %p11037_p6 = pmov %p11035_p8 }
  0x89   : > { %7688 = dma.done.wait (%p11036_p13), [#allocation9], 2048  }
  0x8a   : > { %7690 = vsyncadd (%p11037_p6), [#allocation9], 4294965248  ;;  %v7721_v0 = vmov 0   ;;  %v6905_v1 = vld [vmem:[#allocation5 + $0x4] ss:$12 sps:$4 sm:$0xff]   ;;  %v6930_v22 = vld [vmem:[%s7958_s13 + $0x8] sm:$0xff]  }
  0x8b   : > { %611 = vmatprep.mubr.bf16.mxu0 %v7721_v0  ;;  %731 = vmatprep.mubr.bf16.mxu1 %v7721_v0  ;;  %v6907_v2 = vld [vmem:[#allocation5] ss:$12 sps:$4 sm:$0xff]   ;;  %v6908_v3 = vld [vmem:[#allocation5 + $0x1c] ss:$12 sps:$4 sm:$0xff]   ;;  %v6910_v4 = vld [vmem:[#allocation5 + $0x18] ss:$12 sps:$4 sm:$0xff]  }
  0x8c   : > { %579 = vmatprep.subr.bf16.mxu0 %v6905_v1  ;;  %6496 = vmatprep.subr.bf16.mxu1 %v6905_v1  ;;  %v6911_v5 = vld [vmem:[#allocation5 + $0x34] ss:$12 sps:$4 sm:$0xff]   ;;  %v6913_v6 = vld [vmem:[#allocation5 + $0x30] ss:$12 sps:$4 sm:$0xff]   ;;  %v6914_v7 = vld [vmem:[#allocation5 + $0x4c] ss:$12 sps:$4 sm:$0xff]  }
  0x8d   : > { %580 = vmatpush1.bf16.msra.mxu0 %v6907_v2  ;;  %6504 = vmatpush1.bf16.msra.mxu1 %v6907_v2  ;;  %v6916_v8 = vld [vmem:[#allocation5 + $0x48] ss:$12 sps:$4 sm:$0xff]   ;;  %v6917_v9 = vld [vmem:[#allocation5 + $0x64] ss:$12 sps:$4 sm:$0xff]   ;;  %v6919_v10 = vld [vmem:[#allocation5 + $0x60] ss:$12 sps:$4 sm:$0xff]  }
  0x8e   : > { %581 = vmatprep.subr.bf16.mxu0 %v6908_v3  ;;  %6497 = vmatprep.subr.bf16.mxu1 %v6908_v3  ;;  %v6920_v11 = vld [vmem:[#allocation5 + $0x7c] ss:$12 sps:$4 sm:$0xff]   ;;  %v6922_v12 = vld [vmem:[#allocation5 + $0x78] ss:$12 sps:$4 sm:$0xff]   ;;  %v6923_v13 = vld [vmem:[#allocation5 + $0x94] ss:$12 sps:$4 sm:$0xff]  }
  0x8f   : > { %v6925_v14 = vld [vmem:[#allocation5 + $0x90] ss:$12 sps:$4 sm:$0xff]   ;;  %v6926_v15 = vld [vmem:[#allocation5 + $0xac] ss:$12 sps:$4 sm:$0xff]   ;;  %v6928_v16 = vld [vmem:[#allocation5 + $0xa8] ss:$12 sps:$4 sm:$0xff]  }
  0x90   : > { %v6945_v17 = vld [vmem:[#allocation5 + $0x8] ss:$12 sps:$4 sm:$0xff]   ;;  %v6929_v18 = vld [vmem:[%s7958_s13] sm:$0xff]   ;;  %v6948_v24 = vld [vmem:[#allocation5 + $0x50] ss:$12 sps:$4 sm:$0xff]   ;;  %vm1029_vm0 = vcmask 261120  }
  0x91   : > { %582 = vmatpush1.bf16.msra.mxu0 %v6910_v4  ;;  %6505 = vmatpush1.bf16.msra.mxu1 %v6910_v4  ;;  %v7976_v19 = vld [vmem:[%s7958_s13 + $0x60] sm:$0xff]   ;;  %v7983_v23 = vld [vmem:[%s7958_s13 + $0x68] sm:$0xff]   ;;  %v6931_v26 = vld [vmem:[%s7958_s13 + $0x10] sm:$0xff]   ;;  %s7722_s24 = smov 96   ;;  %s7723_s26 = smov 64   ;;  %vm4982_vm1 = vcmask 523264  }
  0x92   : > { %583 = vmatprep.subr.bf16.mxu0 %v6911_v5  ;;  %6498 = vmatprep.subr.bf16.mxu1 %v6911_v5  ;;  %v6946_v20 = vld [vmem:[#allocation5 + $0x20] ss:$12 sps:$4 sm:$0xff]   ;;  %v6947_v21 = vld [vmem:[#allocation5 + $0x38] ss:$12 sps:$4 sm:$0xff]   ;;  %v6949_v25 = vld [vmem:[#allocation5 + $0x68] ss:$12 sps:$4 sm:$0xff]  }
  0x93   : > { %v6943_v27 = vld [vmem:[%s7958_s13 + $0x70] sm:$0xff]   ;;  %v6950_v28 = vld [vmem:[#allocation5 + $0x80] ss:$12 sps:$4 sm:$0xff]   ;;  %v6951_v29 = vld [vmem:[#allocation5 + $0x98] ss:$12 sps:$4 sm:$0xff]   ;;  %s7724_s14 = smov 32  }
  0x94   : > { %v6932_v30 = vld [vmem:[%s7958_s13 + $0x18] sm:$0xff]   ;;  %v6933_v33 = vld [vmem:[%s7958_s13 + $0x20] sm:$0xff]   ;;  %v6934_v34 = vld [vmem:[%s7958_s13 + $0x28] sm:$0xff]   ;;  %vm5015_vm2 = vcmask 785408   ;;  %s5460_s15 = sshll.u32 %s7954_s30, 8  ;;  %s5583_s17 = sshll.u32 %s7779_s22, 12 }
  0x95   : > { %584 = vmatpush1.bf16.msra.mxu0 %v6913_v6  ;;  %6506 = vmatpush1.bf16.msra.mxu1 %v6913_v6  ;;  %v6944_v31 = vld [vmem:[%s7958_s13 + $0x78] sm:$0xff]   ;;  %v6935_v35 = vld [vmem:[%s7958_s13 + $0x30] sm:$0xff]   ;;  %v6937_v37 = vld [vmem:[%s7958_s13 + $0x40] sm:$0xff]   ;;  %s10661_s16 = scalar_lea.vmem [#allocation10], %s5460_s15  ;;  %s10802_s10 = scalar_lea.hbm %s10857_s5, %s5583_s17 }
  0x96   : > { %585 = vmatprep.subr.bf16.mxu0 %v6914_v7  ;;  %6499 = vmatprep.subr.bf16.mxu1 %v6914_v7  ;;  %v6952_v32 = vld [vmem:[#allocation5 + $0xb0] ss:$12 sps:$4 sm:$0xff]   ;;  %v6938_v38 = vld [vmem:[%s7958_s13 + $0x48] sm:$0xff]   ;;  %s5343_s29 = sshll.u32 %s10661_s16, 4  ;;  %s5329_s22 = scalar_lea.sflag [#allocation4], %s7954_s30  ;;  %s10804_s29 = int_to_ptr.vmem [resolvable:$true] %s5343_s29 }
  0x97   : > { %v6936_v36 = vld [vmem:[%s7958_s13 + $0x38] sm:$0xff]   ;;  %v6939_v39 = vld [vmem:[%s7958_s13 + $0x50] sm:$0xff]   ;;  %s7635_s27 = scalar_lea.vmem %s10804_s29, 4096  ;;  %s7725_s11 = smov [#allocation10]  }
  0x98   : > { %v6940_v40 = vld [vmem:[%s7958_s13 + $0x58] sm:$0xff]   ;;  %p7636_p10 = scmp.ne.s32.totalorder %s10804_s29, %s7635_s27  ;;  %s7639_s13 = sshll.u32 %s7725_s11, 4  ;;  %s7640_s13 = int_to_ptr.vmem [resolvable:$false] %s7639_s13 }
  0x99   : > { %586 = vmatpush1.bf16.msra.mxu0 %v6916_v8  ;;  %6507 = vmatpush1.bf16.msra.mxu1 %v6916_v8  ;;  %p7642_p12 = scmp.lt.s32.totalorder %s10804_s29, %s7640_s13 }
  0x9a   : > { %587 = vmatprep.subr.bf16.mxu0 %v6917_v9  ;;  %6500 = vmatprep.subr.bf16.mxu1 %v6917_v9  ;;  %p7637_p3 = pnand %p7636_p10, %p7903_p5 }
  0x9c   : > { %p7638_p7 = pneg %p7637_p3 }
  0x9d   : > { %588 = vmatpush1.bf16.msra.mxu0 %v6919_v10  ;;  %6508 = vmatpush1.bf16.msra.mxu1 %v6919_v10 }
  0x9e   : > { %589 = vmatprep.subr.bf16.mxu0 %v6920_v11  ;;  %6501 = vmatprep.subr.bf16.mxu1 %v6920_v11 }
  0xa1   : > { %590 = vmatpush1.bf16.msra.mxu0 %v6922_v12  ;;  %6509 = vmatpush1.bf16.msra.mxu1 %v6922_v12 }
  0xa2   : > { %591 = vmatprep.subr.bf16.mxu0 %v6923_v13  ;;  %6502 = vmatprep.subr.bf16.mxu1 %v6923_v13 }
  0xa5   : > { %592 = vmatpush1.bf16.msra.mxu0 %v6925_v14  ;;  %6510 = vmatpush1.bf16.msra.mxu1 %v6925_v14 }
  0xa6   : > { %593 = vmatprep.subr.bf16.mxu0 %v6926_v15  ;;  %6503 = vmatprep.subr.bf16.mxu1 %v6926_v15 }
  0xa9   : > { %594 = vmatpush1.bf16.msra.mxu0 %v6928_v16  ;;  %6511 = vmatpush1.bf16.msra.mxu1 %v6928_v16 }
  0xaa   : > { %5888 = vmatprep.subr.bf16.mxu1 %v6945_v17 }
  0xac   : > { %612 = vmatmul.mubr.bf16.vlgmr.msra.gmra.mrb[0].mxu0 %v6929_v18  ;;  %732 = vmatmul.mubr.bf16.vlgmr.msra.gmra.mrb[0].mxu1 %v7976_v19 }
  0xad   : > { %621 = vmatprep.mubr.bf16.mxu0 %v7721_v0  ;;  %741 = vmatprep.mubr.bf16.mxu1 %v7721_v0 }
  0xae   : > { %5889 = vmatpush3.bf16.msra.mxu1 %v6945_v17 }
  0xaf   : > { %5890 = vmatprep.subr.bf16.mxu1 %v6946_v20 }
  0xb2   : > { %5891 = vmatpush3.bf16.msra.mxu1 %v6946_v20 }
  0xb3   : > { %5892 = vmatprep.subr.bf16.mxu1 %v6947_v21 }
  0xb4   : > { %622 = vmatmul.mubr.bf16.gmra.mrb[4].mxu0 %v6930_v22  ;;  %742 = vmatmul.mubr.bf16.gmra.mrb[4].mxu1 %v7983_v23 }
  0xb5   : > { %631 = vmatprep.mubr.bf16.mxu0 %v7721_v0  ;;  %751 = vmatprep.mubr.bf16.mxu1 %v7721_v0 }
  0xb6   : > { %5893 = vmatpush3.bf16.msra.mxu1 %v6947_v21 }
  0xb7   : > { %5894 = vmatprep.subr.bf16.mxu1 %v6948_v24 }
  0xba   : > { %5895 = vmatpush3.bf16.msra.mxu1 %v6948_v24 }
  0xbb   : > { %5896 = vmatprep.subr.bf16.mxu1 %v6949_v25 }
  0xbc   : > { %632 = vmatmul.mubr.bf16.gmra.mrb[8].mxu0 %v6931_v26  ;;  %752 = vmatmul.mubr.bf16.gmra.mrb[8].mxu1 %v6943_v27 }
  0xbd   : > { %641 = vmatprep.mubr.bf16.mxu0 %v7721_v0  ;;  %761 = vmatprep.mubr.bf16.mxu1 %v7721_v0 }
  0xbe   : > { %5897 = vmatpush3.bf16.msra.mxu1 %v6949_v25 }
  0xbf   : > { %5898 = vmatprep.subr.bf16.mxu1 %v6950_v28 }
  0xc2   : > { %5899 = vmatpush3.bf16.msra.mxu1 %v6950_v28 }
  0xc3   : > { %5900 = vmatprep.subr.bf16.mxu1 %v6951_v29 }
  0xc4   : > { %642 = vmatmul.mubr.bf16.gmra.mrb[12].mxu0 %v6932_v30  ;;  %762 = vmatmul.mubr.bf16.gmra.mrb[12].mxu1 %v6944_v31 }
  0xc5   : > { %651 = vmatprep.mubr.bf16.mxu0 %v7721_v0  ;;  %5904 = vmatprep.mubr.bf16.mxu1 %v6929_v18 }
  0xc6   : > { %5901 = vmatpush3.bf16.msra.mxu1 %v6951_v29 }
  0xc7   : > { %5902 = vmatprep.subr.bf16.mxu1 %v6952_v32 }
  0xca   : > { %5903 = vmatpush3.bf16.msra.mxu1 %v6952_v32 }
  0xcc   : > { %652 = vmatmul.mubr.bf16.gmra.mrb[16].mxu0 %v6933_v33 }
  0xcd   : > { %661 = vmatprep.mubr.bf16.mxu0 %v7721_v0  ;;  %5905 = vmatmul.mubr.bf16.vlgmr.msra.gmra.mrb[16].mxu1 %v6930_v22 }
  0xce   : > { %5908 = vmatprep.mubr.bf16.mxu1 %v6931_v26 }
  0xd4   : > { %662 = vmatmul.mubr.bf16.gmra.mrb[20].mxu0 %v6934_v34 }
  0xd5   : > { %671 = vmatprep.mubr.bf16.mxu0 %v7721_v0  ;;  %5909 = vmatmul.mubr.bf16.gmra.mrb[20].mxu1 %v6932_v30 }
  0xd6   : > { %5912 = vmatprep.mubr.bf16.mxu1 %v6933_v33 }
  0xdc   : > { %672 = vmatmul.mubr.bf16.gmra.mrb[24].mxu0 %v6935_v35 }
  0xdd   : > { %681 = vmatprep.mubr.bf16.mxu0 %v7721_v0  ;;  %5913 = vmatmul.mubr.bf16.gmra.mrb[24].mxu1 %v6934_v34 }
  0xde   : > { %5916 = vmatprep.mubr.bf16.mxu1 %v6935_v35 }
  0xe4   : > { %682 = vmatmul.mubr.bf16.gmra.mrb[28].mxu0 %v6936_v36 }
  0xe5   : > { %691 = vmatprep.mubr.bf16.mxu0 %v7721_v0  ;;  %5917 = vmatmul.mubr.bf16.gmra.mrb[28].mxu1 %v6936_v36 }
  0xe6   : > { %5920 = vmatprep.mubr.bf16.mxu1 %v6937_v37 }
  0xec   : > { %692 = vmatmul.mubr.bf16.gmra.mrb[32].mxu0 %v6937_v37 }
  0xed   : > { %701 = vmatprep.mubr.bf16.mxu0 %v7721_v0  ;;  %5921 = vmatmul.mubr.bf16.gmra.mrb[32].mxu1 %v6938_v38 }
  0xee   : > { %5924 = vmatprep.mubr.bf16.mxu1 %v6939_v39 }
  0xf4   : > { %702 = vmatmul.mubr.bf16.gmra.mrb[36].mxu0 %v6938_v38 }
  0xf5   : > { %711 = vmatprep.mubr.bf16.mxu0 %v7721_v0  ;;  %5925 = vmatmul.mubr.bf16.gmra.mrb[36].mxu1 %v6940_v40 }
  0xf6   : > { %5928 = vmatprep.mubr.bf16.mxu1 %v7976_v19 }
  0xfc   : > { %712 = vmatmul.mubr.bf16.gmra.mrb[40].mxu0 %v6939_v39 }
  0xfd   : > { %721 = vmatprep.mubr.bf16.mxu0 %v7721_v0  ;;  %5929 = vmatmul.mubr.bf16.gmra.mrb[40].mxu1 %v7983_v23 }
  0xfe   : > { %5932 = vmatprep.mubr.bf16.mxu1 %v6943_v27 }
 0x104   : > { %722 = vmatmul.mubr.bf16.gmra.mrb[44].mxu0 %v6940_v40 }
 0x105   : > { %5933 = vmatmul.mubr.bf16.gmra.mrb[44].mxu1 %v6944_v31 }
 0x17f   : > { %v613_v41 = vpop.f32.mrb[0].mxu0  ;;  %v733_v42 = vpop.f32.mrb[0].mxu1 }
 0x180   : > { %v615_v43 = vpop.f32.mrb[1].mxu0  ;;  %v957_v44 = vmul.f32 0.17677669, %v733_v42  ;;  %v735_v45 = vpop.f32.mrb[1].mxu1  ;;  %v933_v46 = vmul.f32 0.17677669, %v613_v41 }
 0x181   : > { %v617_v47 = vpop.f32.mrb[2].mxu0  ;;  %v737_v48 = vpop.f32.mrb[2].mxu1 }
 0x182   : > { %v934_v49 = vmul.f32 0.17677669, %v617_v47  ;;  %v619_v50 = vpop.f32.mrb[3].mxu0  ;;  %v958_v51 = vmul.f32 0.17677669, %v737_v48  ;;  %v739_v52 = vpop.f32.mrb[3].mxu1 }
 0x183   : > { %v8012_v53 = vpack.c.bf16 %v619_v50, %v615_v43  ;;  %v8014_v54 = vpack.c.bf16 %v739_v52, %v735_v45 }
 0x184   : > { %v8016_v55 = vpack.c.bf16 %v934_v49, %v933_v46  ;;  %v8018_v56 = vpack.c.bf16 %v958_v51, %v957_v44 }
 0x185   : > { %11038 = vst [vmem:[#allocation15_spill] sm:$0xff] %v8012_v53  ;;  %11039 = vst [vmem:[#allocation16_spill] sm:$0xff] %v8014_v54  ;;  %1850 = vrot.lane.b32.xlu0 %v8012_v53, %s7722_s24  ;;  %6512 = vmatprep.subr.msk.bf16.mxu1 %vm1029_vm0, %v8012_v53  ;;  %v1055_v57 = vsel %vm1029_vm0, %v8012_v53, 0  ;;  %v1018_v53 = vld [vmem:[#allocation8 + $0x28] sm:$0xff] }
 0x186   : > { %11040 = vst [vmem:[#allocation17_spill] sm:$0xff] %v8016_v55  ;;  %11041 = vst [vmem:[#allocation18_spill] sm:$0xff] %v8018_v56  ;;  %5937 = vmatpush3.bf16.xpose.msra.mxu1 %v1055_v57  ;;  %5952 = vmatprep.mubr.msk.bf16.mxu1 %vm1029_vm0, %v8016_v55 }
 0x187   : > { %v623_v58 = vpop.f32.mrb[4].mxu0  ;;  %v743_v59 = vpop.f32.mrb[4].mxu1 }
 0x188   : > { %v625_v60 = vpop.f32.mrb[5].mxu0  ;;  %v959_v61 = vmul.f32 0.17677669, %v743_v59  ;;  %v745_v62 = vpop.f32.mrb[5].mxu1  ;;  %v935_v63 = vmul.f32 0.17677669, %v623_v58 }
 0x189   : > { %v627_v0 = vpop.f32.mrb[6].mxu0  ;;  %v747_v1 = vpop.f32.mrb[6].mxu1 }
 0x18a   : > { %v936_v2 = vmul.f32 0.17677669, %v627_v0  ;;  %v629_v3 = vpop.f32.mrb[7].mxu0  ;;  %v960_v4 = vmul.f32 0.17677669, %v747_v1  ;;  %v749_v5 = vpop.f32.mrb[7].mxu1 }
 0x18b   : > { %v8028_v6 = vpack.c.bf16 %v629_v3, %v625_v60  ;;  %v8030_v7 = vpack.c.bf16 %v749_v5, %v745_v62 }
 0x18c   : > { %v8032_v8 = vpack.c.bf16 %v936_v2, %v935_v63  ;;  %v8034_v9 = vpack.c.bf16 %v960_v4, %v959_v61 }
 0x18d   : > { %11042 = vst [vmem:[#allocation19_spill] sm:$0xff] %v8028_v6  ;;  %1852 = vrot.lane.b32.xlu1 %v8028_v6, %s7722_s24  ;;  %6513 = vmatprep.subr.msk.bf16.mxu1 %vm1029_vm0, %v8028_v6  ;;  %v1058_v10 = vsel %vm1029_vm0, %v8028_v6, 0 }
 0x18e   : > { %11043 = vst [vmem:[#allocation20_spill] sm:$0xff] %v8032_v8  ;;  %11044 = vst [vmem:[#allocation21_spill] sm:$0xff] %v8034_v9  ;;  %5939 = vmatpush3.bf16.xpose.msra.mxu1 %v1058_v10 }
 0x18f   : > { %v633_v11 = vpop.f32.mrb[8].mxu0  ;;  %v753_v12 = vpop.f32.mrb[8].mxu1 }
 0x190   : > { %v635_v13 = vpop.f32.mrb[9].mxu0  ;;  %v961_v14 = vmul.f32 0.17677669, %v753_v12  ;;  %v755_v15 = vpop.f32.mrb[9].mxu1  ;;  %v937_v16 = vmul.f32 0.17677669, %v633_v11 }
 0x191   : > { %v637_v17 = vpop.f32.mrb[10].mxu0  ;;  %v757_v18 = vpop.f32.mrb[10].mxu1 }
 0x192   : > { %v938_v19 = vmul.f32 0.17677669, %v637_v17  ;;  %v639_v20 = vpop.f32.mrb[11].mxu0  ;;  %v962_v21 = vmul.f32 0.17677669, %v757_v18  ;;  %v759_v22 = vpop.f32.mrb[11].mxu1 }
 0x193   : > { %v8042_v23 = vpack.c.bf16 %v639_v20, %v635_v13  ;;  %v8044_v24 = vpack.c.bf16 %v759_v22, %v755_v15 }
 0x194   : > { %v8046_v25 = vpack.c.bf16 %v938_v19, %v937_v16  ;;  %v8048_v26 = vpack.c.bf16 %v962_v21, %v961_v14 }
 0x195   : > { %11045 = vst [vmem:[#allocation22_spill] sm:$0xff] %v8042_v23  ;;  %11046 = vst [vmem:[#allocation23_spill] sm:$0xff] %v8044_v24  ;;  %1854 = vrot.lane.b32.xlu0 %v8042_v23, %s7722_s24  ;;  %6514 = vmatprep.subr.msk.bf16.mxu1 %vm1029_vm0, %v8042_v23  ;;  %v1061_v27 = vsel %vm1029_vm0, %v8042_v23, 0  ;;  %v1017_v23 = vld [vmem:[#allocation8 + $0x20] sm:$0xff] }
 0x196   : > { %11047 = vst [vmem:[#allocation24_spill] sm:$0xff] %v8046_v25  ;;  %11048 = vst [vmem:[#allocation25_spill] sm:$0xff] %v8048_v26  ;;  %5941 = vmatpush3.bf16.xpose.msra.mxu1 %v1061_v27 }
 0x197   : > { %v643_v28 = vpop.f32.mrb[12].mxu0  ;;  %v763_v29 = vpop.f32.mrb[12].mxu1 }
 0x198   : > { %v645_v30 = vpop.f32.mrb[13].mxu0  ;;  %v963_v31 = vmul.f32 0.17677669, %v763_v29  ;;  %v765_v32 = vpop.f32.mrb[13].mxu1  ;;  %v939_v33 = vmul.f32 0.17677669, %v643_v28 }
 0x199   : > { %v647_v34 = vpop.f32.mrb[14].mxu0  ;;  %v767_v35 = vpop.f32.mrb[14].mxu1 }
 0x19a   : > { %v940_v36 = vmul.f32 0.17677669, %v647_v34  ;;  %v649_v37 = vpop.f32.mrb[15].mxu0  ;;  %v964_v38 = vmul.f32 0.17677669, %v767_v35  ;;  %v769_v39 = vpop.f32.mrb[15].mxu1 }
 0x19b   : > { %v8056_v40 = vpack.c.bf16 %v649_v37, %v645_v30  ;;  %v8058_v41 = vpack.c.bf16 %v769_v39, %v765_v32 }
 0x19c   : > { %v8060_v42 = vpack.c.bf16 %v940_v36, %v939_v33  ;;  %v8062_v43 = vpack.c.bf16 %v964_v38, %v963_v31 }
 0x19d   : > { %11049 = vst [vmem:[#allocation26_spill] sm:$0xff] %v8056_v40  ;;  %11050 = vst [vmem:[#allocation27_spill] sm:$0xff] %v8058_v41  ;;  %1856 = vrot.lane.b32.xlu0 %v8056_v40, %s7722_s24  ;;  %6515 = vmatprep.subr.msk.bf16.mxu1 %vm1029_vm0, %v8056_v40  ;;  %v1064_v44 = vsel %vm1029_vm0, %v8056_v40, 0 }
 0x19e   : > { %11051 = vst [vmem:[#allocation28_spill] sm:$0xff] %v8060_v42  ;;  %11052 = vst [vmem:[#allocation29_spill] sm:$0xff] %v8062_v43  ;;  %5943 = vmatpush3.bf16.xpose.msra.mxu1 %v1064_v44 }
 0x19f   : > { %v653_v45 = vpop.f32.mrb[16].mxu0 }
 0x1a0   : > { %v655_v46 = vpop.f32.mrb[17].mxu0  ;;  %v941_v48 = vmul.f32 0.17677669, %v653_v45  ;;  %v5906_v16 = vpop.f32.mrb[16].mxu1 }
 0x1a1   : > { %v657_v47 = vpop.f32.mrb[18].mxu0  ;;  %v806_v18 = vpop.f32.mrb[17].mxu1 }
 0x1a2   : > { %v942_v49 = vmul.f32 0.17677669, %v657_v47  ;;  %v659_v50 = vpop.f32.mrb[19].mxu0  ;;  %v5907_v20 = vpop.f32.mrb[18].mxu1 }
 0x1a3   : > { %v8070_v51 = vpack.c.bf16 %v659_v50, %v655_v46  ;;  %v8100_v22 = vpack.c.bf16 %v5907_v20, %v5906_v16  ;;  %v809_v27 = vpop.f32.mrb[19].mxu1 }
 0x1a4   : > { %v8072_v52 = vpack.c.bf16 %v942_v49, %v941_v48  ;;  %v8102_v31 = vpack.c.bf16 %v809_v27, %v806_v18 }
 0x1a5   : > { %11053 = vst [vmem:[#allocation30_spill] sm:$0xff] %v8070_v51  ;;  %1858 = vrot.lane.b32.xlu0 %v8070_v51, %s7722_s24  ;;  %6516 = vmatprep.subr.msk.bf16.mxu1 %vm1029_vm0, %v8070_v51  ;;  %v1067_v57 = vsel %vm1029_vm0, %v8070_v51, 0  ;;  %11059 = vst [vmem:[#allocation36_spill] sm:$0xff] %v8100_v22 }
 0x1a6   : > { %11054 = vst [vmem:[#allocation31_spill] sm:$0xff] %v8072_v52  ;;  %5945 = vmatpush3.bf16.xpose.msra.mxu1 %v1067_v57  ;;  %11060 = vst [vmem:[#allocation37_spill] sm:$0xff] %v8102_v31 }
 0x1a7   : > { %v663_v58 = vpop.f32.mrb[20].mxu0 }
 0x1a8   : > { %v665_v59 = vpop.f32.mrb[21].mxu0  ;;  %v943_v61 = vmul.f32 0.17677669, %v663_v58  ;;  %v5910_v32 = vpop.f32.mrb[20].mxu1 }
 0x1a9   : > { %v667_v60 = vpop.f32.mrb[22].mxu0  ;;  %v822_v34 = vpop.f32.mrb[21].mxu1 }
 0x1aa   : > { %v944_v62 = vmul.f32 0.17677669, %v667_v60  ;;  %v669_v63 = vpop.f32.mrb[23].mxu0  ;;  %v5911_v36 = vpop.f32.mrb[22].mxu1 }
 0x1ab   : > { %v8080_v0 = vpack.c.bf16 %v669_v63, %v665_v59  ;;  %v8112_v38 = vpack.c.bf16 %v5911_v36, %v5910_v32  ;;  %v825_v39 = vpop.f32.mrb[23].mxu1 }
 0x1ac   : > { %v8082_v1 = vpack.c.bf16 %v944_v62, %v943_v61  ;;  %v8114_v44 = vpack.c.bf16 %v825_v39, %v822_v34 }
 0x1ad   : > { %11055 = vst [vmem:[#allocation32_spill] sm:$0xff] %v8080_v0  ;;  %1860 = vrot.lane.b32.xlu0 %v8080_v0, %s7722_s24  ;;  %6517 = vmatprep.subr.msk.bf16.mxu1 %vm1029_vm0, %v8080_v0  ;;  %v1070_v2 = vsel %vm1029_vm0, %v8080_v0, 0  ;;  %11063 = vst [vmem:[#allocation40_spill] sm:$0xff] %v8112_v38  ;;  %v1020_v0 = vld [vmem:[#allocation8 + $0x38] sm:$0xff] }
 0x1ae   : > { %11056 = vst [vmem:[#allocation33_spill] sm:$0xff] %v8082_v1  ;;  %5947 = vmatpush3.bf16.xpose.msra.mxu1 %v1070_v2  ;;  %11064 = vst [vmem:[#allocation41_spill] sm:$0xff] %v8114_v44 }
 0x1af   : > { %v673_v3 = vpop.f32.mrb[24].mxu0 }
 0x1b0   : > { %v675_v4 = vpop.f32.mrb[25].mxu0  ;;  %v945_v10 = vmul.f32 0.17677669, %v673_v3  ;;  %v5914_v45 = vpop.f32.mrb[24].mxu1 }
 0x1b1   : > { %v677_v5 = vpop.f32.mrb[26].mxu0  ;;  %v838_v47 = vpop.f32.mrb[25].mxu1 }
 0x1b2   : > { %v946_v11 = vmul.f32 0.17677669, %v677_v5  ;;  %v679_v12 = vpop.f32.mrb[27].mxu0  ;;  %v5915_v50 = vpop.f32.mrb[26].mxu1 }
 0x1b3   : > { %v8090_v13 = vpack.c.bf16 %v679_v12, %v675_v4  ;;  %v8117_v58 = vpack.c.bf16 %v5915_v50, %v5914_v45  ;;  %v841_v59 = vpop.f32.mrb[27].mxu1 }
 0x1b4   : > { %v8092_v14 = vpack.c.bf16 %v946_v11, %v945_v10  ;;  %v8119_v62 = vpack.c.bf16 %v841_v59, %v838_v47 }
 0x1b5   : > { %11057 = vst [vmem:[#allocation34_spill] sm:$0xff] %v8090_v13  ;;  %1862 = vrot.lane.b32.xlu0 %v8090_v13, %s7722_s24  ;;  %6518 = vmatprep.subr.msk.bf16.mxu1 %vm1029_vm0, %v8090_v13  ;;  %v1073_v15 = vsel %vm1029_vm0, %v8090_v13, 0  ;;  %11065 = vst [vmem:[#allocation42_spill] sm:$0xff] %v8117_v58 }
 0x1b6   : > { %11058 = vst [vmem:[#allocation35_spill] sm:$0xff] %v8092_v14  ;;  %5949 = vmatpush3.bf16.xpose.msra.mxu1 %v1073_v15  ;;  %11066 = vst [vmem:[#allocation43_spill] sm:$0xff] %v8119_v62 }
 0x1b7   : > { %v683_v17 = vpop.f32.mrb[28].mxu0 }
 0x1b8   : > { %v685_v19 = vpop.f32.mrb[29].mxu0  ;;  %v947_v28 = vmul.f32 0.17677669, %v683_v17  ;;  %v5918_v63 = vpop.f32.mrb[28].mxu1 }
 0x1b9   : > { %v687_v21 = vpop.f32.mrb[30].mxu0  ;;  %v854_v3 = vpop.f32.mrb[29].mxu1 }
 0x1ba   : > { %v948_v29 = vmul.f32 0.17677669, %v687_v21  ;;  %v689_v30 = vpop.f32.mrb[31].mxu0  ;;  %v5919_v5 = vpop.f32.mrb[30].mxu1 }
 0x1bb   : > { %v8104_v33 = vpack.c.bf16 %v689_v30, %v685_v19  ;;  %v8131_v11 = vpack.c.bf16 %v5919_v5, %v5918_v63  ;;  %v857_v12 = vpop.f32.mrb[31].mxu1 }
 0x1bc   : > { %v8106_v35 = vpack.c.bf16 %v948_v29, %v947_v28  ;;  %v8135_v15 = vpack.c.bf16 %v857_v12, %v854_v3 }
 0x1bd   : > { %11061 = vst [vmem:[#allocation38_spill] sm:$0xff] %v8104_v33  ;;  %6519 = vmatprep.subr.msk.bf16.mxu1 %vm1029_vm0, %v8104_v33  ;;  %v1076_v37 = vsel %vm1029_vm0, %v8104_v33, 0  ;;  %11069 = vst [vmem:[#allocation46_spill] sm:$0xff] %v8131_v11 }
 0x1be   : > { %11062 = vst [vmem:[#allocation39_spill] sm:$0xff] %v8106_v35  ;;  %5951 = vmatpush3.bf16.xpose.msra.mxu1 %v1076_v37  ;;  %11070 = vst [vmem:[#allocation47_spill] sm:$0xff] %v8135_v15 }
 0x1bf   : > { %v693_v46 = vpop.f32.mrb[32].mxu0  ;;  %6000 = vmatprep.subr.bf16.mxu1 %v8102_v31 }
 0x1c0   : > { %v949_v48 = vmul.f32 0.17677669, %v693_v46  ;;  %v695_v49 = vpop.f32.mrb[33].mxu0  ;;  %v5922_v20 = vpop.f32.mrb[32].mxu1 }
 0x1c1   : > { %v697_v57 = vpop.f32.mrb[34].mxu0  ;;  %v870_v28 = vpop.f32.mrb[33].mxu1 }
 0x1c2   : > { %v950_v60 = vmul.f32 0.17677669, %v697_v57  ;;  %v699_v61 = vpop.f32.mrb[35].mxu0  ;;  %v5923_v30 = vpop.f32.mrb[34].mxu1 }
 0x1c3   : > { %v8121_v2 = vpack.c.bf16 %v699_v61, %v695_v49  ;;  %v8148_v34 = vpack.c.bf16 %v5923_v30, %v5922_v20  ;;  %v873_v36 = vpop.f32.mrb[35].mxu1 }
 0x1c4   : > { %v8123_v4 = vpack.c.bf16 %v950_v60, %v949_v48  ;;  %v8156_v39 = vpack.c.bf16 %v873_v36, %v870_v28 }
 0x1c5   : > { %11067 = vst [vmem:[#allocation44_spill] sm:$0xff] %v8121_v2  ;;  %5953 = vmatmul.mubr.msk.bf16.vlgmr.msra.gmra.mrb[48].mxu1 %vm1029_vm0, %v8032_v8  ;;  %6520 = vmatprep.subr.msk.bf16.mxu0 %vm1029_vm0, %v8121_v2  ;;  %v1200_v10 = vsel %vm1029_vm0, %v8121_v2, 0  ;;  %11073 = vst [vmem:[#allocation50_spill] sm:$0xff] %v8148_v34 }
 0x1c6   : > { %11068 = vst [vmem:[#allocation45_spill] sm:$0xff] %v8123_v4  ;;  %5956 = vmatprep.mubr.msk.bf16.mxu1 %vm1029_vm0, %v8046_v25  ;;  %5969 = vmatpush3.bf16.xpose.msra.mxu0 %v1200_v10  ;;  %11074 = vst [vmem:[#allocation51_spill] sm:$0xff] %v8156_v39 }
 0x1c7   : > { %v703_v16 = vpop.f32.mrb[36].mxu0  ;;  %2043 = vrot.lane.b32.xlu1 %v8121_v2, %s7722_s24  ;;  %5984 = vmatprep.mubr.msk.bf16.mxu0 %vm1029_vm0, %v8123_v4  ;;  %v1019_v2 = vld [vmem:[#allocation8 + $0x30] sm:$0xff] }
 0x1c8   : > { %v951_v17 = vmul.f32 0.17677669, %v703_v16  ;;  %v705_v18 = vpop.f32.mrb[37].mxu0  ;;  %6001 = vmatpush3.bf16.msra.mxu1 %v8102_v31  ;;  %v5926_v45 = vpop.f32.mrb[36].mxu1 }
 0x1c9   : > { %v707_v19 = vpop.f32.mrb[38].mxu0  ;;  %6002 = vmatprep.subr.bf16.mxu1 %v8100_v22  ;;  %v886_v46 = vpop.f32.mrb[37].mxu1 }
 0x1ca   : > { %v952_v21 = vmul.f32 0.17677669, %v707_v19  ;;  %v709_v27 = vpop.f32.mrb[39].mxu0  ;;  %v5927_v48 = vpop.f32.mrb[38].mxu1 }
 0x1cb   : > { %v8143_v29 = vpack.c.bf16 %v709_v27, %v705_v18  ;;  %v8164_v57 = vpack.c.bf16 %v5927_v48, %v5926_v45  ;;  %v889_v59 = vpop.f32.mrb[39].mxu1 }
 0x1cc   : > { %v8145_v32 = vpack.c.bf16 %v952_v21, %v951_v17  ;;  %6003 = vmatpush3.bf16.msra.mxu1 %v8100_v22  ;;  %v8167_v61 = vpack.c.bf16 %v889_v59, %v886_v46  ;;  %v1021_v22 = vld [vmem:[#allocation8 + $0x40] sm:$0xff] }
 0x1cd   : > { %11071 = vst [vmem:[#allocation48_spill] sm:$0xff] %v8143_v29  ;;  %5957 = vmatmul.mubr.msk.bf16.gmra.mrb[52].mxu1 %vm1029_vm0, %v8060_v42  ;;  %6521 = vmatprep.subr.msk.bf16.mxu0 %vm1029_vm0, %v8143_v29  ;;  %v1203_v37 = vsel %vm1029_vm0, %v8143_v29, 0  ;;  %11075 = vst [vmem:[#allocation52_spill] sm:$0xff] %v8164_v57  ;;  %v1026_v42 = vld [vmem:[#allocation8 + $0x68] sm:$0xff] }
 0x1ce   : > { %11072 = vst [vmem:[#allocation49_spill] sm:$0xff] %v8145_v32  ;;  %5960 = vmatprep.mubr.msk.bf16.mxu1 %vm1029_vm0, %v8072_v52  ;;  %5971 = vmatpush3.bf16.xpose.msra.mxu0 %v1203_v37  ;;  %11076 = vst [vmem:[#allocation53_spill] sm:$0xff] %v8167_v61 }
 0x1cf   : > { %v713_v47 = vpop.f32.mrb[40].mxu0  ;;  %2045 = vrot.lane.b32.xlu1 %v8143_v29, %s7722_s24  ;;  %6004 = vmatprep.subr.bf16.mxu1 %v8114_v44 }
 0x1d0   : > { %v953_v49 = vmul.f32 0.17677669, %v713_v47  ;;  %v715_v50 = vpop.f32.mrb[41].mxu0  ;;  %6005 = vmatpush3.bf16.msra.mxu1 %v8114_v44  ;;  %v5930_v63 = vpop.f32.mrb[40].mxu1 }
 0x1d1   : > { %v717_v60 = vpop.f32.mrb[42].mxu0  ;;  %6006 = vmatprep.subr.bf16.mxu1 %v8112_v38  ;;  %v902_v10 = vpop.f32.mrb[41].mxu1 }
 0x1d2   : > { %v954_v3 = vmul.f32 0.17677669, %v717_v60  ;;  %v719_v5 = vpop.f32.mrb[43].mxu0  ;;  %v5931_v16 = vpop.f32.mrb[42].mxu1 }
 0x1d3   : > { %v8169_v12 = vpack.c.bf16 %v719_v5, %v715_v50  ;;  %v8174_v18 = vpack.c.bf16 %v5931_v16, %v5930_v63  ;;  %v905_v19 = vpop.f32.mrb[43].mxu1  ;;  %v1212_v5 = vsel %vm1029_vm0, %v8014_v54, 0  ;;  %v1218_v16 = vsel %vm1029_vm0, %v8044_v24, 0 }
 0x1d4   : > { %v8171_v17 = vpack.c.bf16 %v954_v3, %v953_v49  ;;  %6007 = vmatpush3.bf16.msra.mxu1 %v8112_v38  ;;  %v8182_v21 = vpack.c.bf16 %v905_v19, %v902_v10  ;;  %v1215_v10 = vsel %vm1029_vm0, %v8030_v7, 0  ;;  %v1221_v19 = vsel %vm1029_vm0, %v8058_v41, 0  ;;  %v1022_v38 = vld [vmem:[#allocation8 + $0x48] sm:$0xff] }
 0x1d5   : > { %11077 = vst [vmem:[#allocation54_spill] sm:$0xff] %v8169_v12  ;;  %11079 = vst [vmem:[#allocation56_spill] sm:$0xff] %v8174_v18  ;;  %5961 = vmatmul.mubr.msk.bf16.gmra.mrb[56].mxu1 %vm1029_vm0, %v8082_v1  ;;  %6522 = vmatprep.subr.msk.bf16.mxu0 %vm1029_vm0, %v8169_v12  ;;  %v1206_v20 = vsel %vm1029_vm0, %v8169_v12, 0 }
 0x1d6   : > { %11078 = vst [vmem:[#allocation55_spill] sm:$0xff] %v8171_v17  ;;  %11080 = vst [vmem:[#allocation57_spill] sm:$0xff] %v8182_v21  ;;  %5964 = vmatprep.mubr.msk.bf16.mxu1 %vm1029_vm0, %v8092_v14  ;;  %5973 = vmatpush3.bf16.xpose.msra.mxu0 %v1206_v20 }
 0x1d7   : > { %v723_v27 = vpop.f32.mrb[44].mxu0  ;;  %2047 = vrot.lane.b32.xlu1 %v8169_v12, %s7722_s24  ;;  %6008 = vmatprep.subr.bf16.mxu1 %v8119_v62 }
 0x1d8   : > { %v955_v28 = vmul.f32 0.17677669, %v723_v27  ;;  %v725_v30 = vpop.f32.mrb[45].mxu0  ;;  %6009 = vmatpush3.bf16.msra.mxu1 %v8119_v62  ;;  %v5934_v36 = vpop.f32.mrb[44].mxu1  ;;  %v1023_v62 = vld [vmem:[#allocation8 + $0x50] sm:$0xff] }
 0x1d9   : > { %v727_v37 = vpop.f32.mrb[46].mxu0  ;;  %6010 = vmatprep.subr.bf16.mxu1 %v8117_v58  ;;  %v918_v45 = vpop.f32.mrb[45].mxu1 }
 0x1da   : > { %v956_v46 = vmul.f32 0.17677669, %v727_v37  ;;  %v729_v47 = vpop.f32.mrb[47].mxu0  ;;  %v5935_v48 = vpop.f32.mrb[46].mxu1 }
 0x1db   : > { %v8191_v49 = vpack.c.bf16 %v729_v47, %v725_v30  ;;  %v8193_v50 = vpack.c.bf16 %v5935_v48, %v5934_v36  ;;  %v921_v59 = vpop.f32.mrb[47].mxu1 }
 0x1dc   : > { %v8195_v60 = vpack.c.bf16 %v956_v46, %v955_v28  ;;  %6011 = vmatpush3.bf16.msra.mxu1 %v8117_v58  ;;  %v8198_v63 = vpack.c.bf16 %v921_v59, %v918_v45  ;;  %v1024_v58 = vld [vmem:[#allocation8 + $0x58] sm:$0xff] }
 0x1dd   : > { %11081 = vst [vmem:[#allocation58_spill] sm:$0xff] %v8191_v49  ;;  %11082 = vst [vmem:[#allocation59_spill] sm:$0xff] %v8193_v50  ;;  %5965 = vmatmul.mubr.msk.bf16.gmra.mrb[60].mxu1 %vm1029_vm0, %v8106_v35  ;;  %6523 = vmatprep.subr.msk.bf16.mxu0 %vm1029_vm0, %v8191_v49  ;;  %v1209_v3 = vsel %vm1029_vm0, %v8191_v49, 0 }
 0x1de   : > { %11083 = vst [vmem:[#allocation60_spill] sm:$0xff] %v8195_v60  ;;  %11084 = vst [vmem:[#allocation61_spill] sm:$0xff] %v8198_v63  ;;  %5975 = vmatpush3.bf16.xpose.msra.mxu0 %v1209_v3  ;;  %6012 = vmatprep.subr.bf16.mxu1 %v8135_v15 }
 0x1df   : > { %6524 = vmatprep.subr.msk.bf16.mxu0 %vm1029_vm0, %v8014_v54 }
 0x1e0   : > { %6013 = vmatpush3.bf16.msra.mxu1 %v8135_v15 }
 0x1e1   : > { %6014 = vmatprep.subr.bf16.mxu1 %v8131_v11 }
 0x1e4   : > { %6015 = vmatpush3.bf16.msra.mxu1 %v8131_v11 }
 0x1e5   : > { %6032 = vmatprep.subr.bf16.mxu1 %v8156_v39 }
 0x1e6   : > { %5977 = vmatpush3.bf16.xpose.msra.mxu0 %v1212_v5 }
 0x1e7   : > { %6525 = vmatprep.subr.msk.bf16.mxu0 %vm1029_vm0, %v8030_v7 }
 0x1ee   : > { %5979 = vmatpush3.bf16.xpose.msra.mxu0 %v1215_v10 }
 0x1ef   : > { %6526 = vmatprep.subr.msk.bf16.mxu0 %vm1029_vm0, %v8044_v24 }
 0x1f6   : > { %5981 = vmatpush3.bf16.xpose.msra.mxu0 %v1218_v16  ;;  %v8255_v16 = vld [vmem:[#allocation8 + $0x10] sm:$0xff] }
 0x1f7   : > { %6527 = vmatprep.subr.msk.bf16.mxu0 %vm1029_vm0, %v8058_v41  ;;  %v1851_v20 = vpop.permute.xlu0 %1850  ;;  %v1025_v41 = vld [vmem:[#allocation8 + $0x60] sm:$0xff] }
 0x1f8   : > { %v1891_v27 = vsel %vm1029_vm0, %v1851_v20, 0 }
 0x1fe   : > { %5983 = vmatpush3.bf16.xpose.msra.mxu0 %v1221_v19  ;;  %v8257_v19 = vld [vmem:[#allocation8] sm:$0xff] }
 0x1ff   : > { %6528 = vmatprep.subr.msk.bf16.mxu0 %vm1029_vm0, %v1851_v20  ;;  %v1853_v28 = vpop.permute.xlu1 %1852 }
 0x200   : > { %v1894_v30 = vsel %vm1029_vm0, %v1853_v28, 0 }
 0x205   : > { %5985 = vmatmul.mubr.msk.bf16.vlgmr.msra.gmra.mrb[48].mxu0 %vm1029_vm0, %v8145_v32 }
 0x206   : > { %5988 = vmatprep.mubr.msk.bf16.mxu0 %vm1029_vm0, %v8171_v17  ;;  %6065 = vmatpush3.bf16.xpose.msra.mxu0 %v1891_v27 }
 0x207   : > { %6529 = vmatprep.subr.msk.bf16.mxu0 %vm1029_vm0, %v1853_v28  ;;  %v1855_v36 = vpop.permute.xlu0 %1854 }
 0x208   : > { %v1897_v37 = vsel %vm1029_vm0, %v1855_v36, 0 }
 0x20d   : > { %5989 = vmatmul.mubr.msk.bf16.gmra.mrb[52].mxu0 %vm1029_vm0, %v8195_v60 }
 0x20e   : > { %6067 = vmatpush3.bf16.xpose.msra.mxu0 %v1894_v30  ;;  %5992 = vmatprep.mubr.msk.bf16.mxu0 %vm1029_vm0, %v8018_v56 }
 0x20f   : > { %6530 = vmatprep.subr.msk.bf16.mxu0 %vm1029_vm0, %v1855_v36  ;;  %v1857_v45 = vpop.permute.xlu0 %1856  ;;  %v8265_v36 = vld [vmem:[#allocation8 + $0x18] sm:$0xff] }
 0x210   : > { %v1900_v46 = vsel %vm1029_vm0, %v1857_v45, 0 }
 0x215   : > { %5993 = vmatmul.mubr.msk.bf16.gmra.mrb[56].mxu0 %vm1029_vm0, %v8034_v9  ;;  %v1027_v9 = vld [vmem:[#allocation8 + $0x70] sm:$0xff] }
 0x216   : > { %6069 = vmatpush3.bf16.xpose.msra.mxu0 %v1897_v37  ;;  %5996 = vmatprep.mubr.msk.bf16.mxu0 %vm1029_vm0, %v8048_v26 }
 0x217   : > { %6531 = vmatprep.subr.msk.bf16.mxu0 %vm1029_vm0, %v1857_v45  ;;  %v1859_v47 = vpop.permute.xlu0 %1858 }
 0x218   : > { %v1903_v48 = vsel %vm1029_vm0, %v1859_v47, 0 }
 0x21d   : > { %5997 = vmatmul.mubr.msk.bf16.gmra.mrb[60].mxu0 %vm1029_vm0, %v8062_v43  ;;  %v1028_v43 = vld [vmem:[#allocation8 + $0x78] sm:$0xff] }
 0x21e   : > { %6071 = vmatpush3.bf16.xpose.msra.mxu0 %v1900_v46  ;;  %v8267_v46 = vld [vmem:[#allocation8 + $0x8] sm:$0xff] }
 0x21f   : > { %6532 = vmatprep.subr.msk.bf16.mxu0 %vm1029_vm0, %v1859_v47  ;;  %v1861_v59 = vpop.permute.xlu0 %1860 }
 0x220   : > { %v1906_v3 = vsel %vm1029_vm0, %v1861_v59, 0 }
 0x226   : > { %6073 = vmatpush3.bf16.xpose.msra.mxu0 %v1903_v48 }
 0x227   : > { %6533 = vmatprep.subr.msk.bf16.mxu0 %vm1029_vm0, %v1861_v59  ;;  %v1863_v5 = vpop.permute.xlu0 %1862 }
 0x228   : > { %v1909_v10 = vsel %vm1029_vm0, %v1863_v5, 0 }
 0x22e   : > { %6075 = vmatpush3.bf16.xpose.msra.mxu0 %v1906_v3 }
 0x22f   : > { %6534 = vmatprep.subr.msk.bf16.mxu0 %vm1029_vm0, %v1863_v5 }
 0x236   : > { %6077 = vmatpush3.bf16.xpose.msra.mxu0 %v1909_v10 }
 0x298   : > { %v5954_v20 = vpop.f32.mrb[48].mxu1 }
 0x299   : > { %v8260_v27 = vadd.f32 %v5954_v20, %v8255_v16  ;;  %v1112_v28 = vpop.f32.mrb[49].mxu1 }
 0x29a   : > { %v8263_v30 = vadd.f32 %v1112_v28, %v8257_v19  ;;  %v5955_v37 = vpop.f32.mrb[50].mxu1 }
 0x29b   : > { %v1115_v45 = vpop.f32.mrb[51].mxu1  ;;  %1324 = vmax.xlane.f32.xlu1 %v8260_v27  ;;  %v8272_v47 = vadd.f32 %v5955_v37, %v8265_v36 }
 0x29c   : > { %1320 = vmax.xlane.f32.xlu0 %v8263_v30  ;;  %v8275_v48 = vadd.f32 %v1115_v45, %v8267_v46 }
 0x29f   : > { %1326 = vmax.xlane.f32.xlu1 %v8272_v47 }
 0x2a0   : > { %v5958_v59 = vpop.f32.mrb[52].mxu1  ;;  %1322 = vmax.xlane.f32.xlu0 %v8275_v48 }
 0x2a1   : > { %v1128_v3 = vpop.f32.mrb[53].mxu1  ;;  %v8285_v40 = vadd.f32 %v5958_v59, %v1019_v2 }
 0x2a2   : > { %v5959_v5 = vpop.f32.mrb[54].mxu1 }
 0x2a3   : > { %v1131_v10 = vpop.f32.mrb[55].mxu1  ;;  %v8283_v6 = vadd.f32 %v5959_v5, %v1020_v0 }
 0x2a4   : > { %v8289_v15 = vadd.f32 %v1131_v10, %v1018_v53 }
 0x2a8   : > { %v5962_v20 = vpop.f32.mrb[56].mxu1 }
 0x2a9   : > { %v1144_v28 = vpop.f32.mrb[57].mxu1  ;;  %v8297_v44 = vadd.f32 %v5962_v20, %v1023_v62 }
 0x2aa   : > { %v5963_v13 = vpop.f32.mrb[58].mxu1  ;;  %v8303_v10 = vadd.f32 %v1144_v28, %v1021_v22 }
 0x2ab   : > { %v1147_v12 = vpop.f32.mrb[59].mxu1  ;;  %v8295_v59 = vadd.f32 %v5963_v13, %v1024_v58 }
 0x2b0   : > { %v5966_v51 = vpop.f32.mrb[60].mxu1  ;;  %2049 = vrot.lane.b32.xlu1 %v8191_v49, %s7722_s24  ;;  %v8291_v49 = vadd.f32 %v1128_v3, %v1017_v23  ;;  %v8301_v3 = vadd.f32 %v1147_v12, %v1022_v38 }
 0x2b1   : > { %v1160_v37 = vpop.f32.mrb[61].mxu1  ;;  %v8309_v1 = vadd.f32 %v5966_v51, %v1027_v9 }
 0x2b2   : > { %v5967_v29 = vpop.f32.mrb[62].mxu1  ;;  %v8315_v28 = vadd.f32 %v1160_v37, %v1025_v41 }
 0x2b3   : > { %v1163_v45 = vpop.f32.mrb[63].mxu1  ;;  %v8307_v60 = vadd.f32 %v5967_v29, %v1028_v43 }
 0x2b4   : > { %v8313_v12 = vadd.f32 %v1163_v45, %v1026_v42 }
 0x2b6   : > { %1864 = vrot.lane.b32.xlu0 %v8104_v33, %s7722_s24 }
 0x2d4   : > { %1334 = vmax.xlane.f32.xlu1 %v8283_v6 }
 0x2d5   : > { %1332 = vmax.xlane.f32.xlu0 %v8285_v40 }
 0x2d8   : > { %1330 = vmax.xlane.f32.xlu1 %v8289_v15  ;;  %v5986_v33 = vpop.f32.mrb[48].mxu0 }
 0x2d9   : > { %1328 = vmax.xlane.f32.xlu0 %v8291_v49  ;;  %v1257_v5 = vpop.f32.mrb[49].mxu0  ;;  %v8323_v17 = vadd.f32 %v5986_v33, %v8255_v16 }
 0x2da   : > { %v5987_v11 = vpop.f32.mrb[50].mxu0  ;;  %v8331_v45 = vadd.f32 %v1257_v5, %v8257_v19 }
 0x2db   : > { %v1260_v31 = vpop.f32.mrb[51].mxu0  ;;  %v8320_v51 = vadd.f32 %v5987_v11, %v8265_v36 }
 0x2dc   : > { %1342 = vmax.xlane.f32.xlu1 %v8295_v59  ;;  %v8328_v37 = vadd.f32 %v1260_v31, %v8267_v46 }
 0x2dd   : > { %1340 = vmax.xlane.f32.xlu0 %v8297_v44 }
 0x2e0   : > { %1338 = vmax.xlane.f32.xlu1 %v8301_v3  ;;  %v5990_v13 = vpop.f32.mrb[52].mxu0 }
 0x2e1   : > { %1336 = vmax.xlane.f32.xlu0 %v8303_v10  ;;  %v1273_v20 = vpop.f32.mrb[53].mxu0  ;;  %v8336_v36 = vadd.f32 %v5990_v13, %v1019_v2 }
 0x2e2   : > { %v5991_v35 = vpop.f32.mrb[54].mxu0  ;;  %v8342_v31 = vadd.f32 %v1273_v20, %v1017_v23 }
 0x2e3   : > { %v1276_v32 = vpop.f32.mrb[55].mxu0  ;;  %v8333_v50 = vadd.f32 %v5991_v35, %v1020_v0 }
 0x2e4   : > { %1350 = vmax.xlane.f32.xlu1 %v8307_v60  ;;  %v8339_v63 = vadd.f32 %v1276_v32, %v1018_v53 }
 0x2e5   : > { %1348 = vmax.xlane.f32.xlu0 %v8309_v1 }
 0x2e8   : > { %1346 = vmax.xlane.f32.xlu1 %v8313_v12  ;;  %v5994_v26 = vpop.f32.mrb[56].mxu0 }
 0x2e9   : > { %1344 = vmax.xlane.f32.xlu0 %v8315_v28  ;;  %v1289_v29 = vpop.f32.mrb[57].mxu0  ;;  %v8348_v35 = vadd.f32 %v5994_v26, %v1023_v62 }
 0x2ea   : > { %v5995_v56 = vpop.f32.mrb[58].mxu0  ;;  %v8354_v53 = vadd.f32 %v1289_v29, %v1021_v22  ;;  %v8371_v22 = vpop.permute.xlu1 %2043 }
 0x2eb   : > { %v1292_v14 = vpop.f32.mrb[59].mxu0  ;;  %v8345_v0 = vadd.f32 %v5995_v56, %v1024_v58 }
 0x2ec   : > { %1358 = vmax.xlane.f32.xlu1 %v8320_v51  ;;  %v8351_v2 = vadd.f32 %v1292_v14, %v1022_v38 }
 0x2ed   : > { %1356 = vmax.xlane.f32.xlu0 %v8323_v17 }
 0x2f0   : > { %1354 = vmax.xlane.f32.xlu1 %v8328_v37  ;;  %v5998_v11 = vpop.f32.mrb[60].mxu0 }
 0x2f1   : > { %1352 = vmax.xlane.f32.xlu0 %v8331_v45  ;;  %v1305_v33 = vpop.f32.mrb[61].mxu0  ;;  %v8360_v56 = vadd.f32 %v5998_v11, %v1027_v9 }
 0x2f2   : > { %v5999_v16 = vpop.f32.mrb[62].mxu0  ;;  %v8366_v14 = vadd.f32 %v1305_v33, %v1025_v41 }
 0x2f3   : > { %v1308_v52 = vpop.f32.mrb[63].mxu0  ;;  %v8358_v23 = vadd.f32 %v5999_v16, %v1028_v43  ;;  %v8373_v43 = vpop.permute.xlu1 %2045 }
 0x2f4   : > { %1366 = vmax.xlane.f32.xlu1 %v8333_v50  ;;  %v8364_v26 = vadd.f32 %v1308_v52, %v1026_v42 }
 0x2f5   : > { %1364 = vmax.xlane.f32.xlu0 %v8336_v36 }
 0x2f7   : > { %v8375_v9 = vpop.permute.xlu1 %2047 }
 0x2f8   : > { %1362 = vmax.xlane.f32.xlu1 %v8339_v63  ;;  %11085 = vst [vmem:[#allocation62_spill] sm:$0xff] %v8375_v9 }
 0x2f9   : > { %1360 = vmax.xlane.f32.xlu0 %v8342_v31 }
 0x2fc   : > { %1374 = vmax.xlane.f32.xlu1 %v8345_v0 }
 0x2fd   : > { %1372 = vmax.xlane.f32.xlu0 %v8348_v35 }
 0x300   : > { %1370 = vmax.xlane.f32.xlu1 %v8351_v2 }
 0x301   : > { %1368 = vmax.xlane.f32.xlu0 %v8354_v53 }
 0x304   : > { %1382 = vmax.xlane.f32.xlu1 %v8358_v23 }
 0x305   : > { %1380 = vmax.xlane.f32.xlu0 %v8360_v56 }
 0x308   : > { %1378 = vmax.xlane.f32.xlu1 %v8364_v26 }
 0x309   : > { %1376 = vmax.xlane.f32.xlu0 %v8366_v14 }
 0x328   : > { %v1325_v38 = vpop.xlane.xlu1 %1324 }
 0x329   : > { %v1386_v58 = vsub.f32 %v8260_v27, %v1325_v38  ;;  %v1321_v62 = vpop.xlane.xlu0 %1320 }
 0x32a   : > { %v1384_v42 = vsub.f32 %v8263_v30, %v1321_v62 }
 0x32b   : > { %v1420_v41 = vmul.f32 1.442695, %v1386_v58 }
 0x32c   : > { %v1416_v52 = vmul.f32 1.442695, %v1384_v42  ;;  %v1327_v32 = vpop.xlane.xlu1 %1326 }
 0x32d   : > { %6961 = vpow2.f32 %v1420_v41  ;;  %v1387_v19 = vsub.f32 %v8272_v47, %v1327_v32  ;;  %v1323_v46 = vpop.xlane.xlu0 %1322 }
 0x32e   : > { %v1385_v5 = vsub.f32 %v8275_v48, %v1323_v46  ;;  %6963 = vpow2.f32 %v1416_v52 }
 0x32f   : > { %v1422_v13 = vmul.f32 1.442695, %v1387_v19 }
 0x330   : > { %v1418_v20 = vmul.f32 1.442695, %v1385_v5  ;;  %v8395_v33 = vpop.permute.xlu1 %2049 }
 0x331   : > { %6965 = vpow2.f32 %v1422_v13  ;;  %v1865_v29 = vpop.permute.xlu0 %1864  ;;  %11086 = vst [vmem:[#allocation63_spill] sm:$0xff] %v8395_v33 }
 0x332   : > { %6535 = vmatprep.subr.msk.bf16.mxu0 %vm1029_vm0, %v1865_v29  ;;  %v1912_v27 = vsel %vm1029_vm0, %v1865_v29, 0  ;;  %6967 = vpow2.f32 %v1418_v20 }
 0x333   : > { %6079 = vmatpush3.bf16.xpose.msra.mxu0 %v1912_v27 }
 0x337   : > { %v8383_v30 = vpop.eup %6961 }
 0x338   : > { %1484 = vadd.xlane.f32.xlu0 %v8383_v30  ;;  %v8386_v11 = vpop.eup %6963 }
 0x33b   : > { %v8388_v47 = vpop.eup %6965 }
 0x33c   : > { %1486 = vadd.xlane.f32.xlu1 %v8388_v47  ;;  %1480 = vadd.xlane.f32.xlu0 %v8386_v11  ;;  %v8392_v48 = vpop.eup %6967 }
 0x340   : > { %1482 = vadd.xlane.f32.xlu1 %v8392_v48 }
 0x361   : > { %v1335_v16 = vpop.xlane.xlu1 %1334 }
 0x362   : > { %v1391_v38 = vsub.f32 %v8283_v6, %v1335_v16  ;;  %v1333_v58 = vpop.xlane.xlu0 %1332 }
 0x363   : > { %v1390_v62 = vsub.f32 %v8285_v40, %v1333_v58 }
 0x364   : > { %v1430_v42 = vmul.f32 1.442695, %v1391_v38 }
 0x365   : > { %v1428_v41 = vmul.f32 1.442695, %v1390_v62  ;;  %v1331_v52 = vpop.xlane.xlu1 %1330 }
 0x366   : > { %6969 = vpow2.f32 %v1430_v42  ;;  %v1389_v32 = vsub.f32 %v8289_v15, %v1331_v52  ;;  %v1329_v19 = vpop.xlane.xlu0 %1328 }
 0x367   : > { %6971 = vpow2.f32 %v1428_v41  ;;  %v1388_v46 = vsub.f32 %v8291_v49, %v1329_v19 }
 0x368   : > { %v1426_v5 = vmul.f32 1.442695, %v1389_v32 }
 0x369   : > { %v1424_v13 = vmul.f32 1.442695, %v1388_v46  ;;  %v1343_v20 = vpop.xlane.xlu1 %1342 }
 0x36a   : > { %6973 = vpow2.f32 %v1426_v5  ;;  %v1395_v29 = vsub.f32 %v8295_v59, %v1343_v20  ;;  %v1341_v6 = vpop.xlane.xlu0 %1340 }
 0x36b   : > { %6975 = vpow2.f32 %v1424_v13  ;;  %v1394_v40 = vsub.f32 %v8297_v44, %v1341_v6 }
 0x36c   : > { %v1438_v27 = vmul.f32 1.442695, %v1395_v29 }
 0x36d   : > { %v1436_v16 = vmul.f32 1.442695, %v1394_v40  ;;  %v1339_v38 = vpop.xlane.xlu1 %1338 }
 0x36e   : > { %6977 = vpow2.f32 %v1438_v27  ;;  %v1393_v15 = vsub.f32 %v8301_v3, %v1339_v38  ;;  %v1337_v58 = vpop.xlane.xlu0 %1336 }
 0x36f   : > { %6979 = vpow2.f32 %v1436_v16  ;;  %v1392_v49 = vsub.f32 %v8303_v10, %v1337_v58 }
 0x370   : > { %v8405_v62 = vpop.eup %6969  ;;  %v1434_v42 = vmul.f32 1.442695, %v1393_v15 }
 0x371   : > { %v8407_v41 = vpop.eup %6971  ;;  %v1432_v59 = vmul.f32 1.442695, %v1392_v49  ;;  %1494 = vadd.xlane.f32.xlu1 %v8405_v62  ;;  %v1351_v40 = vpop.xlane.xlu1 %1350 }
 0x372   : > { %6981 = vpow2.f32 %v1434_v42  ;;  %v1349_v44 = vpop.xlane.xlu0 %1348  ;;  %1492 = vadd.xlane.f32.xlu0 %v8407_v41 }
 0x373   : > { %6983 = vpow2.f32 %v1432_v59  ;;  %v1398_v52 = vsub.f32 %v8309_v1, %v1349_v44  ;;  %v1399_v59 = vsub.f32 %v8307_v60, %v1351_v40 }
 0x374   : > { %v8412_v3 = vpop.eup %6973 }
 0x375   : > { %v8414_v32 = vpop.eup %6975  ;;  %v1444_v10 = vmul.f32 1.442695, %v1398_v52  ;;  %1490 = vadd.xlane.f32.xlu1 %v8412_v3  ;;  %v1347_v27 = vpop.xlane.xlu1 %1346  ;;  %v1446_v52 = vmul.f32 1.442695, %v1399_v59 }
 0x376   : > { %v1345_v19 = vpop.xlane.xlu0 %1344  ;;  %1488 = vadd.xlane.f32.xlu0 %v8414_v32 }
 0x377   : > { %6985 = vpow2.f32 %v1444_v10  ;;  %v1396_v46 = vsub.f32 %v8315_v28, %v1345_v19  ;;  %v1397_v10 = vsub.f32 %v8313_v12, %v1347_v27 }
 0x378   : > { %v8419_v5 = vpop.eup %6977 }
 0x379   : > { %v8421_v13 = vpop.eup %6979  ;;  %v1440_v20 = vmul.f32 1.442695, %v1396_v46  ;;  %1502 = vadd.xlane.f32.xlu1 %v8419_v5  ;;  %v1359_v16 = vpop.xlane.xlu1 %1358 }
 0x37a   : > { %1500 = vadd.xlane.f32.xlu0 %v8421_v13  ;;  %v1357_v38 = vpop.xlane.xlu0 %1356 }
 0x37b   : > { %6987 = vpow2.f32 %v1440_v20  ;;  %v1442_v20 = vmul.f32 1.442695, %v1397_v10 }
 0x37c   : > { %v8425_v1 = vpop.eup %6981  ;;  %6989 = vpow2.f32 %v1446_v52 }
 0x37d   : > { %v8427_v29 = vpop.eup %6983  ;;  %1498 = vadd.xlane.f32.xlu1 %v8425_v1  ;;  %v1355_v15 = vpop.xlane.xlu1 %1354  ;;  %6991 = vpow2.f32 %v1442_v20 }
 0x37e   : > { %1496 = vadd.xlane.f32.xlu0 %v8427_v29  ;;  %v1353_v58 = vpop.xlane.xlu0 %1352 }
 0x37f   : > { %v1400_v40 = vsub.f32 %v8331_v45, %v1353_v58 }
 0x381   : > { %v8431_v6 = vpop.eup %6985  ;;  %v1367_v49 = vpop.xlane.xlu1 %1366 }
 0x382   : > { %1508 = vadd.xlane.f32.xlu0 %v8431_v6  ;;  %v1365_v42 = vpop.xlane.xlu0 %1364  ;;  %v1407_v59 = vsub.f32 %v8333_v50, %v1367_v49  ;;  %v1401_v50 = vsub.f32 %v8328_v37, %v1355_v15 }
 0x383   : > { %v1406_v46 = vsub.f32 %v8336_v36, %v1365_v42  ;;  %v1403_v36 = vsub.f32 %v8320_v51, %v1359_v16  ;;  %v1448_v42 = vmul.f32 1.442695, %v1400_v40 }
 0x385   : > { %v8434_v28 = vpop.eup %6987  ;;  %v8444_v44 = vpop.xlane.xlu1 %1362  ;;  %v1460_v33 = vmul.f32 1.442695, %v1406_v46 }
 0x386   : > { %1504 = vadd.xlane.f32.xlu0 %v8434_v28  ;;  %v1361_v19 = vpop.xlane.xlu0 %1360  ;;  %v8458_v52 = vpop.eup %6989 }
 0x387   : > { %6993 = vpow2.f32 %v1460_v33  ;;  %v8465_v33 = vpop.eup %6991 }
 0x38a   : > { %v1373_v9 = vpop.xlane.xlu0 %1372 }
 0x38e   : > { %1828 = vrot.lane.b32.xlu1 %v8032_v8, %s7722_s24  ;;  %v8449_v8 = vpop.xlane.xlu1 %1374 }
 0x391   : > { %v8467_v58 = vpop.eup %6993 }
 0x392   : > { %2051 = vrot.lane.b32.xlu1 %v8014_v54, %s7722_s24  ;;  %v1402_v54 = vsub.f32 %v8323_v17, %v1357_v38  ;;  %v1371_v27 = vpop.xlane.xlu1 %1370  ;;  %v8455_v17 = vpop.xlane.xlu0 %1368  ;;  %v1462_v38 = vmul.f32 1.442695, %v1407_v59 }
 0x393   : > { %v1409_v45 = vsub.f32 %v8351_v2, %v1371_v27 }
 0x394   : > { %v1452_v60 = vmul.f32 1.442695, %v1402_v54  ;;  %v1454_v54 = vmul.f32 1.442695, %v1403_v36 }
 0x395   : > { %v1466_v37 = vmul.f32 1.442695, %v1409_v45 }
 0x396   : > { %6995 = vpow2.f32 %v1452_v60  ;;  %v1381_v16 = vpop.xlane.xlu0 %1380 }
 0x39a   : > { %v8481_v20 = vpop.xlane.xlu0 %1376 }
 0x39c   : > { %1826 = vrot.lane.b32.xlu0 %v8016_v55, %s7722_s24  ;;  %v1404_v55 = vsub.f32 %v8342_v31, %v1361_v19  ;;  %v1410_v31 = vsub.f32 %v8348_v35, %v1373_v9  ;;  %v1450_v35 = vmul.f32 1.442695, %v1401_v50  ;;  %v1414_v9 = vsub.f32 %v8360_v56, %v1381_v16 }
 0x39e   : > { %v1456_v12 = vmul.f32 1.442695, %v1404_v55  ;;  %v8462_v55 = vpop.xlane.xlu1 %1382  ;;  %v1468_v51 = vmul.f32 1.442695, %v1410_v31  ;;  %v1476_v2 = vmul.f32 1.442695, %v1414_v9 }
 0x3a0   : > { %6997 = vpow2.f32 %v1456_v12  ;;  %v8472_v15 = vpop.eup %6995 }
 0x3a1   : > { %6999 = vpow2.f32 %v1448_v42 }
 0x3a2   : > { %7001 = vpow2.f32 %v1462_v38  ;;  %v1379_v49 = vpop.xlane.xlu1 %1378 }
 0x3a3   : > { %7003 = vpow2.f32 %v1454_v54  ;;  %v1413_v19 = vsub.f32 %v8364_v26, %v1379_v49 }
 0x3a4   : > { %7005 = vpow2.f32 %v1468_v51 }
 0x3a5   : > { %7007 = vpow2.f32 %v1450_v35  ;;  %v1474_v56 = vmul.f32 1.442695, %v1413_v19 }
 0x3a6   : > { %7009 = vpow2.f32 %v1466_v37 }
 0x3a7   : > { %7011 = vpow2.f32 %v1476_v2 }
 0x3a8   : > { %7013 = vpow2.f32 %v1474_v56  ;;  %v11088_v56 = vld [vmem:[#allocation31_spill] sm:$0xff] }
 0x3aa   : > { %v8474_v10 = vpop.eup %6997 }
 0x3ab   : > { %v8479_v46 = vpop.eup %6999 }
 0x3ac   : > { %v8483_v60 = vpop.eup %7001 }
 0x3ad   : > { %v8487_v40 = vpop.eup %7003 }
 0x3ae   : > { %v8489_v12 = vpop.eup %7005 }
 0x3af   : > { %v8493_v26 = vpop.eup %7007 }
 0x3b0   : > { %v8495_v42 = vpop.eup %7009 }
 0x3b1   : > { %v8499_v31 = vpop.eup %7011 }
 0x3b2   : > { %v8502_v54 = vpop.eup %7013 }
 0x3b6   : > { %1510 = vadd.xlane.f32.xlu1 %v8458_v52 }
 0x3ba   : > { %1506 = vadd.xlane.f32.xlu1 %v8465_v33 }
 0x3bb   : > { %1524 = vadd.xlane.f32.xlu0 %v8467_v58 }
 0x3be   : > { %1516 = vadd.xlane.f32.xlu1 %v8472_v15 }
 0x3bf   : > { %1520 = vadd.xlane.f32.xlu0 %v8474_v10 }
 0x3c2   : > { %1512 = vadd.xlane.f32.xlu1 %v8479_v46 }
 0x3c3   : > { %1526 = vadd.xlane.f32.xlu0 %v8483_v60 }
 0x3c5   : > { %v1485_v59 = vpop.xlane.xlu0 %1484 }
 0x3c6   : > { %1518 = vadd.xlane.f32.xlu1 %v8487_v40 }
 0x3c7   : > { %1532 = vadd.xlane.f32.xlu0 %v8489_v12 }
 0x3c9   : > { %v1487_v27 = vpop.xlane.xlu1 %1486  ;;  %v1481_v36 = vpop.xlane.xlu0 %1480 }
 0x3ca   : > { %1514 = vadd.xlane.f32.xlu1 %v8493_v26  ;;  %7015 = vrcp.f32 %v1487_v27  ;;  %v11090_v27 = vld [vmem:[#allocation35_spill] sm:$0xff] }
 0x3cb   : > { %1530 = vadd.xlane.f32.xlu0 %v8495_v42  ;;  %7017 = vrcp.f32 %v1481_v36 }
 0x3cc   : > { %7019 = vrcp.f32 %v1485_v59  ;;  %v11089_v59 = vld [vmem:[#allocation59_spill] sm:$0xff] }
 0x3cd   : > { %v1483_v38 = vpop.xlane.xlu1 %1482 }
 0x3ce   : > { %7021 = vrcp.f32 %v1483_v38 }
 0x3cf   : > { %1540 = vadd.xlane.f32.xlu0 %v8499_v31 }
 0x3d3   : > { %1538 = vadd.xlane.f32.xlu0 %v8502_v54 }
 0x3d4   : > { %v7016_v50 = vpop.eup %7015 }
 0x3d5   : > { %v7018_v51 = vpop.eup %7017  ;;  %v1579_v35 = vmul.f32 %v7016_v50, %v8388_v47  ;;  %v1408_v47 = vsub.f32 %v8354_v53, %v8455_v17  ;;  %v1412_v53 = vsub.f32 %v8366_v14, %v8481_v20  ;;  %v11091_v14 = vld [vmem:[#allocation55_spill] sm:$0xff] }
 0x3d6   : > { %v7020_v45 = vpop.eup %7019  ;;  %v1576_v37 = vmul.f32 %v7018_v51, %v8386_v11 }
 0x3d7   : > { %v1578_v49 = vmul.f32 %v7020_v45, %v8383_v30  ;;  %v1405_v30 = vsub.f32 %v8339_v63, %v8444_v44  ;;  %v1411_v63 = vsub.f32 %v8345_v0, %v8449_v8  ;;  %v11087_v44 = vld [vmem:[#allocation61_spill] sm:$0xff]  ;;  %v1415_v8 = vsub.f32 %v8358_v23, %v8462_v55  ;;  %v11092_v23 = vld [vmem:[#allocation18_spill] sm:$0xff] }
 0x3d8   : > { %v7022_v16 = vpop.eup %7021  ;;  %v1472_v0 = vmul.f32 1.442695, %v1412_v53 }
 0x3d9   : > { %v1577_v9 = vmul.f32 %v7022_v16, %v8392_v48  ;;  %v1609_v19 = vpack.c.bf16 %v1579_v35, %v1578_v49  ;;  %v1458_v11 = vmul.f32 1.442695, %v1405_v30  ;;  %v1464_v48 = vmul.f32 1.442695, %v1408_v47  ;;  %v11093_v16 = vld [vmem:[#allocation25_spill] sm:$0xff] }
 0x3da   : > { %v1470_v17 = vmul.f32 1.442695, %v1411_v63  ;;  %v1478_v36 = vmul.f32 1.442695, %v1415_v8 }
 0x3db   : > { %2053 = vrot.lane.b32.xlu1 %v8030_v7, %s7722_s24  ;;  %v1608_v2 = vpack.c.bf16 %v1577_v9, %v1576_v37  ;;  %7023 = vpow2.f32 %v1458_v11 }
 0x3dc   : > { %7025 = vpow2.f32 %v1464_v48 }
 0x3dd   : > { %6016 = vmatprep.mubr.bf16.mxu1 %v1608_v2  ;;  %7027 = vpow2.f32 %v1470_v17 }
 0x3de   : > { %6017 = vmatmul.mubr.bf16.vlgmr.msra.gmra.mrb[64].mxu1 %v1609_v19  ;;  %7029 = vpow2.f32 %v1472_v0 }
 0x3df   : > { %6033 = vmatpush3.bf16.msra.mxu1 %v8156_v39 }
 0x3e0   : > { %6034 = vmatprep.subr.bf16.mxu1 %v8148_v34 }
 0x3e3   : > { %6035 = vmatpush3.bf16.msra.mxu1 %v8148_v34 }
 0x3e4   : > { %6036 = vmatprep.subr.bf16.mxu1 %v8167_v61 }
 0x3e5   : > { %v8550_v20 = vpop.eup %7023 }
 0x3e6   : > { %v8555_v55 = vpop.eup %7025 }
 0x3e7   : > { %6037 = vmatpush3.bf16.msra.mxu1 %v8167_v61  ;;  %v8560_v35 = vpop.eup %7027 }
 0x3e8   : > { %6038 = vmatprep.subr.bf16.mxu1 %v8164_v57  ;;  %v8563_v49 = vpop.eup %7029 }
 0x3e9   : > { %2055 = vrot.lane.b32.xlu0 %v8044_v24, %s7722_s24 }
 0x3eb   : > { %6039 = vmatpush3.bf16.msra.mxu1 %v8164_v57 }
 0x3ec   : > { %6040 = vmatprep.subr.bf16.mxu1 %v8182_v21 }
 0x3ed   : > { %2019 = vrot.lane.b32.xlu0 %v8123_v4, %s7722_s24  ;;  %v11141_v4 = vld [vmem:[#allocation43_spill] sm:$0xff] }
 0x3ef   : > { %6041 = vmatpush3.bf16.msra.mxu1 %v8182_v21 }
 0x3f0   : > { %6042 = vmatprep.subr.bf16.mxu1 %v8174_v18 }
 0x3f1   : > { %1830 = vrot.lane.b32.xlu0 %v8046_v25, %s7722_s24  ;;  %v11139_v25 = vld [vmem:[#allocation41_spill] sm:$0xff] }
 0x3f3   : > { %6043 = vmatpush3.bf16.msra.mxu1 %v8174_v18 }
 0x3f4   : > { %6044 = vmatprep.subr.bf16.mxu1 %v11087_v44 }
 0x3f5   : > { %1834 = vrot.lane.b32.xlu0 %v11088_v56, %s7722_s24  ;;  %v11137_v56 = vld [vmem:[#allocation37_spill] sm:$0xff] }
 0x3f7   : > { %6045 = vmatpush3.bf16.msra.mxu1 %v11087_v44 }
 0x3f8   : > { %6046 = vmatprep.subr.bf16.mxu1 %v11089_v59 }
 0x3f9   : > { %1838 = vrot.lane.b32.xlu0 %v11090_v27, %s7722_s24 }
 0x3fb   : > { %6047 = vmatpush3.bf16.msra.mxu1 %v11089_v59 }
 0x3fc   : > { %6536 = vmatprep.subr.msk.bf16.mxu1 %vm1029_vm0, %v8371_v22 }
 0x3fd   : > { %2023 = vrot.lane.b32.xlu0 %v11091_v14, %s7722_s24 }
 0x3fe   : > { %v1495_v38 = vpop.xlane.xlu1 %1494 }
 0x3ff   : > { %1522 = vadd.xlane.f32.xlu1 %v8550_v20  ;;  %v1493_v50 = vpop.xlane.xlu0 %1492  ;;  %7031 = vrcp.f32 %v1495_v38 }
 0x400   : > { %7033 = vrcp.f32 %v1493_v50 }
 0x401   : > { %2027 = vrot.lane.b32.xlu0 %v11092_v23, %s7722_s24  ;;  %7035 = vpow2.f32 %v1478_v36 }
 0x402   : > { %v1491_v51 = vpop.xlane.xlu1 %1490 }
 0x403   : > { %7037 = vrcp.f32 %v1491_v51  ;;  %1528 = vadd.xlane.f32.xlu1 %v8555_v55  ;;  %v1489_v45 = vpop.xlane.xlu0 %1488 }
 0x404   : > { %7039 = vrcp.f32 %v1489_v45 }
 0x405   : > { %2031 = vrot.lane.b32.xlu0 %v11093_v16, %s7722_s24 }
 0x406   : > { %v1503_v37 = vpop.xlane.xlu1 %1502 }
 0x407   : > { %1534 = vadd.xlane.f32.xlu1 %v8560_v35  ;;  %v1501_v9 = vpop.xlane.xlu0 %1500  ;;  %7041 = vrcp.f32 %v1503_v37 }
 0x408   : > { %7043 = vrcp.f32 %v1501_v9 }
 0x409   : > { %v7032_v2 = vpop.eup %7031 }
 0x40a   : > { %v1499_v19 = vpop.xlane.xlu1 %1498  ;;  %v7034_v30 = vpop.eup %7033  ;;  %v1583_v8 = vmul.f32 %v7032_v2, %v8405_v62 }
 0x40b   : > { %7045 = vrcp.f32 %v1499_v19  ;;  %1536 = vadd.xlane.f32.xlu1 %v8563_v49  ;;  %v1497_v11 = vpop.xlane.xlu0 %1496  ;;  %v8566_v47 = vpop.eup %7035  ;;  %v1582_v17 = vmul.f32 %v7034_v30, %v8407_v41 }
 0x40c   : > { %7047 = vrcp.f32 %v1497_v11 }
 0x40d   : > { %v7038_v63 = vpop.eup %7037  ;;  %v1611_v51 = vpack.c.bf16 %v1583_v8, %v1582_v17  ;;  %v11100_v17 = vld [vmem:[#allocation21_spill] sm:$0xff] }
 0x40e   : > { %v7040_v48 = vpop.eup %7039  ;;  %v1581_v53 = vmul.f32 %v7038_v63, %v8412_v3  ;;  %v1829_v11 = vpop.permute.xlu1 %1828  ;;  %v11101_v8 = vld [vmem:[#allocation29_spill] sm:$0xff] }
 0x40f   : > { %1542 = vadd.xlane.f32.xlu1 %v8566_v47  ;;  %v1509_v0 = vpop.xlane.xlu0 %1508  ;;  %v1580_v36 = vmul.f32 %v7040_v48, %v8414_v32  ;;  %v11094_v48 = vld [vmem:[#allocation27_spill] sm:$0xff] }
 0x411   : > { %v1610_v38 = vpack.c.bf16 %v1581_v53, %v1580_v36  ;;  %v7042_v50 = vpop.eup %7041  ;;  %v11099_v53 = vld [vmem:[#allocation60_spill] sm:$0xff] }
 0x412   : > { %v7044_v45 = vpop.eup %7043  ;;  %v1587_v62 = vmul.f32 %v7042_v50, %v8419_v5  ;;  %v11096_v5 = vld [vmem:[#allocation28_spill] sm:$0xff]  ;;  %v8595_v36 = vpop.permute.xlu1 %2051 }
 0x413   : > { %6020 = vmatprep.mubr.bf16.mxu1 %v1610_v38  ;;  %v1505_v37 = vpop.xlane.xlu0 %1504  ;;  %v1586_v41 = vmul.f32 %v7044_v45, %v8421_v13  ;;  %v11097_v13 = vld [vmem:[#allocation33_spill] sm:$0xff] }
 0x414   : > { %6021 = vmatmul.mubr.bf16.gmra.mrb[68].mxu1 %v1611_v51 }
 0x415   : > { %v7046_v9 = vpop.eup %7045  ;;  %v1613_v63 = vpack.c.bf16 %v1587_v62, %v1586_v41 }
 0x416   : > { %v7048_v19 = vpop.eup %7047  ;;  %v1585_v3 = vmul.f32 %v7046_v9, %v8425_v1  ;;  %v11095_v1 = vld [vmem:[#allocation49_spill] sm:$0xff] }
 0x417   : > { %v1827_v2 = vpop.permute.xlu0 %1826  ;;  %v1584_v30 = vmul.f32 %v7048_v19, %v8427_v29  ;;  %v11098_v29 = vld [vmem:[#allocation39_spill] sm:$0xff] }
 0x418   : > { %6080 = vmatprep.mubr.msk.bf16.mxu0 %vm1029_vm0, %v1827_v2 }
 0x419   : > { %6081 = vmatmul.mubr.msk.bf16.vlgmr.msra.gmra.mrb[64].mxu0 %vm1029_vm0, %v1829_v11  ;;  %v1612_v32 = vpack.c.bf16 %v1585_v3, %v1584_v30 }
 0x41b   : > { %6024 = vmatprep.mubr.bf16.mxu1 %v1612_v32 }
 0x41c   : > { %6025 = vmatmul.mubr.bf16.gmra.mrb[72].mxu1 %v1613_v63 }
 0x420   : > { %2057 = vrot.lane.b32.xlu1 %v11094_v48, %s7722_s24  ;;  %v11140_v48 = vld [vmem:[#allocation46_spill] sm:$0xff] }
 0x424   : > { %2021 = vrot.lane.b32.xlu1 %v11095_v1, %s7722_s24  ;;  %v11138_v1 = vld [vmem:[#allocation40_spill] sm:$0xff] }
 0x428   : > { %1832 = vrot.lane.b32.xlu1 %v11096_v5, %s7722_s24  ;;  %v11136_v5 = vld [vmem:[#allocation36_spill] sm:$0xff] }
 0x42c   : > { %1836 = vrot.lane.b32.xlu1 %v11097_v13, %s7722_s24 }
 0x430   : > { %1840 = vrot.lane.b32.xlu1 %v11098_v29, %s7722_s24 }
 0x434   : > { %2025 = vrot.lane.b32.xlu1 %v11099_v53, %s7722_s24 }
 0x438   : > { %2029 = vrot.lane.b32.xlu1 %v11100_v17, %s7722_s24 }
 0x43c   : > { %2033 = vrot.lane.b32.xlu1 %v11101_v8, %s7722_s24 }
 0x443   : > { %v1511_v38 = vpop.xlane.xlu1 %1510 }
 0x444   : > { %7049 = vrcp.f32 %v1511_v38 }
 0x445   : > { %7051 = vrcp.f32 %v1505_v37 }
 0x446   : > { %7053 = vrcp.f32 %v1509_v0 }
 0x447   : > { %v1507_v50 = vpop.xlane.xlu1 %1506 }
 0x448   : > { %7055 = vrcp.f32 %v1507_v50  ;;  %v1525_v51 = vpop.xlane.xlu0 %1524 }
 0x44b   : > { %v1517_v45 = vpop.xlane.xlu1 %1516 }
 0x44c   : > { %v1521_v9 = vpop.xlane.xlu0 %1520 }
 0x44e   : > { %v7050_v19 = vpop.eup %7049 }
 0x44f   : > { %v1513_v3 = vpop.xlane.xlu1 %1512  ;;  %v7052_v41 = vpop.eup %7051  ;;  %v1591_v11 = vmul.f32 %v7050_v19, %v8458_v52 }
 0x450   : > { %v1527_v62 = vpop.xlane.xlu0 %1526  ;;  %v7054_v2 = vpop.eup %7053  ;;  %v1588_v63 = vmul.f32 %v7052_v41, %v8434_v28 }
 0x451   : > { %v1590_v0 = vmul.f32 %v7054_v2, %v8431_v6 }
 0x452   : > { %v7056_v30 = vpop.eup %7055 }
 0x453   : > { %v1519_v32 = vpop.xlane.xlu1 %1518  ;;  %v1589_v38 = vmul.f32 %v7056_v30, %v8465_v33  ;;  %v1615_v8 = vpack.c.bf16 %v1591_v11, %v1590_v0 }
 0x454   : > { %v1533_v37 = vpop.xlane.xlu0 %1532  ;;  %7057 = vrcp.f32 %v1519_v32 }
 0x455   : > { %v1614_v50 = vpack.c.bf16 %v1589_v38, %v1588_v63  ;;  %7059 = vrcp.f32 %v1513_v3 }
 0x456   : > { %7061 = vrcp.f32 %v1517_v45 }
 0x457   : > { %v1515_v17 = vpop.xlane.xlu1 %1514  ;;  %6028 = vmatprep.mubr.bf16.mxu1 %v1614_v50 }
 0x458   : > { %7063 = vrcp.f32 %v1515_v17  ;;  %6029 = vmatmul.mubr.bf16.gmra.mrb[76].mxu1 %v1615_v8  ;;  %v1531_v16 = vpop.xlane.xlu0 %1530  ;;  %v2084_v8 = vsel %vm1029_vm0, %v8371_v22, 0  ;;  %v11103_v22 = vld [vmem:[#allocation63_spill] sm:$0xff] }
 0x459   : > { %v2093_v63 = vsel %vm1029_vm0, %v11103_v22, 0  ;;  %7065 = vrcp.f32 %v1527_v62 }
 0x45a   : > { %7067 = vrcp.f32 %v1521_v9 }
 0x45b   : > { %v2054_v38 = vpop.permute.xlu1 %2053  ;;  %7069 = vrcp.f32 %v1525_v51 }
 0x45c   : > { %v8601_v53 = vpop.xlane.xlu0 %1540 }
 0x45e   : > { %v7058_v52 = vpop.eup %7057 }
 0x45f   : > { %v7060_v19 = vpop.eup %7059  ;;  %v1595_v30 = vmul.f32 %v7058_v52, %v8487_v40  ;;  %v2099_v52 = vsel %vm1029_vm0, %v2054_v38, 0 }
 0x460   : > { %v1539_v28 = vpop.xlane.xlu0 %1538  ;;  %v7062_v41 = vpop.eup %7061  ;;  %v1592_v6 = vmul.f32 %v7060_v19, %v8479_v46  ;;  %v11102_v46 = vld [vmem:[#allocation62_spill] sm:$0xff] }
 0x461   : > { %v1594_v45 = vmul.f32 %v7062_v41, %v8472_v15  ;;  %v2087_v15 = vsel %vm1029_vm0, %v8373_v43, 0 }
 0x462   : > { %v7064_v33 = vpop.eup %7063 }
 0x463   : > { %v1593_v3 = vmul.f32 %v7064_v33, %v8493_v26  ;;  %v1617_v17 = vpack.c.bf16 %v1595_v30, %v1594_v45  ;;  %v2090_v26 = vsel %vm1029_vm0, %v11102_v46, 0  ;;  %v7066_v19 = vpop.eup %7065 }
 0x464   : > { %v2056_v2 = vpop.permute.xlu0 %2055  ;;  %v1599_v51 = vmul.f32 %v7066_v19, %v8483_v60 }
 0x465   : > { %v1616_v11 = vpack.c.bf16 %v1593_v3, %v1592_v6 }
 0x467   : > { %6048 = vmatprep.mubr.bf16.mxu1 %v1616_v11 }
 0x468   : > { %6049 = vmatmul.mubr.bf16.vlgmr.msra.gmra.mrb[80].mxu1 %v1617_v17  ;;  %v8609_v32 = vpop.permute.xlu0 %2019 }
 0x469   : > { %6097 = vmatpush3.bf16.xpose.msra.mxu1 %v2084_v8 }
 0x46a   : > { %6537 = vmatprep.subr.msk.bf16.mxu1 %vm1029_vm0, %v8373_v43  ;;  %v2096_v43 = vsel %vm1029_vm0, %v8595_v36, 0 }
 0x46c   : > { %v1831_v40 = vpop.permute.xlu0 %1830 }
 0x46d   : > { %6084 = vmatprep.mubr.msk.bf16.mxu0 %vm1029_vm0, %v1831_v40 }
 0x471   : > { %6099 = vmatpush3.bf16.xpose.msra.mxu1 %v2087_v15 }
 0x472   : > { %6538 = vmatprep.subr.msk.bf16.mxu1 %vm1029_vm0, %v11102_v46 }
 0x479   : > { %6101 = vmatpush3.bf16.xpose.msra.mxu1 %v2090_v26 }
 0x47a   : > { %6539 = vmatprep.subr.msk.bf16.mxu1 %vm1029_vm0, %v11103_v22 }
 0x481   : > { %6103 = vmatpush3.bf16.xpose.msra.mxu1 %v2093_v63 }
 0x482   : > { %6540 = vmatprep.subr.msk.bf16.mxu1 %vm1029_vm0, %v8595_v36  ;;  %v7068_v36 = vpop.eup %7067 }
 0x483   : > { %v7070_v62 = vpop.eup %7069  ;;  %v1596_v30 = vmul.f32 %v7068_v36, %v8474_v10 }
 0x489   : > { %6105 = vmatpush3.bf16.xpose.msra.mxu1 %v2096_v43 }
 0x48a   : > { %6541 = vmatprep.subr.msk.bf16.mxu1 %vm1029_vm0, %v2054_v38 }
 0x48c   : > { %v1523_v0 = vpop.xlane.xlu1 %1522 }
 0x48d   : > { %7071 = vrcp.f32 %v1523_v0 }
 0x48e   : > { %7073 = vrcp.f32 %v1531_v16  ;;  %v2102_v16 = vsel %vm1029_vm0, %v2056_v2, 0 }
 0x490   : > { %v1529_v50 = vpop.xlane.xlu1 %1528 }
 0x491   : > { %7075 = vrcp.f32 %v1529_v50  ;;  %6107 = vmatpush3.bf16.xpose.msra.mxu1 %v2099_v52  ;;  %v1835_v52 = vpop.permute.xlu0 %1834 }
 0x492   : > { %6542 = vmatprep.subr.msk.bf16.mxu1 %vm1029_vm0, %v2056_v2  ;;  %7077 = vrcp.f32 %v1533_v37  ;;  %v1598_v37 = vmul.f32 %v7070_v62, %v8467_v58 }
 0x494   : > { %v1535_v41 = vpop.xlane.xlu1 %1534  ;;  %v1619_v17 = vpack.c.bf16 %v1599_v51, %v1598_v37 }
 0x495   : > { %7079 = vrcp.f32 %v1535_v41 }
 0x496   : > { %7081 = vrcp.f32 %v1539_v28 }
 0x497   : > { %v7072_v33 = vpop.eup %7071 }
 0x498   : > { %v1537_v9 = vpop.xlane.xlu1 %1536  ;;  %v1597_v6 = vmul.f32 %v7072_v33, %v8550_v20  ;;  %v7074_v3 = vpop.eup %7073 }
 0x499   : > { %7083 = vrcp.f32 %v1537_v9  ;;  %6109 = vmatpush3.bf16.xpose.msra.mxu1 %v2102_v16  ;;  %v1601_v2 = vmul.f32 %v7074_v3, %v8495_v42 }
 0x49a   : > { %v1618_v45 = vpack.c.bf16 %v1597_v6, %v1596_v30  ;;  %7085 = vrcp.f32 %v8601_v53 }
 0x49b   : > { %v7076_v11 = vpop.eup %7075 }
 0x49c   : > { %v1543_v28 = vpop.xlane.xlu1 %1542  ;;  %6052 = vmatprep.mubr.bf16.mxu1 %v1618_v45  ;;  %v1600_v60 = vmul.f32 %v7076_v11, %v8555_v55  ;;  %v7078_v8 = vpop.eup %7077 }
 0x49d   : > { %7087 = vrcp.f32 %v1543_v28  ;;  %6053 = vmatmul.mubr.bf16.gmra.mrb[84].mxu1 %v1619_v17  ;;  %v1602_v58 = vmul.f32 %v7078_v8, %v8489_v12  ;;  %v8677_v28 = vld [vmem:[#allocation8] sm:$0xff] }
 0x49e   : > { %v1620_v10 = vpack.c.bf16 %v1601_v2, %v1600_v60 }
 0x49f   : > { %v7080_v20 = vpop.eup %7079 }
 0x4a0   : > { %v2058_v40 = vpop.permute.xlu1 %2057  ;;  %6056 = vmatprep.mubr.bf16.mxu1 %v1620_v10  ;;  %v1603_v15 = vmul.f32 %v7080_v20, %v8560_v35  ;;  %v7082_v46 = vpop.eup %7081  ;;  %v8684_v20 = vld [vmem:[#allocation8 + $0x8] sm:$0xff] }
 0x4a1   : > { %6543 = vmatprep.subr.msk.bf16.mxu1 %vm1029_vm0, %v2058_v40  ;;  %v2105_v53 = vsel %vm1029_vm0, %v2058_v40, 0  ;;  %v1605_v63 = vmul.f32 %v7082_v46, %v8502_v54  ;;  %v1839_v54 = vpop.permute.xlu0 %1838  ;;  %v8694_v46 = vld [vmem:[#allocation8 + $0x10] sm:$0xff] }
 0x4a2   : > { %6111 = vmatpush3.bf16.xpose.msra.mxu1 %v2105_v53  ;;  %v1621_v55 = vpack.c.bf16 %v1603_v15, %v1602_v58 }
 0x4a3   : > { %v7084_v26 = vpop.eup %7083 }
 0x4a4   : > { %v2022_v42 = vpop.permute.xlu1 %2021  ;;  %v1604_v22 = vmul.f32 %v7084_v26, %v8563_v49  ;;  %v7086_v38 = vpop.eup %7085  ;;  %v8703_v26 = vld [vmem:[#allocation8 + $0x18] sm:$0xff] }
 0x4a5   : > { %6057 = vmatmul.mubr.bf16.gmra.mrb[88].mxu1 %v1621_v55  ;;  %v1606_v35 = vmul.f32 %v7086_v38, %v8499_v31  ;;  %v2024_v62 = vpop.permute.xlu0 %2023 }
 0x4a6   : > { %v1622_v43 = vpack.c.bf16 %v1605_v63, %v1604_v22 }
 0x4a7   : > { %v7088_v0 = vpop.eup %7087 }
 0x4a8   : > { %v1833_v12 = vpop.permute.xlu1 %1832  ;;  %6060 = vmatprep.mubr.bf16.mxu1 %v1622_v43  ;;  %v1607_v50 = vmul.f32 %v7088_v0, %v8566_v47 }
 0x4a9   : > { %6085 = vmatmul.mubr.msk.bf16.gmra.mrb[68].mxu0 %vm1029_vm0, %v1833_v12  ;;  %v2028_v51 = vpop.permute.xlu0 %2027 }
 0x4aa   : > { %6088 = vmatprep.mubr.msk.bf16.mxu0 %vm1029_vm0, %v1835_v52  ;;  %v1623_v19 = vpack.c.bf16 %v1607_v50, %v1606_v35 }
 0x4ac   : > { %v1837_v49 = vpop.permute.xlu1 %1836 }
 0x4ad   : > { %6061 = vmatmul.mubr.bf16.gmra.mrb[92].mxu1 %v1623_v19  ;;  %v2032_v16 = vpop.permute.xlu0 %2031 }
 0x4ae   : > { %6112 = vmatprep.mubr.msk.bf16.mxu1 %vm1029_vm0, %v8609_v32 }
 0x4b0   : > { %v1841_v33 = vpop.permute.xlu1 %1840 }
 0x4b1   : > { %v8651_v41 = vpop.f32.mrb[64].mxu1  ;;  %6089 = vmatmul.mubr.msk.bf16.gmra.mrb[72].mxu0 %vm1029_vm0, %v1837_v49 }
 0x4b2   : > { %11104 = vst [vmem:[#allocation62_spill] sm:$0xff] %v8651_v41  ;;  %v8654_v36 = vpop.f32.mrb[65].mxu1  ;;  %6092 = vmatprep.mubr.msk.bf16.mxu0 %vm1029_vm0, %v1839_v54  ;;  %v8830_v41 = vld [vmem:[#allocation8 + $0x78] sm:$0xff] }
 0x4b3   : > { %11105 = vst [vmem:[#allocation63_spill] sm:$0xff] %v8654_v36  ;;  %v8657_v31 = vpop.f32.mrb[66].mxu1 }
 0x4b4   : > { %11106 = vst [vmem:[#allocation64_spill] sm:$0xff] %v8657_v31  ;;  %v8659_v47 = vpop.f32.mrb[67].mxu1  ;;  %v2026_v32 = vpop.permute.xlu1 %2025 }
 0x4b5   : > { %11107 = vst [vmem:[#allocation65_spill] sm:$0xff] %v8659_v47  ;;  %6113 = vmatmul.mubr.msk.bf16.vlgmr.msra.gmra.mrb[96].mxu1 %vm1029_vm0, %v2022_v42 }
 0x4b6   : > { %6116 = vmatprep.mubr.msk.bf16.mxu1 %vm1029_vm0, %v2024_v62 }
 0x4b8   : > { %v2030_v9 = vpop.permute.xlu1 %2029 }
 0x4b9   : > { %6093 = vmatmul.mubr.msk.bf16.gmra.mrb[76].mxu0 %vm1029_vm0, %v1841_v33 }
 0x4bc   : > { %v2034_v30 = vpop.permute.xlu1 %2033 }
 0x4bd   : > { %6117 = vmatmul.mubr.msk.bf16.gmra.mrb[100].mxu1 %vm1029_vm0, %v2026_v32 }
 0x4be   : > { %6120 = vmatprep.mubr.msk.bf16.mxu1 %vm1029_vm0, %v2028_v51 }
 0x4c5   : > { %6121 = vmatmul.mubr.msk.bf16.gmra.mrb[104].mxu1 %vm1029_vm0, %v2030_v9 }
 0x4c6   : > { %6124 = vmatprep.mubr.msk.bf16.mxu1 %vm1029_vm0, %v2032_v16 }
 0x4cd   : > { %6125 = vmatmul.mubr.msk.bf16.gmra.mrb[108].mxu1 %vm1029_vm0, %v2034_v30  ;;  %v8741_v30 = vld [vmem:[#allocation8 + $0x20] sm:$0xff] }
 0x4e7   : > { %v8669_v6 = vpop.f32.mrb[68].mxu1 }
 0x4e8   : > { %11108 = vst [vmem:[#allocation66_spill] sm:$0xff] %v8669_v6  ;;  %v8671_v3 = vpop.f32.mrb[69].mxu1 }
 0x4e9   : > { %11109 = vst [vmem:[#allocation67_spill] sm:$0xff] %v8671_v3  ;;  %v8673_v37 = vpop.f32.mrb[70].mxu1  ;;  %v8810_v3 = vld [vmem:[#allocation8 + $0x68] sm:$0xff] }
 0x4ea   : > { %11110 = vst [vmem:[#allocation68_spill] sm:$0xff] %v8673_v37  ;;  %v8675_v45 = vpop.f32.mrb[71].mxu1  ;;  %v8820_v37 = vld [vmem:[#allocation8 + $0x70] sm:$0xff] }
 0x4eb   : > { %11111 = vst [vmem:[#allocation69_spill] sm:$0xff] %v8675_v45 }
 0x4ec   : > { %v6082_v11 = vpop.f32.mrb[64].mxu0 }
 0x4ed   : > { %v1948_v17 = vpop.f32.mrb[65].mxu0  ;;  %v8697_v53 = vadd.f32 %v8694_v46, %v6082_v11 }
 0x4ee   : > { %v8680_v60 = vadd.f32 %v8677_v28, %v1948_v17  ;;  %v6083_v2 = vpop.f32.mrb[66].mxu0 }
 0x4ef   : > { %v8682_v8 = vpop.f32.mrb[72].mxu1  ;;  %v1951_v10 = vpop.f32.mrb[67].mxu0  ;;  %v8706_v42 = vadd.f32 %v8703_v26, %v6083_v2 }
 0x4f0   : > { %11112 = vst [vmem:[#allocation70_spill] sm:$0xff] %v8682_v8  ;;  %v8687_v40 = vadd.f32 %v8684_v20, %v1951_v10  ;;  %v8689_v58 = vpop.f32.mrb[73].mxu1  ;;  %2204 = vmax.xlane.f32.xlu0 %v8680_v60  ;;  %v8746_v10 = vld [vmem:[#allocation8 + $0x28] sm:$0xff] }
 0x4f1   : > { %11113 = vst [vmem:[#allocation71_spill] sm:$0xff] %v8689_v58  ;;  %v8692_v15 = vpop.f32.mrb[74].mxu1 }
 0x4f2   : > { %11114 = vst [vmem:[#allocation72_spill] sm:$0xff] %v8692_v15  ;;  %v8699_v55 = vpop.f32.mrb[75].mxu1  ;;  %2206 = vmax.xlane.f32.xlu1 %v8687_v40 }
 0x4f3   : > { %11115 = vst [vmem:[#allocation73_spill] sm:$0xff] %v8699_v55  ;;  %v8804_v55 = vld [vmem:[#allocation8 + $0x60] sm:$0xff] }
 0x4f4   : > { %2208 = vmax.xlane.f32.xlu0 %v8697_v53 }
 0x4f8   : > { %2210 = vmax.xlane.f32.xlu0 %v8706_v42 }
 0x52b   : > { %v8709_v22 = vpop.f32.mrb[76].mxu1 }
 0x52c   : > { %11116 = vst [vmem:[#allocation74_spill] sm:$0xff] %v8709_v22  ;;  %v8711_v63 = vpop.f32.mrb[77].mxu1  ;;  %v8798_v22 = vld [vmem:[#allocation8 + $0x58] sm:$0xff] }
 0x52d   : > { %11117 = vst [vmem:[#allocation75_spill] sm:$0xff] %v8711_v63  ;;  %v8713_v38 = vpop.f32.mrb[78].mxu1 }
 0x52e   : > { %11118 = vst [vmem:[#allocation76_spill] sm:$0xff] %v8713_v38  ;;  %v8715_v43 = vpop.f32.mrb[79].mxu1 }
 0x52f   : > { %11119 = vst [vmem:[#allocation77_spill] sm:$0xff] %v8715_v43 }
 0x53b   : > { %v8717_v0 = vpop.f32.mrb[80].mxu1 }
 0x53c   : > { %11120 = vst [vmem:[#allocation78_spill] sm:$0xff] %v8717_v0  ;;  %v8719_v12 = vpop.f32.mrb[81].mxu1 }
 0x53d   : > { %11121 = vst [vmem:[#allocation79_spill] sm:$0xff] %v8719_v12  ;;  %v8721_v35 = vpop.f32.mrb[82].mxu1 }
 0x53e   : > { %11122 = vst [vmem:[#allocation80_spill] sm:$0xff] %v8721_v35  ;;  %v8723_v50 = vpop.f32.mrb[83].mxu1  ;;  %v8788_v35 = vld [vmem:[#allocation8 + $0x50] sm:$0xff] }
 0x53f   : > { %11123 = vst [vmem:[#allocation81_spill] sm:$0xff] %v8723_v50  ;;  %v8778_v50 = vld [vmem:[#allocation8 + $0x48] sm:$0xff] }
 0x570   : > { %v8725_v52 = vpop.f32.mrb[84].mxu1 }
 0x571   : > { %11124 = vst [vmem:[#allocation82_spill] sm:$0xff] %v8725_v52  ;;  %v8727_v19 = vpop.f32.mrb[85].mxu1  ;;  %v8766_v52 = vld [vmem:[#allocation8 + $0x38] sm:$0xff] }
 0x572   : > { %11125 = vst [vmem:[#allocation83_spill] sm:$0xff] %v8727_v19  ;;  %v8729_v54 = vpop.f32.mrb[86].mxu1 }
 0x573   : > { %11126 = vst [vmem:[#allocation84_spill] sm:$0xff] %v8729_v54  ;;  %v8731_v49 = vpop.f32.mrb[87].mxu1  ;;  %v8772_v54 = vld [vmem:[#allocation8 + $0x40] sm:$0xff] }
 0x574   : > { %11127 = vst [vmem:[#allocation85_spill] sm:$0xff] %v8731_v49 }
 0x578   : > { %v8733_v62 = vpop.f32.mrb[88].mxu1 }
 0x579   : > { %11128 = vst [vmem:[#allocation86_spill] sm:$0xff] %v8733_v62  ;;  %v8735_v33 = vpop.f32.mrb[89].mxu1 }
 0x57a   : > { %11129 = vst [vmem:[#allocation87_spill] sm:$0xff] %v8735_v33  ;;  %v8737_v32 = vpop.f32.mrb[90].mxu1 }
 0x57b   : > { %11130 = vst [vmem:[#allocation88_spill] sm:$0xff] %v8737_v32  ;;  %v8739_v51 = vpop.f32.mrb[91].mxu1 }
 0x57c   : > { %11131 = vst [vmem:[#allocation89_spill] sm:$0xff] %v8739_v51  ;;  %v6086_v9 = vpop.f32.mrb[68].mxu0  ;;  %v8756_v51 = vld [vmem:[#allocation8 + $0x30] sm:$0xff] }
 0x57d   : > { %v1964_v16 = vpop.f32.mrb[69].mxu0  ;;  %v8759_v32 = vadd.f32 %v8756_v51, %v6086_v9 }
 0x57e   : > { %v8744_v11 = vadd.f32 %v8741_v30, %v1964_v16  ;;  %v6087_v17 = vpop.f32.mrb[70].mxu0 }
 0x57f   : > { %v1967_v2 = vpop.f32.mrb[71].mxu0 }
 0x580   : > { %v8749_v19 = vadd.f32 %v8746_v10, %v1967_v2  ;;  %v8751_v62 = vpop.f32.mrb[92].mxu1  ;;  %2212 = vmax.xlane.f32.xlu0 %v8744_v11  ;;  %v8769_v2 = vadd.f32 %v8766_v52, %v6087_v17 }
 0x581   : > { %11132 = vst [vmem:[#allocation90_spill] sm:$0xff] %v8751_v62  ;;  %v8754_v33 = vpop.f32.mrb[93].mxu1 }
 0x582   : > { %11133 = vst [vmem:[#allocation91_spill] sm:$0xff] %v8754_v33  ;;  %v8761_v16 = vpop.f32.mrb[94].mxu1  ;;  %2214 = vmax.xlane.f32.xlu1 %v8749_v19 }
 0x583   : > { %11134 = vst [vmem:[#allocation92_spill] sm:$0xff] %v8761_v16  ;;  %v8764_v49 = vpop.f32.mrb[95].mxu1 }
 0x584   : > { %11135 = vst [vmem:[#allocation93_spill] sm:$0xff] %v8764_v49  ;;  %2216 = vmax.xlane.f32.xlu0 %v8759_v32  ;;  %v6090_v62 = vpop.f32.mrb[72].mxu0 }
 0x585   : > { %v1980_v33 = vpop.f32.mrb[73].mxu0 }
 0x586   : > { %v8775_v9 = vadd.f32 %v8772_v54, %v1980_v33  ;;  %2218 = vmax.xlane.f32.xlu1 %v8769_v2  ;;  %v6091_v16 = vpop.f32.mrb[74].mxu0  ;;  %v8791_v33 = vadd.f32 %v8788_v35, %v6090_v62 }
 0x587   : > { %v1983_v12 = vpop.f32.mrb[75].mxu0 }
 0x588   : > { %v8781_v49 = vadd.f32 %v8778_v50, %v1983_v12  ;;  %v8783_v17 = vpop.f32.mrb[96].mxu1  ;;  %2220 = vmax.xlane.f32.xlu0 %v8775_v9  ;;  %v8801_v12 = vadd.f32 %v8798_v22, %v6091_v16 }
 0x589   : > { %v8786_v0 = vpop.f32.mrb[97].mxu1 }
 0x58a   : > { %v8793_v63 = vpop.f32.mrb[98].mxu1  ;;  %2222 = vmax.xlane.f32.xlu1 %v8781_v49 }
 0x58b   : > { %v8796_v43 = vpop.f32.mrb[99].mxu1 }
 0x58c   : > { %2224 = vmax.xlane.f32.xlu0 %v8791_v33  ;;  %v6094_v38 = vpop.f32.mrb[76].mxu0 }
 0x58d   : > { %v1996_v58 = vpop.f32.mrb[77].mxu0 }
 0x58e   : > { %v8807_v62 = vadd.f32 %v8804_v55, %v1996_v58  ;;  %2226 = vmax.xlane.f32.xlu1 %v8801_v12  ;;  %v6095_v8 = vpop.f32.mrb[78].mxu0  ;;  %v8823_v58 = vadd.f32 %v8820_v37, %v6094_v38 }
 0x58f   : > { %v1999_v15 = vpop.f32.mrb[79].mxu0 }
 0x590   : > { %v8813_v45 = vadd.f32 %v8810_v3, %v1999_v15  ;;  %2228 = vmax.xlane.f32.xlu0 %v8807_v62  ;;  %v8816_v16 = vpop.f32.mrb[100].mxu1  ;;  %v8833_v15 = vadd.f32 %v8830_v41, %v6095_v8 }
 0x591   : > { %v8818_v6 = vpop.f32.mrb[101].mxu1 }
 0x592   : > { %2230 = vmax.xlane.f32.xlu1 %v8813_v45  ;;  %v8826_v36 = vpop.f32.mrb[102].mxu1 }
 0x593   : > { %v8828_v47 = vpop.f32.mrb[103].mxu1 }
 0x594   : > { %2232 = vmax.xlane.f32.xlu0 %v8823_v58 }
 0x596   : > { %2234 = vmax.xlane.f32.xlu1 %v8833_v15 }
 0x598   : > { %v8837_v31 = vpop.f32.mrb[104].mxu1 }
 0x599   : > { %v8839_v23 = vpop.f32.mrb[105].mxu1 }
 0x59a   : > { %v8841_v38 = vpop.f32.mrb[106].mxu1 }
 0x59b   : > { %v8843_v29 = vpop.f32.mrb[107].mxu1 }
 0x5a0   : > { %v8845_v14 = vpop.f32.mrb[108].mxu1 }
 0x5a1   : > { %v8847_v13 = vpop.f32.mrb[109].mxu1 }
 0x5a2   : > { %v8849_v27 = vpop.f32.mrb[110].mxu1 }
 0x5a3   : > { %v8851_v8 = vpop.f32.mrb[111].mxu1 }
 0x5a7   : > { %2518 = vrot.lane.b32.xlu1 %v11136_v5, %s7722_s24  ;;  %v11142_v5 = vld [vmem:[#allocation42_spill] sm:$0xff] }
 0x5aa   : > { %2516 = vrot.lane.b32.xlu0 %v11137_v56, %s7722_s24 }
 0x5ab   : > { %2522 = vrot.lane.b32.xlu1 %v11138_v1, %s7722_s24  ;;  %v11143_v1 = vld [vmem:[#allocation47_spill] sm:$0xff] }
 0x5ae   : > { %2520 = vrot.lane.b32.xlu0 %v11139_v25, %s7722_s24 }
 0x5af   : > { %2530 = vrot.lane.b32.xlu1 %v11140_v48, %s7722_s24 }
 0x5b2   : > { %2524 = vrot.lane.b32.xlu0 %v11141_v4, %s7722_s24  ;;  %v11144_v4 = vld [vmem:[#allocation22_spill] sm:$0xff] }
 0x5b3   : > { %2647 = vrot.lane.b32.xlu1 %v8148_v34, %s7722_s24  ;;  %v11145_v34 = vld [vmem:[#allocation15_spill] sm:$0xff] }
 0x5b6   : > { %2526 = vrot.lane.b32.xlu0 %v11142_v5, %s7722_s24 }
 0x5b7   : > { %2651 = vrot.lane.b32.xlu1 %v8164_v57, %s7722_s24 }
 0x5ba   : > { %2528 = vrot.lane.b32.xlu0 %v11143_v1, %s7722_s24  ;;  %v11146_v1 = vld [vmem:[#allocation26_spill] sm:$0xff] }
 0x5bb   : > { %2655 = vrot.lane.b32.xlu1 %v8174_v18, %s7722_s24  ;;  %v11147_v18 = vld [vmem:[#allocation19_spill] sm:$0xff] }
 0x5be   : > { %2645 = vrot.lane.b32.xlu0 %v8156_v39, %s7722_s24  ;;  %v11148_v39 = vld [vmem:[#allocation44_spill] sm:$0xff] }
 0x5bf   : > { %2786 = vrot.lane.b32.xlu1 %v11144_v4, %s7723_s26 }
 0x5c2   : > { %2782 = vrot.lane.b32.xlu0 %v11145_v34, %s7723_s26  ;;  %v11149_v34 = vld [vmem:[#allocation32_spill] sm:$0xff] }
 0x5c3   : > { %2657 = vrot.lane.b32.xlu1 %v11087_v44, %s7722_s24  ;;  %v2205_v44 = vpop.xlane.xlu0 %2204 }
 0x5c4   : > { %v2268_v4 = vsub.f32 %v8680_v60, %v2205_v44 }
 0x5c6   : > { %2649 = vrot.lane.b32.xlu0 %v8167_v61, %s7722_s24  ;;  %v11150_v61 = vld [vmem:[#allocation48_spill] sm:$0xff]  ;;  %v2300_v5 = vmul.f32 1.442695, %v2268_v4 }
 0x5c7   : > { %2788 = vrot.lane.b32.xlu1 %v11146_v1, %s7723_s26  ;;  %v11151_v1 = vld [vmem:[#allocation30_spill] sm:$0xff] }
 0x5c8   : > { %7089 = vpow2.f32 %v2300_v5 }
 0x5ca   : > { %2784 = vrot.lane.b32.xlu0 %v11147_v18, %s7723_s26  ;;  %v11152_v18 = vld [vmem:[#allocation54_spill] sm:$0xff] }
 0x5cb   : > { %2959 = vrot.lane.b32.xlu1 %v11148_v39, %s7723_s26  ;;  %v11153_v39 = vld [vmem:[#allocation34_spill] sm:$0xff] }
 0x5ce   : > { %2653 = vrot.lane.b32.xlu0 %v8182_v21, %s7722_s24  ;;  %v2209_v21 = vpop.xlane.xlu0 %2208 }
 0x5cf   : > { %2792 = vrot.lane.b32.xlu1 %v11149_v34, %s7723_s26  ;;  %v2207_v34 = vpop.xlane.xlu1 %2206  ;;  %v2270_v57 = vsub.f32 %v8697_v53, %v2209_v21 }
 0x5d1   : > { %v2304_v48 = vmul.f32 1.442695, %v2270_v57 }
 0x5d2   : > { %2659 = vrot.lane.b32.xlu0 %v11089_v59, %s7722_s24  ;;  %v2211_v59 = vpop.xlane.xlu0 %2210 }
 0x5d3   : > { %2961 = vrot.lane.b32.xlu1 %v11150_v61, %s7723_s26  ;;  %v2269_v61 = vsub.f32 %v8687_v40, %v2207_v34  ;;  %7091 = vpow2.f32 %v2304_v48 }
 0x5d5   : > { %v2302_v25 = vmul.f32 1.442695, %v2269_v61 }
 0x5d6   : > { %2790 = vrot.lane.b32.xlu0 %v11151_v1, %s7723_s26  ;;  %v2271_v1 = vsub.f32 %v8706_v42, %v2211_v59 }
 0x5d7   : > { %2963 = vrot.lane.b32.xlu1 %v11152_v18, %s7723_s26  ;;  %7093 = vpow2.f32 %v2302_v25 }
 0x5d8   : > { %v2306_v18 = vmul.f32 1.442695, %v2271_v1 }
 0x5da   : > { %2794 = vrot.lane.b32.xlu0 %v11153_v39, %s7723_s26  ;;  %7095 = vpow2.f32 %v2306_v18  ;;  %v8909_v39 = vpop.eup %7089 }
 0x5dd   : > { %v8912_v44 = vpop.eup %7091 }
 0x5e1   : > { %v8915_v4 = vpop.eup %7093 }
 0x5e4   : > { %v8918_v34 = vpop.eup %7095 }
 0x5f9   : > { %2364 = vadd.xlane.f32.xlu0 %v8909_v39 }
 0x5fb   : > { %2368 = vadd.xlane.f32.xlu1 %v8912_v44 }
 0x5fd   : > { %2366 = vadd.xlane.f32.xlu0 %v8915_v4 }
 0x5ff   : > { %2370 = vadd.xlane.f32.xlu1 %v8918_v34 }
 0x60d   : > { %v2213_v57 = vpop.xlane.xlu0 %2212 }
 0x60e   : > { %v2272_v18 = vsub.f32 %v8744_v11, %v2213_v57 }
 0x60f   : > { %v2215_v61 = vpop.xlane.xlu1 %2214 }
 0x610   : > { %v2273_v25 = vsub.f32 %v8749_v19, %v2215_v61  ;;  %v2308_v60 = vmul.f32 1.442695, %v2272_v18 }
 0x611   : > { %v2217_v21 = vpop.xlane.xlu0 %2216 }
 0x612   : > { %v2310_v59 = vmul.f32 1.442695, %v2273_v25  ;;  %v2274_v48 = vsub.f32 %v8759_v32, %v2217_v21 }
 0x613   : > { %v2219_v1 = vpop.xlane.xlu1 %2218 }
 0x614   : > { %7097 = vpow2.f32 %v2310_v59  ;;  %v2312_v5 = vmul.f32 1.442695, %v2274_v48  ;;  %v2275_v53 = vsub.f32 %v8769_v2, %v2219_v1 }
 0x615   : > { %v2221_v40 = vpop.xlane.xlu0 %2220 }
 0x616   : > { %7099 = vpow2.f32 %v2312_v5  ;;  %v2276_v42 = vsub.f32 %v8775_v9, %v2221_v40  ;;  %v2314_v61 = vmul.f32 1.442695, %v2275_v53 }
 0x617   : > { %v2223_v56 = vpop.xlane.xlu1 %2222  ;;  %7101 = vpow2.f32 %v2308_v60 }
 0x618   : > { %v2316_v24 = vmul.f32 1.442695, %v2276_v42 }
 0x619   : > { %v2225_v19 = vpop.xlane.xlu0 %2224 }
 0x61a   : > { %7103 = vpow2.f32 %v2316_v24  ;;  %v2278_v11 = vsub.f32 %v8791_v33, %v2225_v19  ;;  %v2277_v33 = vsub.f32 %v8781_v49, %v2223_v56 }
 0x61b   : > { %v2227_v57 = vpop.xlane.xlu1 %2226  ;;  %7105 = vpow2.f32 %v2314_v61 }
 0x61c   : > { %v2320_v32 = vmul.f32 1.442695, %v2278_v11  ;;  %v2279_v18 = vsub.f32 %v8801_v12, %v2227_v57  ;;  %v2318_v53 = vmul.f32 1.442695, %v2277_v33 }
 0x61d   : > { %v2229_v25 = vpop.xlane.xlu0 %2228 }
 0x61e   : > { %v8927_v21 = vpop.eup %7097  ;;  %v2280_v2 = vsub.f32 %v8807_v62, %v2229_v25  ;;  %7107 = vpow2.f32 %v2320_v32  ;;  %v2322_v1 = vmul.f32 1.442695, %v2279_v18 }
 0x61f   : > { %v2231_v59 = vpop.xlane.xlu1 %2230  ;;  %2374 = vadd.xlane.f32.xlu1 %v8927_v21 }
 0x620   : > { %v8932_v9 = vpop.eup %7099  ;;  %v2324_v48 = vmul.f32 1.442695, %v2280_v2  ;;  %v2281_v61 = vsub.f32 %v8813_v45, %v2231_v59 }
 0x621   : > { %2376 = vadd.xlane.f32.xlu0 %v8932_v9  ;;  %v2233_v24 = vpop.xlane.xlu0 %2232  ;;  %v8936_v5 = vpop.eup %7101 }
 0x622   : > { %7109 = vpow2.f32 %v2324_v48  ;;  %v2282_v42 = vsub.f32 %v8823_v58, %v2233_v24  ;;  %v2326_v18 = vmul.f32 1.442695, %v2281_v61 }
 0x623   : > { %v2235_v60 = vpop.xlane.xlu1 %2234  ;;  %7111 = vpow2.f32 %v2322_v1  ;;  %v8964_v1 = vadd.f32 %v8703_v26, %v8793_v63  ;;  %v8980_v63 = vadd.f32 %v8766_v52, %v8826_v36  ;;  %v8997_v52 = vadd.f32 %v8677_v28, %v8786_v0 }
 0x624   : > { %v8938_v12 = vpop.eup %7103  ;;  %v2283_v62 = vsub.f32 %v8833_v15, %v2235_v60  ;;  %v2328_v11 = vmul.f32 1.442695, %v2282_v42  ;;  %v9013_v28 = vadd.f32 %v8756_v51, %v8816_v16  ;;  %v9024_v51 = vadd.f32 %v8772_v54, %v8839_v23  ;;  %v11155_v23 = vld [vmem:[#allocation38_spill] sm:$0xff] }
 0x625   : > { %2372 = vadd.xlane.f32.xlu0 %v8936_v5  ;;  %2380 = vadd.xlane.f32.xlu1 %v8938_v12  ;;  %v2517_v40 = vpop.permute.xlu0 %2516  ;;  %v8944_v49 = vpop.eup %7105 }
 0x626   : > { %v2330_v19 = vmul.f32 1.442695, %v2283_v62  ;;  %6128 = vmatprep.subr.bf16.mxu0 %v2517_v40 }
 0x627   : > { %v2519_v56 = vpop.permute.xlu1 %2518  ;;  %6129 = vmatpush3.bf16.msra.mxu0 %v2517_v40  ;;  %v8972_v40 = vadd.f32 %v8684_v20, %v8796_v43  ;;  %v8987_v43 = vadd.f32 %v8694_v46, %v8783_v17  ;;  %v9004_v46 = vadd.f32 %v8788_v35, %v8837_v31  ;;  %v9019_v31 = vadd.f32 %v8741_v30, %v8818_v6  ;;  %v11154_v6 = vld [vmem:[#allocation58_spill] sm:$0xff] }
 0x628   : > { %7113 = vpow2.f32 %v2330_v19  ;;  %6130 = vmatprep.subr.bf16.mxu0 %v2519_v56  ;;  %v8948_v57 = vpop.eup %7107  ;;  %v9039_v30 = vadd.f32 %v8798_v22, %v8841_v38  ;;  %v9057_v22 = vadd.f32 %v8804_v55, %v8847_v13 }
 0x629   : > { %2378 = vadd.xlane.f32.xlu0 %v8944_v49  ;;  %v2521_v15 = vpop.permute.xlu0 %2520  ;;  %7115 = vpow2.f32 %v2318_v53 }
 0x62a   : > { %7117 = vpow2.f32 %v2328_v11  ;;  %v9044_v11 = vadd.f32 %v8778_v50, %v8843_v29  ;;  %v9064_v29 = vadd.f32 %v8830_v41, %v8849_v27 }
 0x62b   : > { %v2523_v32 = vpop.permute.xlu1 %2522  ;;  %6131 = vmatpush3.bf16.msra.mxu0 %v2519_v56  ;;  %7119 = vpow2.f32 %v2326_v18  ;;  %v8992_v56 = vadd.f32 %v8746_v10, %v8828_v47 }
 0x62c   : > { %v8950_v58 = vpop.eup %7109  ;;  %6132 = vmatprep.subr.bf16.mxu0 %v2521_v15 }
 0x62d   : > { %2384 = vadd.xlane.f32.xlu0 %v8948_v57  ;;  %2388 = vadd.xlane.f32.xlu1 %v8950_v58  ;;  %v2525_v25 = vpop.permute.xlu0 %2524  ;;  %v8954_v48 = vpop.eup %7111 }
 0x62f   : > { %v2531_v2 = vpop.permute.xlu1 %2530  ;;  %6133 = vmatpush3.bf16.msra.mxu0 %v2521_v15 }
 0x630   : > { %6134 = vmatprep.subr.bf16.mxu0 %v2523_v32 }
 0x631   : > { %2386 = vadd.xlane.f32.xlu0 %v8954_v48  ;;  %v2527_v45 = vpop.permute.xlu0 %2526 }
 0x632   : > { %v8957_v59 = vpop.eup %7113 }
 0x633   : > { %2394 = vadd.xlane.f32.xlu1 %v8957_v59  ;;  %6135 = vmatpush3.bf16.msra.mxu0 %v2523_v32  ;;  %v8960_v24 = vpop.eup %7115  ;;  %v2648_v33 = vpop.permute.xlu1 %2647 }
 0x634   : > { %6136 = vmatprep.subr.bf16.mxu0 %v2525_v25  ;;  %v8968_v62 = vpop.eup %7117 }
 0x635   : > { %2382 = vadd.xlane.f32.xlu0 %v8960_v24  ;;  %v2529_v60 = vpop.permute.xlu0 %2528  ;;  %v8976_v26 = vpop.eup %7119 }
 0x637   : > { %2242 = vmax.xlane.f32.xlu1 %v8964_v1  ;;  %6137 = vmatpush3.bf16.msra.mxu0 %v2525_v25  ;;  %v2652_v42 = vpop.permute.xlu1 %2651  ;;  %v9051_v25 = vadd.f32 %v8820_v37, %v8845_v14  ;;  %v9070_v14 = vadd.f32 %v8810_v3, %v8851_v8 }
 0x638   : > { %6138 = vmatprep.subr.bf16.mxu0 %v2527_v45 }
 0x639   : > { %2392 = vadd.xlane.f32.xlu0 %v8968_v62  ;;  %v2646_v53 = vpop.permute.xlu0 %2645 }
 0x63a   : > { %6160 = vmatprep.subr.bf16.mxu1 %v2646_v53 }
 0x63b   : > { %2238 = vmax.xlane.f32.xlu1 %v8972_v40  ;;  %6139 = vmatpush3.bf16.msra.mxu0 %v2527_v45  ;;  %v2656_v19 = vpop.permute.xlu1 %2655 }
 0x63c   : > { %6161 = vmatpush3.bf16.msra.mxu1 %v2646_v53  ;;  %6140 = vmatprep.subr.bf16.mxu0 %v2529_v60 }
 0x63d   : > { %6162 = vmatprep.subr.bf16.mxu1 %v2648_v33  ;;  %2390 = vadd.xlane.f32.xlu0 %v8976_v26  ;;  %v8983_v20 = vpop.permute.xlu0 %2782 }
 0x63f   : > { %2250 = vmax.xlane.f32.xlu1 %v8980_v63  ;;  %6141 = vmatpush3.bf16.msra.mxu0 %v2529_v60  ;;  %v9009_v10 = vpop.permute.xlu1 %2786 }
 0x640   : > { %6163 = vmatpush3.bf16.msra.mxu1 %v2648_v33  ;;  %6142 = vmatprep.subr.bf16.mxu0 %v2531_v2 }
 0x641   : > { %2240 = vmax.xlane.f32.xlu0 %v8987_v43  ;;  %v2650_v36 = vpop.permute.xlu0 %2649 }
 0x642   : > { %6164 = vmatprep.subr.bf16.mxu1 %v2650_v36 }
 0x643   : > { %2246 = vmax.xlane.f32.xlu1 %v8992_v56  ;;  %6143 = vmatpush3.bf16.msra.mxu0 %v2531_v2  ;;  %v2658_v35 = vpop.permute.xlu1 %2657 }
 0x644   : > { %6165 = vmatpush3.bf16.msra.mxu1 %v2650_v36  ;;  %6544 = vmatprep.subr.msk.bf16.mxu0 %vm1029_vm0, %v8983_v20 }
 0x645   : > { %6166 = vmatprep.subr.bf16.mxu1 %v2652_v42  ;;  %2236 = vmax.xlane.f32.xlu0 %v8997_v52  ;;  %v9007_v47 = vpop.permute.xlu0 %2784 }
 0x647   : > { %2256 = vmax.xlane.f32.xlu1 %v9004_v46  ;;  %v2789_v17 = vpop.permute.xlu1 %2788 }
 0x648   : > { %6167 = vmatpush3.bf16.msra.mxu1 %v2652_v42  ;;  %v2832_v36 = vsel %vm1029_vm0, %v2789_v17, 0 }
 0x649   : > { %2248 = vmax.xlane.f32.xlu0 %v9013_v28  ;;  %v2654_v0 = vpop.permute.xlu0 %2653 }
 0x64a   : > { %6168 = vmatprep.subr.bf16.mxu1 %v2654_v0 }
 0x64b   : > { %v9027_v15 = vpop.permute.xlu1 %2959 }
 0x64c   : > { %6169 = vmatpush3.bf16.msra.mxu1 %v2654_v0 }
 0x64d   : > { %6170 = vmatprep.subr.bf16.mxu1 %v2656_v19  ;;  %2244 = vmax.xlane.f32.xlu0 %v9019_v31  ;;  %v2660_v16 = vpop.permute.xlu0 %2659 }
 0x64f   : > { %v9035_v54 = vpop.permute.xlu1 %2792 }
 0x650   : > { %6171 = vmatpush3.bf16.msra.mxu1 %v2656_v19  ;;  %v2823_v19 = vsel %vm1029_vm0, %v8983_v20, 0 }
 0x651   : > { %6172 = vmatprep.subr.bf16.mxu1 %v2658_v35  ;;  %2252 = vmax.xlane.f32.xlu0 %v9024_v51  ;;  %v2791_v61 = vpop.permute.xlu0 %2790 }
 0x653   : > { %v9046_v32 = vpop.permute.xlu1 %2961 }
 0x654   : > { %6173 = vmatpush3.bf16.msra.mxu1 %v2658_v35 }
 0x655   : > { %6174 = vmatprep.subr.bf16.mxu1 %v2660_v16  ;;  %v9053_v18 = vpop.permute.xlu0 %2794 }
 0x657   : > { %v9059_v38 = vpop.permute.xlu1 %2963 }
 0x658   : > { %6175 = vmatpush3.bf16.msra.mxu1 %v2660_v16  ;;  %2965 = vrot.lane.b32.xlu1 %v11154_v6, %s7723_s26 }
 0x659   : > { %6552 = vmatprep.subr.msk.bf16.mxu1 %vm1029_vm0, %v9027_v15 }
 0x667   : > { %2796 = vrot.lane.b32.xlu0 %v11155_v23, %s7723_s26 }
 0x67c   : > { %2258 = vmax.xlane.f32.xlu1 %v9039_v30 }
 0x680   : > { %2254 = vmax.xlane.f32.xlu1 %v9044_v11 }
 0x684   : > { %2264 = vmax.xlane.f32.xlu1 %v9051_v25 }
 0x686   : > { %2260 = vmax.xlane.f32.xlu0 %v9057_v22  ;;  %v2365_v50 = vpop.xlane.xlu0 %2364 }
 0x687   : > { %7121 = vrcp.f32 %v2365_v50  ;;  %v2835_v50 = vsel %vm1029_vm0, %v2791_v61, 0 }
 0x688   : > { %v2369_v2 = vpop.xlane.xlu1 %2368  ;;  %2266 = vmax.xlane.f32.xlu1 %v9064_v29 }
 0x689   : > { %7123 = vrcp.f32 %v2369_v2 }
 0x68a   : > { %v2367_v13 = vpop.xlane.xlu0 %2366 }
 0x68b   : > { %7125 = vrcp.f32 %v2367_v13 }
 0x68c   : > { %v2371_v37 = vpop.xlane.xlu1 %2370  ;;  %2262 = vmax.xlane.f32.xlu1 %v9070_v14 }
 0x68d   : > { %7127 = vrcp.f32 %v2371_v37 }
 0x691   : > { %v7122_v27 = vpop.eup %7121 }
 0x692   : > { %v2460_v45 = vmul.f32 %v7122_v27, %v8909_v39  ;;  %v2826_v39 = vsel %vm1029_vm0, %v9007_v47, 0 }
 0x693   : > { %v7124_v41 = vpop.eup %7123 }
 0x694   : > { %v2462_v53 = vmul.f32 %v7124_v41, %v8912_v44  ;;  %v2829_v44 = vsel %vm1029_vm0, %v9009_v10, 0 }
 0x695   : > { %v7126_v55 = vpop.eup %7125 }
 0x696   : > { %v2461_v33 = vmul.f32 %v7126_v55, %v8915_v4 }
 0x697   : > { %v7128_v60 = vpop.eup %7127 }
 0x698   : > { %v2463_v3 = vmul.f32 %v7128_v60, %v8918_v34  ;;  %v2492_v8 = vpack.c.bf16 %v2461_v33, %v2460_v45 }
 0x69a   : > { %6144 = vmatprep.mubr.bf16.mxu0 %v2492_v8  ;;  %v2493_v42 = vpack.c.bf16 %v2463_v3, %v2462_v53  ;;  %v2838_v3 = vsel %vm1029_vm0, %v9035_v54, 0 }
 0x69c   : > { %6145 = vmatmul.mubr.bf16.vlgmr.msra.gmra.mrb[80].mxu0 %v2493_v42 }
 0x69d   : > { %6193 = vmatpush3.bf16.xpose.msra.mxu0 %v2823_v19 }
 0x69e   : > { %6545 = vmatprep.subr.msk.bf16.mxu0 %vm1029_vm0, %v9007_v47 }
 0x6a5   : > { %6195 = vmatpush3.bf16.xpose.msra.mxu0 %v2826_v39 }
 0x6a6   : > { %6546 = vmatprep.subr.msk.bf16.mxu0 %vm1029_vm0, %v9009_v10 }
 0x6ac   : > { %v2375_v34 = vpop.xlane.xlu1 %2374 }
 0x6ad   : > { %6197 = vmatpush3.bf16.xpose.msra.mxu0 %v2829_v44  ;;  %7129 = vrcp.f32 %v2375_v34 }
 0x6ae   : > { %6547 = vmatprep.subr.msk.bf16.mxu0 %vm1029_vm0, %v2789_v17  ;;  %v2377_v4 = vpop.xlane.xlu0 %2376 }
 0x6b2   : > { %v2373_v20 = vpop.xlane.xlu0 %2372  ;;  %v2381_v0 = vpop.xlane.xlu1 %2380 }
 0x6b3   : > { %7131 = vrcp.f32 %v2373_v20 }
 0x6b4   : > { %7133 = vrcp.f32 %v2377_v4 }
 0x6b5   : > { %6199 = vmatpush3.bf16.xpose.msra.mxu0 %v2832_v36 }
 0x6b6   : > { %6548 = vmatprep.subr.msk.bf16.mxu0 %vm1029_vm0, %v2791_v61  ;;  %v2379_v47 = vpop.xlane.xlu0 %2378 }
 0x6b7   : > { %7135 = vrcp.f32 %v2379_v47  ;;  %v7130_v16 = vpop.eup %7129 }
 0x6b8   : > { %v2465_v27 = vmul.f32 %v7130_v16, %v8927_v21 }
 0x6ba   : > { %v2385_v35 = vpop.xlane.xlu0 %2384  ;;  %v2389_v10 = vpop.xlane.xlu1 %2388 }
 0x6bd   : > { %6201 = vmatpush3.bf16.xpose.msra.mxu0 %v2835_v50  ;;  %v7132_v2 = vpop.eup %7131 }
 0x6be   : > { %6549 = vmatprep.subr.msk.bf16.mxu0 %vm1029_vm0, %v9035_v54  ;;  %v2387_v13 = vpop.xlane.xlu0 %2386  ;;  %v7134_v37 = vpop.eup %7133  ;;  %v2464_v17 = vmul.f32 %v7132_v2, %v8936_v5  ;;  %v2841_v54 = vsel %vm1029_vm0, %v9053_v18, 0 }
 0x6bf   : > { %7137 = vrcp.f32 %v2387_v13  ;;  %v2466_v61 = vmul.f32 %v7134_v37, %v8932_v9 }
 0x6c0   : > { %v2395_v41 = vpop.xlane.xlu1 %2394  ;;  %7139 = vrcp.f32 %v2381_v0  ;;  %v2494_v45 = vpack.c.bf16 %v2465_v27, %v2464_v17 }
 0x6c1   : > { %v7136_v55 = vpop.eup %7135  ;;  %7141 = vrcp.f32 %v2385_v35 }
 0x6c2   : > { %v2383_v33 = vpop.xlane.xlu0 %2382  ;;  %v2467_v60 = vmul.f32 %v7136_v55, %v8944_v49  ;;  %6148 = vmatprep.mubr.bf16.mxu0 %v2494_v45 }
 0x6c3   : > { %7143 = vrcp.f32 %v2383_v33 }
 0x6c4   : > { %v2243_v53 = vpop.xlane.xlu1 %2242  ;;  %v2495_v5 = vpack.c.bf16 %v2467_v60, %v2466_v61 }
 0x6c5   : > { %6203 = vmatpush3.bf16.xpose.msra.mxu0 %v2838_v3  ;;  %v2287_v13 = vsub.f32 %v8964_v1, %v2243_v53  ;;  %v11156_v53 = vld [vmem:[#allocation17_spill] sm:$0xff] }
 0x6c6   : > { %6550 = vmatprep.subr.msk.bf16.mxu0 %vm1029_vm0, %v9053_v18  ;;  %6149 = vmatmul.mubr.bf16.gmra.mrb[84].mxu0 %v2495_v5  ;;  %v2393_v21 = vpop.xlane.xlu0 %2392  ;;  %v11157_v5 = vld [vmem:[#allocation20_spill] sm:$0xff] }
 0x6c7   : > { %7145 = vrcp.f32 %v2393_v21  ;;  %v2338_v55 = vmul.f32 1.442695, %v2287_v13 }
 0x6c8   : > { %v2239_v8 = vpop.xlane.xlu1 %2238  ;;  %7147 = vrcp.f32 %v2389_v10 }
 0x6c9   : > { %v2285_v9 = vsub.f32 %v8972_v40, %v2239_v8  ;;  %v7138_v42 = vpop.eup %7137  ;;  %7149 = vrcp.f32 %v2395_v41 }
 0x6ca   : > { %v2391_v49 = vpop.xlane.xlu0 %2390  ;;  %v7140_v19 = vpop.eup %7139  ;;  %v2471_v34 = vmul.f32 %v7138_v42, %v8954_v48 }
 0x6cb   : > { %v2334_v39 = vmul.f32 1.442695, %v2285_v9  ;;  %7151 = vrcp.f32 %v2391_v49  ;;  %v7142_v44 = vpop.eup %7141  ;;  %v2468_v36 = vmul.f32 %v7140_v19, %v8938_v12  ;;  %v11158_v9 = vld [vmem:[#allocation16_spill] sm:$0xff] }
 0x6cc   : > { %v2470_v0 = vmul.f32 %v7142_v44, %v8948_v57  ;;  %v2251_v3 = vpop.xlane.xlu1 %2250 }
 0x6cd   : > { %v7144_v4 = vpop.eup %7143  ;;  %7153 = vpow2.f32 %v2334_v39  ;;  %6205 = vmatpush3.bf16.xpose.msra.mxu0 %v2841_v54  ;;  %v2291_v39 = vsub.f32 %v8980_v63, %v2251_v3  ;;  %v11164_v3 = vld [vmem:[#allocation31_spill] sm:$0xff] }
 0x6ce   : > { %v2241_v20 = vpop.xlane.xlu0 %2240  ;;  %v2469_v40 = vmul.f32 %v7144_v4, %v8960_v24  ;;  %v2497_v10 = vpack.c.bf16 %v2471_v34, %v2470_v0 }
 0x6cf   : > { %v2286_v47 = vsub.f32 %v8987_v43, %v2241_v20  ;;  %v2346_v4 = vmul.f32 1.442695, %v2291_v39  ;;  %v11170_v39 = vld [vmem:[#allocation18_spill] sm:$0xff] }
 0x6d0   : > { %v2496_v35 = vpack.c.bf16 %v2469_v40, %v2468_v36  ;;  %v2247_v21 = vpop.xlane.xlu1 %2246 }
 0x6d1   : > { %v2336_v16 = vmul.f32 1.442695, %v2286_v47  ;;  %v7146_v50 = vpop.eup %7145  ;;  %v2289_v47 = vsub.f32 %v8992_v56, %v2247_v21  ;;  %v11165_v21 = vld [vmem:[#allocation28_spill] sm:$0xff] }
 0x6d2   : > { %6152 = vmatprep.mubr.bf16.mxu0 %v2496_v35  ;;  %v2237_v18 = vpop.xlane.xlu0 %2236  ;;  %v7148_v2 = vpop.eup %7147  ;;  %v2474_v43 = vmul.f32 %v7146_v50, %v8968_v62 }
 0x6d3   : > { %7155 = vpow2.f32 %v2336_v16  ;;  %v2284_v48 = vsub.f32 %v8997_v52, %v2237_v18  ;;  %6153 = vmatmul.mubr.bf16.gmra.mrb[88].mxu0 %v2497_v10  ;;  %v7150_v12 = vpop.eup %7149  ;;  %v2472_v57 = vmul.f32 %v7148_v2, %v8950_v58  ;;  %v2342_v10 = vmul.f32 1.442695, %v2289_v47 }
 0x6d4   : > { %v2475_v1 = vmul.f32 %v7150_v12, %v8957_v59  ;;  %v2257_v19 = vpop.xlane.xlu1 %2256 }
 0x6d5   : > { %v7152_v37 = vpop.eup %7151  ;;  %v2332_v24 = vmul.f32 1.442695, %v2284_v48  ;;  %v2294_v34 = vsub.f32 %v9004_v46, %v2257_v19  ;;  %v11169_v19 = vld [vmem:[#allocation39_spill] sm:$0xff] }
 0x6d6   : > { %v2249_v17 = vpop.xlane.xlu0 %2248  ;;  %v2473_v27 = vmul.f32 %v7152_v37, %v8976_v26  ;;  %v2499_v45 = vpack.c.bf16 %v2475_v1, %v2474_v43 }
 0x6d7   : > { %v9114_v41 = vpop.eup %7153  ;;  %7157 = vpow2.f32 %v2332_v24  ;;  %v2290_v8 = vsub.f32 %v9013_v28, %v2249_v17  ;;  %v2352_v20 = vmul.f32 1.442695, %v2294_v34  ;;  %v11173_v34 = vld [vmem:[#allocation21_spill] sm:$0xff] }
 0x6d8   : > { %2398 = vadd.xlane.f32.xlu0 %v9114_v41  ;;  %v2498_v52 = vpack.c.bf16 %v2473_v27, %v2472_v57  ;;  %7159 = vpow2.f32 %v2338_v55  ;;  %v9140_v54 = vpop.permute.xlu1 %2965 }
 0x6d9   : > { %v2344_v42 = vmul.f32 1.442695, %v2290_v8  ;;  %v11166_v8 = vld [vmem:[#allocation35_spill] sm:$0xff] }
 0x6da   : > { %6156 = vmatprep.mubr.bf16.mxu0 %v2498_v52  ;;  %v2245_v33 = vpop.xlane.xlu0 %2244 }
 0x6db   : > { %6157 = vmatmul.mubr.bf16.gmra.mrb[92].mxu0 %v2499_v45  ;;  %v2288_v49 = vsub.f32 %v9019_v31, %v2245_v33  ;;  %7161 = vpow2.f32 %v2344_v42  ;;  %v11159_v45 = vld [vmem:[#allocation23_spill] sm:$0xff]  ;;  %v11160_v33 = vld [vmem:[#allocation45_spill] sm:$0xff] }
 0x6dc   : > { %v11167_v42 = vld [vmem:[#allocation33_spill] sm:$0xff] }
 0x6dd   : > { %v9118_v62 = vpop.eup %7155  ;;  %v2340_v44 = vmul.f32 1.442695, %v2288_v49  ;;  %v11168_v49 = vld [vmem:[#allocation55_spill] sm:$0xff] }
 0x6de   : > { %2400 = vadd.xlane.f32.xlu1 %v9118_v62  ;;  %v2253_v58 = vpop.xlane.xlu0 %2252 }
 0x6df   : > { %7163 = vpow2.f32 %v2340_v44  ;;  %v2292_v50 = vsub.f32 %v9024_v51, %v2253_v58  ;;  %v11161_v58 = vld [vmem:[#allocation27_spill] sm:$0xff]  ;;  %v11171_v44 = vld [vmem:[#allocation60_spill] sm:$0xff] }
 0x6e0   : > { %7165 = vpow2.f32 %v2346_v4  ;;  %v11172_v4 = vld [vmem:[#allocation25_spill] sm:$0xff] }
 0x6e1   : > { %v9121_v26 = vpop.eup %7157  ;;  %7167 = vpow2.f32 %v2352_v20  ;;  %v2348_v56 = vmul.f32 1.442695, %v2292_v50 }
 0x6e2   : > { %2396 = vadd.xlane.f32.xlu1 %v9121_v26  ;;  %v2797_v61 = vpop.permute.xlu0 %2796  ;;  %v9126_v60 = vpop.eup %7159 }
 0x6e3   : > { %6551 = vmatprep.subr.msk.bf16.mxu0 %vm1029_vm0, %v2797_v61  ;;  %v2844_v59 = vsel %vm1029_vm0, %v2797_v61, 0  ;;  %v11162_v61 = vld [vmem:[#allocation24_spill] sm:$0xff] }
 0x6e4   : > { %6207 = vmatpush3.bf16.xpose.msra.mxu0 %v2844_v59  ;;  %v11163_v59 = vld [vmem:[#allocation49_spill] sm:$0xff] }
 0x6e5   : > { %v9143_v36 = vpop.eup %7161 }
 0x6e6   : > { %2402 = vadd.xlane.f32.xlu1 %v9126_v60 }
 0x6e9   : > { %v9147_v63 = vpop.eup %7163 }
 0x6ea   : > { %v9152_v16 = vpop.eup %7165 }
 0x6ee   : > { %2766 = vrot.lane.b32.xlu0 %v11156_v53, %s7723_s26 }
 0x6f7   : > { %2768 = vrot.lane.b32.xlu1 %v11157_v5, %s7723_s26 }
 0x6fb   : > { %2967 = vrot.lane.b32.xlu1 %v11158_v9, %s7723_s26 }
 0x6ff   : > { %2969 = vrot.lane.b32.xlu1 %v8030_v7, %s7723_s26 }
 0x709   : > { %v2259_v28 = vpop.xlane.xlu1 %2258 }
 0x70a   : > { %v2295_v13 = vsub.f32 %v9039_v30, %v2259_v28  ;;  %v11174_v28 = vld [vmem:[#allocation29_spill] sm:$0xff] }
 0x70c   : > { %v2354_v51 = vmul.f32 1.442695, %v2295_v13 }
 0x70d   : > { %v2255_v31 = vpop.xlane.xlu1 %2254  ;;  %2408 = vadd.xlane.f32.xlu0 %v9143_v36 }
 0x70e   : > { %v2293_v40 = vsub.f32 %v9044_v11, %v2255_v31  ;;  %v9156_v11 = vpop.eup %7167 }
 0x710   : > { %v2350_v0 = vmul.f32 1.442695, %v2293_v40 }
 0x711   : > { %v2265_v35 = vpop.xlane.xlu1 %2264  ;;  %2404 = vadd.xlane.f32.xlu0 %v9147_v63 }
 0x712   : > { %7169 = vpow2.f32 %v2350_v0  ;;  %v2298_v46 = vsub.f32 %v9051_v25, %v2265_v35 }
 0x713   : > { %v2261_v48 = vpop.xlane.xlu0 %2260 }
 0x714   : > { %v2360_v18 = vmul.f32 1.442695, %v2298_v46  ;;  %v2296_v24 = vsub.f32 %v9057_v22, %v2261_v48 }
 0x715   : > { %v2267_v2 = vpop.xlane.xlu1 %2266  ;;  %2410 = vadd.xlane.f32.xlu0 %v9152_v16 }
 0x716   : > { %7171 = vpow2.f32 %v2360_v18  ;;  %v2356_v30 = vmul.f32 1.442695, %v2296_v24  ;;  %v2299_v57 = vsub.f32 %v9064_v29, %v2267_v2 }
 0x717   : > { %7173 = vpow2.f32 %v2342_v10 }
 0x718   : > { %7175 = vpow2.f32 %v2348_v56 }
 0x719   : > { %v2263_v12 = vpop.xlane.xlu1 %2262  ;;  %2416 = vadd.xlane.f32.xlu0 %v9156_v11 }
 0x71a   : > { %v2297_v25 = vsub.f32 %v9070_v14, %v2263_v12  ;;  %v2362_v14 = vmul.f32 1.442695, %v2299_v57 }
 0x71c   : > { %v9161_v37 = vpop.eup %7169  ;;  %v2358_v43 = vmul.f32 1.442695, %v2297_v25 }
 0x71d   : > { %2414 = vadd.xlane.f32.xlu0 %v9161_v37 }
 0x71e   : > { %7177 = vpow2.f32 %v2358_v43 }
 0x71f   : > { %7179 = vpow2.f32 %v2354_v51 }
 0x720   : > { %v9165_v17 = vpop.eup %7171  ;;  %7181 = vpow2.f32 %v2356_v30 }
 0x721   : > { %2424 = vadd.xlane.f32.xlu0 %v9165_v17  ;;  %v9169_v27 = vpop.eup %7173  ;;  %7183 = vpow2.f32 %v2362_v14 }
 0x722   : > { %v9172_v55 = vpop.eup %7175 }
 0x723   : > { %2406 = vadd.xlane.f32.xlu1 %v9169_v27 }
 0x727   : > { %2412 = vadd.xlane.f32.xlu1 %v9172_v55 }
 0x728   : > { %v9175_v22 = vpop.eup %7177 }
 0x729   : > { %2422 = vadd.xlane.f32.xlu0 %v9175_v22  ;;  %v9178_v1 = vpop.eup %7179 }
 0x72a   : > { %v9181_v29 = vpop.eup %7181 }
 0x72b   : > { %2418 = vadd.xlane.f32.xlu1 %v9178_v1  ;;  %v9184_v52 = vpop.eup %7183 }
 0x72f   : > { %2420 = vadd.xlane.f32.xlu1 %v9181_v29 }
 0x733   : > { %2426 = vadd.xlane.f32.xlu1 %v9184_v52 }
 0x73f   : > { %2971 = vrot.lane.b32.xlu0 %v11159_v45, %s7723_s26  ;;  %v11213_v45 = vld [vmem:[#allocation43_spill] sm:$0xff] }
 0x743   : > { %2943 = vrot.lane.b32.xlu0 %v11160_v33, %s7723_s26  ;;  %v11208_v33 = vld [vmem:[#allocation36_spill] sm:$0xff] }
 0x744   : > { %2973 = vrot.lane.b32.xlu1 %v11161_v58, %s7723_s26  ;;  %v11211_v58 = vld [vmem:[#allocation41_spill] sm:$0xff] }
 0x747   : > { %2770 = vrot.lane.b32.xlu0 %v11162_v61, %s7723_s26 }
 0x748   : > { %2945 = vrot.lane.b32.xlu1 %v11163_v59, %s7723_s26  ;;  %v11209_v59 = vld [vmem:[#allocation37_spill] sm:$0xff] }
 0x74b   : > { %2774 = vrot.lane.b32.xlu0 %v11164_v3, %s7723_s26 }
 0x74c   : > { %2772 = vrot.lane.b32.xlu1 %v11165_v21, %s7723_s26 }
 0x74f   : > { %2778 = vrot.lane.b32.xlu0 %v11166_v8, %s7723_s26  ;;  %v11212_v8 = vld [vmem:[#allocation46_spill] sm:$0xff] }
 0x750   : > { %2776 = vrot.lane.b32.xlu1 %v11167_v42, %s7723_s26 }
 0x753   : > { %2947 = vrot.lane.b32.xlu0 %v11168_v49, %s7723_s26 }
 0x754   : > { %2780 = vrot.lane.b32.xlu1 %v11169_v19, %s7723_s26  ;;  %v11210_v19 = vld [vmem:[#allocation40_spill] sm:$0xff] }
 0x757   : > { %2951 = vrot.lane.b32.xlu0 %v11170_v39, %s7723_s26 }
 0x758   : > { %2949 = vrot.lane.b32.xlu1 %v11171_v44, %s7723_s26 }
 0x75b   : > { %2955 = vrot.lane.b32.xlu0 %v11172_v4, %s7723_s26 }
 0x75c   : > { %2953 = vrot.lane.b32.xlu1 %v11173_v34, %s7723_s26 }
 0x760   : > { %2957 = vrot.lane.b32.xlu1 %v11174_v28, %s7723_s26 }
 0x765   : > { %v2399_v20 = vpop.xlane.xlu0 %2398 }
 0x766   : > { %7185 = vrcp.f32 %v2399_v20  ;;  %v3000_v20 = vsel %vm1029_vm0, %v9027_v15, 0 }
 0x769   : > { %v2767_v31 = vpop.permute.xlu0 %2766 }
 0x76a   : > { %6208 = vmatprep.mubr.msk.bf16.mxu0 %vm1029_vm0, %v2767_v31 }
 0x76b   : > { %v2401_v40 = vpop.xlane.xlu1 %2400 }
 0x76f   : > { %v9220_v47 = vpop.f32.mrb[80].mxu0  ;;  %v2397_v0 = vpop.xlane.xlu1 %2396 }
 0x770   : > { %11175 = vst [vmem:[#allocation58_spill] sm:$0xff] %v9220_v47  ;;  %7187 = vrcp.f32 %v2397_v0  ;;  %v9222_v35 = vpop.f32.mrb[81].mxu0  ;;  %v7186_v13 = vpop.eup %7185 }
 0x771   : > { %11176 = vst [vmem:[#allocation38_spill] sm:$0xff] %v9222_v35  ;;  %v9224_v46 = vpop.f32.mrb[82].mxu0  ;;  %7189 = vrcp.f32 %v2401_v40  ;;  %v2477_v25 = vmul.f32 %v7186_v13, %v9114_v41  ;;  %v3003_v41 = vsel %vm1029_vm0, %v9046_v32, 0  ;;  %v9464_v35 = vld [vmem:[#allocation8 + $0x70] sm:$0xff] }
 0x772   : > { %11177 = vst [vmem:[#allocation17_spill] sm:$0xff] %v9224_v46  ;;  %v9228_v50 = vpop.f32.mrb[83].mxu0  ;;  %v9474_v46 = vld [vmem:[#allocation8 + $0x78] sm:$0xff] }
 0x773   : > { %11178 = vst [vmem:[#allocation20_spill] sm:$0xff] %v9228_v50  ;;  %v2403_v2 = vpop.xlane.xlu1 %2402 }
 0x774   : > { %7191 = vrcp.f32 %v2403_v2 }
 0x777   : > { %v2769_v56 = vpop.permute.xlu1 %2768 }
 0x778   : > { %6209 = vmatmul.mubr.msk.bf16.vlgmr.msra.gmra.mrb[96].mxu0 %vm1029_vm0, %v2769_v56 }
 0x77a   : > { %v7188_v48 = vpop.eup %7187 }
 0x77b   : > { %v2476_v12 = vmul.f32 %v7188_v48, %v9121_v26  ;;  %v7190_v51 = vpop.eup %7189  ;;  %v2968_v40 = vpop.permute.xlu1 %2967 }
 0x77c   : > { %v2478_v30 = vmul.f32 %v7190_v51, %v9118_v62  ;;  %v3006_v62 = vsel %vm1029_vm0, %v9059_v38, 0  ;;  %v3012_v48 = vsel %vm1029_vm0, %v2968_v40, 0 }
 0x77d   : > { %v2500_v24 = vpack.c.bf16 %v2477_v25, %v2476_v12 }
 0x77e   : > { %v7192_v43 = vpop.eup %7191 }
 0x77f   : > { %v2479_v57 = vmul.f32 %v7192_v43, %v9126_v60  ;;  %6176 = vmatprep.mubr.bf16.mxu1 %v2500_v24  ;;  %v2970_v12 = vpop.permute.xlu1 %2969 }
 0x781   : > { %v2501_v14 = vpack.c.bf16 %v2479_v57, %v2478_v30 }
 0x783   : > { %6177 = vmatmul.mubr.bf16.vlgmr.msra.gmra.mrb[112].mxu1 %v2501_v14  ;;  %v3015_v14 = vsel %vm1029_vm0, %v2970_v12, 0 }
 0x784   : > { %6225 = vmatpush3.bf16.xpose.msra.mxu1 %v3000_v20 }
 0x785   : > { %6553 = vmatprep.subr.msk.bf16.mxu1 %vm1029_vm0, %v9046_v32  ;;  %v3009_v32 = vsel %vm1029_vm0, %v9140_v54, 0 }
 0x78c   : > { %6227 = vmatpush3.bf16.xpose.msra.mxu1 %v3003_v41 }
 0x78d   : > { %6554 = vmatprep.subr.msk.bf16.mxu1 %vm1029_vm0, %v9059_v38 }
 0x794   : > { %6229 = vmatpush3.bf16.xpose.msra.mxu1 %v3006_v62 }
 0x795   : > { %6555 = vmatprep.subr.msk.bf16.mxu1 %vm1029_vm0, %v9140_v54 }
 0x799   : > { %v9249_v26 = vpop.f32.mrb[84].mxu0 }
 0x79a   : > { %11179 = vst [vmem:[#allocation16_spill] sm:$0xff] %v9249_v26  ;;  %v9251_v15 = vpop.f32.mrb[85].mxu0  ;;  %v2409_v60 = vpop.xlane.xlu0 %2408 }
 0x79b   : > { %11180 = vst [vmem:[#allocation24_spill] sm:$0xff] %v9251_v15  ;;  %v9253_v31 = vpop.f32.mrb[86].mxu0 }
 0x79c   : > { %11181 = vst [vmem:[#allocation31_spill] sm:$0xff] %v9253_v31  ;;  %6231 = vmatpush3.bf16.xpose.msra.mxu1 %v3009_v32  ;;  %v9259_v38 = vpop.f32.mrb[87].mxu0 }
 0x79d   : > { %11182 = vst [vmem:[#allocation28_spill] sm:$0xff] %v9259_v38  ;;  %6556 = vmatprep.subr.msk.bf16.mxu1 %vm1029_vm0, %v2968_v40  ;;  %v9454_v38 = vld [vmem:[#allocation8 + $0x68] sm:$0xff] }
 0x79e   : > { %v2405_v56 = vpop.xlane.xlu0 %2404  ;;  %11207 = vst [vmem:[#allocation117_spill] sm:$0xff] %v9454_v38 }
 0x7a2   : > { %v2411_v13 = vpop.xlane.xlu0 %2410 }
 0x7a3   : > { %7193 = vrcp.f32 %v2411_v13 }
 0x7a4   : > { %6233 = vmatpush3.bf16.xpose.msra.mxu1 %v3012_v48  ;;  %7195 = vrcp.f32 %v2405_v56 }
 0x7a5   : > { %6557 = vmatprep.subr.msk.bf16.mxu1 %vm1029_vm0, %v2970_v12  ;;  %7197 = vrcp.f32 %v2409_v60 }
 0x7a6   : > { %v9266_v54 = vpop.f32.mrb[88].mxu0  ;;  %v2417_v25 = vpop.xlane.xlu0 %2416 }
 0x7a7   : > { %11183 = vst [vmem:[#allocation33_spill] sm:$0xff] %v9266_v54  ;;  %v9268_v51 = vpop.f32.mrb[89].mxu0  ;;  %v9448_v54 = vld [vmem:[#allocation8 + $0x60] sm:$0xff] }
 0x7a8   : > { %11184 = vst [vmem:[#allocation94_spill] sm:$0xff] %v9268_v51  ;;  %v9270_v24 = vpop.f32.mrb[90].mxu0 }
 0x7a9   : > { %11185 = vst [vmem:[#allocation95_spill] sm:$0xff] %v9270_v24  ;;  %v9274_v30 = vpop.f32.mrb[91].mxu0 }
 0x7aa   : > { %11186 = vst [vmem:[#allocation96_spill] sm:$0xff] %v9274_v30  ;;  %v2415_v20 = vpop.xlane.xlu0 %2414 }
 0x7ac   : > { %6235 = vmatpush3.bf16.xpose.msra.mxu1 %v3015_v14 }
 0x7ad   : > { %v7194_v14 = vpop.eup %7193 }
 0x7ae   : > { %v9279_v41 = vpop.f32.mrb[92].mxu0  ;;  %v2425_v57 = vpop.xlane.xlu0 %2424  ;;  %v2483_v48 = vmul.f32 %v7194_v14, %v9152_v16 }
 0x7af   : > { %11187 = vst [vmem:[#allocation97_spill] sm:$0xff] %v9279_v41  ;;  %v9281_v62 = vpop.f32.mrb[93].mxu0  ;;  %v7196_v2 = vpop.eup %7195 }
 0x7b0   : > { %11188 = vst [vmem:[#allocation98_spill] sm:$0xff] %v9281_v62  ;;  %v9283_v32 = vpop.f32.mrb[94].mxu0  ;;  %v2407_v40 = vpop.xlane.xlu1 %2406 }
 0x7b1   : > { %11189 = vst [vmem:[#allocation99_spill] sm:$0xff] %v9283_v32  ;;  %7199 = vrcp.f32 %v2407_v40  ;;  %v9287_v43 = vpop.f32.mrb[95].mxu0  ;;  %v7198_v0 = vpop.eup %7197 }
 0x7b2   : > { %11190 = vst [vmem:[#allocation100_spill] sm:$0xff] %v9287_v43  ;;  %7201 = vrcp.f32 %v2415_v20  ;;  %v2480_v20 = vmul.f32 %v7196_v2, %v9147_v63 }
 0x7b4   : > { %v2413_v13 = vpop.xlane.xlu1 %2412 }
 0x7b5   : > { %7203 = vrcp.f32 %v2413_v13 }
 0x7b6   : > { %v2423_v56 = vpop.xlane.xlu0 %2422  ;;  %7205 = vrcp.f32 %v2417_v25 }
 0x7b8   : > { %v2419_v60 = vpop.xlane.xlu1 %2418 }
 0x7b9   : > { %7207 = vrcp.f32 %v2419_v60  ;;  %v2482_v60 = vmul.f32 %v7198_v0, %v9143_v36 }
 0x7ba   : > { %v2972_v18 = vpop.permute.xlu0 %2971  ;;  %7209 = vrcp.f32 %v2423_v56 }
 0x7bb   : > { %v7200_v10 = vpop.eup %7199  ;;  %6558 = vmatprep.subr.msk.bf16.mxu1 %vm1029_vm0, %v2972_v18  ;;  %v3018_v40 = vsel %vm1029_vm0, %v2972_v18, 0  ;;  %v2503_v56 = vpack.c.bf16 %v2483_v48, %v2482_v60 }
 0x7bc   : > { %v2421_v12 = vpop.xlane.xlu1 %2420  ;;  %6237 = vmatpush3.bf16.xpose.msra.mxu1 %v3018_v40  ;;  %v2481_v25 = vmul.f32 %v7200_v10, %v9169_v27  ;;  %v7202_v13 = vpop.eup %7201 }
 0x7bd   : > { %7211 = vrcp.f32 %v2421_v12  ;;  %v2485_v16 = vmul.f32 %v7202_v13, %v9161_v37 }
 0x7be   : > { %v2944_v62 = vpop.permute.xlu0 %2943  ;;  %v2502_v43 = vpack.c.bf16 %v2481_v25, %v2480_v20  ;;  %7213 = vrcp.f32 %v2425_v57 }
 0x7bf   : > { %v7204_v41 = vpop.eup %7203 }
 0x7c0   : > { %v2427_v32 = vpop.xlane.xlu1 %2426  ;;  %6180 = vmatprep.mubr.bf16.mxu1 %v2502_v43  ;;  %v2484_v18 = vmul.f32 %v7204_v41, %v9172_v55  ;;  %v7206_v14 = vpop.eup %7205 }
 0x7c1   : > { %7215 = vrcp.f32 %v2427_v32  ;;  %6181 = vmatmul.mubr.bf16.gmra.mrb[116].mxu1 %v2503_v56  ;;  %v2486_v0 = vmul.f32 %v7206_v14, %v9156_v11 }
 0x7c2   : > { %v2771_v63 = vpop.permute.xlu0 %2770  ;;  %v2504_v27 = vpack.c.bf16 %v2485_v16, %v2484_v18 }
 0x7c3   : > { %v7208_v10 = vpop.eup %7207  ;;  %6212 = vmatprep.mubr.msk.bf16.mxu0 %vm1029_vm0, %v2771_v63 }
 0x7c4   : > { %v2974_v36 = vpop.permute.xlu1 %2973  ;;  %6184 = vmatprep.mubr.bf16.mxu1 %v2504_v27  ;;  %v2487_v2 = vmul.f32 %v7208_v10, %v9178_v1  ;;  %v7210_v57 = vpop.eup %7209  ;;  %v9321_v10 = vld [vmem:[#allocation8] sm:$0xff] }
 0x7c5   : > { %6559 = vmatprep.subr.msk.bf16.mxu1 %vm1029_vm0, %v2974_v36  ;;  %v3021_v55 = vsel %vm1029_vm0, %v2974_v36, 0  ;;  %v2489_v48 = vmul.f32 %v7210_v57, %v9175_v22  ;;  %v9326_v57 = vld [vmem:[#allocation8 + $0x8] sm:$0xff] }
 0x7c6   : > { %6239 = vmatpush3.bf16.xpose.msra.mxu1 %v3021_v55  ;;  %v2505_v37 = vpack.c.bf16 %v2487_v2, %v2486_v0  ;;  %v2775_v13 = vpop.permute.xlu0 %2774 }
 0x7c7   : > { %v7212_v43 = vpop.eup %7211 }
 0x7c8   : > { %v2946_v41 = vpop.permute.xlu1 %2945  ;;  %v2488_v32 = vmul.f32 %v7212_v43, %v9181_v29  ;;  %v7214_v12 = vpop.eup %7213 }
 0x7c9   : > { %6185 = vmatmul.mubr.bf16.gmra.mrb[120].mxu1 %v2505_v37  ;;  %v2490_v1 = vmul.f32 %v7214_v12, %v9165_v17  ;;  %v9332_v37 = vld [vmem:[#allocation8 + $0x10] sm:$0xff] }
 0x7ca   : > { %v2506_v40 = vpack.c.bf16 %v2489_v48, %v2488_v32  ;;  %v2779_v22 = vpop.permute.xlu0 %2778 }
 0x7cb   : > { %v7216_v20 = vpop.eup %7215 }
 0x7cc   : > { %v2773_v11 = vpop.permute.xlu1 %2772  ;;  %6188 = vmatprep.mubr.bf16.mxu1 %v2506_v40  ;;  %v2491_v25 = vmul.f32 %v7216_v20, %v9184_v52 }
 0x7cd   : > { %6213 = vmatmul.mubr.msk.bf16.gmra.mrb[100].mxu0 %vm1029_vm0, %v2773_v11 }
 0x7ce   : > { %6216 = vmatprep.mubr.msk.bf16.mxu0 %vm1029_vm0, %v2775_v13  ;;  %v2507_v60 = vpack.c.bf16 %v2491_v25, %v2490_v1  ;;  %v2948_v56 = vpop.permute.xlu0 %2947  ;;  %v9386_v1 = vld [vmem:[#allocation8 + $0x28] sm:$0xff] }
 0x7d0   : > { %v2777_v29 = vpop.permute.xlu1 %2776 }
 0x7d1   : > { %6189 = vmatmul.mubr.bf16.gmra.mrb[124].mxu1 %v2507_v60 }
 0x7d2   : > { %6240 = vmatprep.mubr.msk.bf16.mxu1 %vm1029_vm0, %v2944_v62  ;;  %v2952_v18 = vpop.permute.xlu0 %2951 }
 0x7d4   : > { %v2781_v17 = vpop.permute.xlu1 %2780 }
 0x7d5   : > { %6217 = vmatmul.mubr.msk.bf16.gmra.mrb[104].mxu0 %vm1029_vm0, %v2777_v29 }
 0x7d6   : > { %6220 = vmatprep.mubr.msk.bf16.mxu0 %vm1029_vm0, %v2779_v22  ;;  %v2956_v16 = vpop.permute.xlu0 %2955 }
 0x7d8   : > { %v2950_v52 = vpop.permute.xlu1 %2949 }
 0x7d9   : > { %6241 = vmatmul.mubr.msk.bf16.vlgmr.msra.gmra.mrb[128].mxu1 %vm1029_vm0, %v2946_v41  ;;  %v9339_v41 = vld [vmem:[#allocation8 + $0x18] sm:$0xff] }
 0x7da   : > { %6244 = vmatprep.mubr.msk.bf16.mxu1 %vm1029_vm0, %v2948_v56 }
 0x7dc   : > { %v2954_v62 = vpop.permute.xlu1 %2953 }
 0x7dd   : > { %6221 = vmatmul.mubr.msk.bf16.gmra.mrb[108].mxu0 %vm1029_vm0, %v2781_v17 }
 0x7e0   : > { %v2958_v14 = vpop.permute.xlu1 %2957 }
 0x7e1   : > { %6245 = vmatmul.mubr.msk.bf16.gmra.mrb[132].mxu1 %vm1029_vm0, %v2950_v52 }
 0x7e2   : > { %6248 = vmatprep.mubr.msk.bf16.mxu1 %vm1029_vm0, %v2952_v18 }
 0x7e9   : > { %6249 = vmatmul.mubr.msk.bf16.gmra.mrb[136].mxu1 %vm1029_vm0, %v2954_v62 }
 0x7ea   : > { %6252 = vmatprep.mubr.msk.bf16.mxu1 %vm1029_vm0, %v2956_v16 }
 0x7f1   : > { %6253 = vmatmul.mubr.msk.bf16.gmra.mrb[140].mxu1 %vm1029_vm0, %v2958_v14  ;;  %v9396_v14 = vld [vmem:[#allocation8 + $0x30] sm:$0xff] }
 0x84b   : > { %v6210_v63 = vpop.f32.mrb[96].mxu0 }
 0x84c   : > { %v2880_v27 = vpop.f32.mrb[97].mxu0  ;;  %v9335_v43 = vadd.f32 %v9332_v37, %v6210_v63 }
 0x84d   : > { %v9324_v36 = vadd.f32 %v9321_v10, %v2880_v27  ;;  %v6211_v0 = vpop.f32.mrb[98].mxu0 }
 0x84e   : > { %v2883_v2 = vpop.f32.mrb[99].mxu0  ;;  %v9342_v32 = vadd.f32 %v9339_v41, %v6211_v0  ;;  %v9381_v0 = vld [vmem:[#allocation8 + $0x20] sm:$0xff] }
 0x84f   : > { %v9329_v55 = vadd.f32 %v9326_v57, %v2883_v2  ;;  %3120 = vmax.xlane.f32.xlu0 %v9324_v36 }
 0x851   : > { %3122 = vmax.xlane.f32.xlu1 %v9329_v55 }
 0x853   : > { %3124 = vmax.xlane.f32.xlu0 %v9335_v43 }
 0x856   : > { %v9344_v48 = vpop.f32.mrb[112].mxu1 }
 0x857   : > { %11191 = vst [vmem:[#allocation101_spill] sm:$0xff] %v9344_v48  ;;  %v9346_v12 = vpop.f32.mrb[113].mxu1  ;;  %3126 = vmax.xlane.f32.xlu0 %v9342_v32 }
 0x858   : > { %11192 = vst [vmem:[#allocation102_spill] sm:$0xff] %v9346_v12  ;;  %v9349_v40 = vpop.f32.mrb[114].mxu1 }
 0x859   : > { %11193 = vst [vmem:[#allocation103_spill] sm:$0xff] %v9349_v40  ;;  %v9353_v11 = vpop.f32.mrb[115].mxu1  ;;  %v9442_v40 = vld [vmem:[#allocation8 + $0x58] sm:$0xff] }
 0x85a   : > { %11194 = vst [vmem:[#allocation104_spill] sm:$0xff] %v9353_v11 }
 0x894   : > { %v9357_v25 = vpop.f32.mrb[116].mxu1 }
 0x895   : > { %11195 = vst [vmem:[#allocation105_spill] sm:$0xff] %v9357_v25  ;;  %v9359_v13 = vpop.f32.mrb[117].mxu1 }
 0x896   : > { %11196 = vst [vmem:[#allocation106_spill] sm:$0xff] %v9359_v13  ;;  %v9361_v60 = vpop.f32.mrb[118].mxu1 }
 0x897   : > { %11197 = vst [vmem:[#allocation107_spill] sm:$0xff] %v9361_v60  ;;  %v9365_v29 = vpop.f32.mrb[119].mxu1  ;;  %v9416_v60 = vld [vmem:[#allocation8 + $0x40] sm:$0xff] }
 0x898   : > { %11198 = vst [vmem:[#allocation108_spill] sm:$0xff] %v9365_v29 }
 0x89c   : > { %v9369_v17 = vpop.f32.mrb[120].mxu1 }
 0x89d   : > { %11199 = vst [vmem:[#allocation109_spill] sm:$0xff] %v9369_v17  ;;  %v9371_v52 = vpop.f32.mrb[121].mxu1 }
 0x89e   : > { %11200 = vst [vmem:[#allocation110_spill] sm:$0xff] %v9371_v52  ;;  %v9373_v18 = vpop.f32.mrb[122].mxu1 }
 0x89f   : > { %11201 = vst [vmem:[#allocation111_spill] sm:$0xff] %v9373_v18  ;;  %v9377_v16 = vpop.f32.mrb[123].mxu1  ;;  %v9408_v18 = vld [vmem:[#allocation8 + $0x38] sm:$0xff] }
 0x8a0   : > { %11202 = vst [vmem:[#allocation112_spill] sm:$0xff] %v9377_v16  ;;  %v6214_v63 = vpop.f32.mrb[100].mxu0 }
 0x8a1   : > { %v2896_v27 = vpop.f32.mrb[101].mxu0  ;;  %v9399_v52 = vadd.f32 %v9396_v14, %v6214_v63 }
 0x8a2   : > { %v9384_v2 = vadd.f32 %v9381_v0, %v2896_v27  ;;  %v6215_v56 = vpop.f32.mrb[102].mxu0 }
 0x8a3   : > { %v2899_v22 = vpop.f32.mrb[103].mxu0  ;;  %v9411_v13 = vadd.f32 %v9408_v18, %v6215_v56 }
 0x8a4   : > { %v9389_v20 = vadd.f32 %v9386_v1, %v2899_v22  ;;  %v9391_v62 = vpop.f32.mrb[124].mxu1  ;;  %3128 = vmax.xlane.f32.xlu0 %v9384_v2 }
 0x8a5   : > { %11203 = vst [vmem:[#allocation113_spill] sm:$0xff] %v9391_v62  ;;  %v9394_v17 = vpop.f32.mrb[125].mxu1 }
 0x8a6   : > { %11204 = vst [vmem:[#allocation114_spill] sm:$0xff] %v9394_v17  ;;  %v9401_v27 = vpop.f32.mrb[126].mxu1  ;;  %3130 = vmax.xlane.f32.xlu1 %v9389_v20  ;;  %v9432_v17 = vld [vmem:[#allocation8 + $0x50] sm:$0xff] }
 0x8a7   : > { %11205 = vst [vmem:[#allocation115_spill] sm:$0xff] %v9401_v27  ;;  %v9406_v22 = vpop.f32.mrb[127].mxu1  ;;  %v9422_v27 = vld [vmem:[#allocation8 + $0x48] sm:$0xff] }
 0x8a8   : > { %11206 = vst [vmem:[#allocation116_spill] sm:$0xff] %v9406_v22  ;;  %3132 = vmax.xlane.f32.xlu0 %v9399_v52  ;;  %v6218_v63 = vpop.f32.mrb[104].mxu0 }
 0x8a9   : > { %v2912_v25 = vpop.f32.mrb[105].mxu0 }
 0x8aa   : > { %v9419_v12 = vadd.f32 %v9416_v60, %v2912_v25  ;;  %3134 = vmax.xlane.f32.xlu1 %v9411_v13  ;;  %v6219_v16 = vpop.f32.mrb[106].mxu0  ;;  %v9435_v25 = vadd.f32 %v9432_v17, %v6218_v63 }
 0x8ab   : > { %v2915_v62 = vpop.f32.mrb[107].mxu0 }
 0x8ac   : > { %v9425_v56 = vadd.f32 %v9422_v27, %v2915_v62  ;;  %v9427_v11 = vpop.f32.mrb[128].mxu1  ;;  %3136 = vmax.xlane.f32.xlu0 %v9419_v12  ;;  %v9445_v62 = vadd.f32 %v9442_v40, %v6219_v16 }
 0x8ad   : > { %v9430_v29 = vpop.f32.mrb[129].mxu1 }
 0x8ae   : > { %v9437_v22 = vpop.f32.mrb[130].mxu1  ;;  %3138 = vmax.xlane.f32.xlu1 %v9425_v56 }
 0x8af   : > { %v9440_v48 = vpop.f32.mrb[131].mxu1 }
 0x8b0   : > { %3140 = vmax.xlane.f32.xlu0 %v9435_v25  ;;  %v6222_v51 = vpop.f32.mrb[108].mxu0 }
 0x8b1   : > { %v2928_v30 = vpop.f32.mrb[109].mxu0 }
 0x8b2   : > { %v9451_v63 = vadd.f32 %v9448_v54, %v2928_v30  ;;  %3142 = vmax.xlane.f32.xlu1 %v9445_v62  ;;  %v6223_v24 = vpop.f32.mrb[110].mxu0  ;;  %v9467_v30 = vadd.f32 %v9464_v35, %v6222_v51 }
 0x8b3   : > { %v2931_v15 = vpop.f32.mrb[111].mxu0 }
 0x8b4   : > { %v9457_v26 = vadd.f32 %v9454_v38, %v2931_v15  ;;  %3144 = vmax.xlane.f32.xlu0 %v9451_v63  ;;  %v9460_v16 = vpop.f32.mrb[132].mxu1  ;;  %v9477_v15 = vadd.f32 %v9474_v46, %v6223_v24  ;;  %v11214_v38 = vld [vmem:[#allocation50_spill] sm:$0xff] }
 0x8b5   : > { %v9462_v31 = vpop.f32.mrb[133].mxu1 }
 0x8b6   : > { %3146 = vmax.xlane.f32.xlu1 %v9457_v26  ;;  %v9470_v50 = vpop.f32.mrb[134].mxu1 }
 0x8b7   : > { %v9472_v47 = vpop.f32.mrb[135].mxu1 }
 0x8b8   : > { %3148 = vmax.xlane.f32.xlu0 %v9467_v30 }
 0x8ba   : > { %3150 = vmax.xlane.f32.xlu1 %v9477_v15 }
 0x8bc   : > { %v9481_v4 = vpop.f32.mrb[136].mxu1 }
 0x8bd   : > { %v9483_v28 = vpop.f32.mrb[137].mxu1 }
 0x8be   : > { %v9485_v51 = vpop.f32.mrb[138].mxu1 }
 0x8bf   : > { %v9487_v39 = vpop.f32.mrb[139].mxu1 }
 0x8c4   : > { %v9489_v34 = vpop.f32.mrb[140].mxu1 }
 0x8c5   : > { %v9491_v49 = vpop.f32.mrb[141].mxu1 }
 0x8c6   : > { %v9493_v44 = vpop.f32.mrb[142].mxu1 }
 0x8c7   : > { %v9495_v24 = vpop.f32.mrb[143].mxu1 }
 0x8cb   : > { %3426 = vrot.lane.b32.xlu1 %v11208_v33, %s7723_s26  ;;  %v11215_v33 = vld [vmem:[#allocation42_spill] sm:$0xff] }
 0x8ce   : > { %3424 = vrot.lane.b32.xlu0 %v11209_v59, %s7723_s26  ;;  %v11216_v59 = vld [vmem:[#allocation52_spill] sm:$0xff] }
 0x8cf   : > { %3430 = vrot.lane.b32.xlu1 %v11210_v19, %s7723_s26  ;;  %v11217_v19 = vld [vmem:[#allocation47_spill] sm:$0xff] }
 0x8d2   : > { %3428 = vrot.lane.b32.xlu0 %v11211_v58, %s7723_s26  ;;  %v11218_v58 = vld [vmem:[#allocation56_spill] sm:$0xff] }
 0x8d3   : > { %3438 = vrot.lane.b32.xlu1 %v11212_v8, %s7723_s26  ;;  %v11219_v8 = vld [vmem:[#allocation51_spill] sm:$0xff] }
 0x8d6   : > { %3432 = vrot.lane.b32.xlu0 %v11213_v45, %s7723_s26  ;;  %v11220_v45 = vld [vmem:[#allocation22_spill] sm:$0xff] }
 0x8d7   : > { %3547 = vrot.lane.b32.xlu1 %v11214_v38, %s7723_s26  ;;  %v11221_v38 = vld [vmem:[#allocation15_spill] sm:$0xff] }
 0x8da   : > { %3434 = vrot.lane.b32.xlu0 %v11215_v33, %s7723_s26  ;;  %v11222_v33 = vld [vmem:[#allocation61_spill] sm:$0xff] }
 0x8db   : > { %3551 = vrot.lane.b32.xlu1 %v11216_v59, %s7723_s26  ;;  %v11223_v59 = vld [vmem:[#allocation53_spill] sm:$0xff] }
 0x8de   : > { %3436 = vrot.lane.b32.xlu0 %v11217_v19, %s7723_s26  ;;  %v11224_v19 = vld [vmem:[#allocation26_spill] sm:$0xff] }
 0x8df   : > { %3555 = vrot.lane.b32.xlu1 %v11218_v58, %s7723_s26  ;;  %v11225_v58 = vld [vmem:[#allocation19_spill] sm:$0xff] }
 0x8e2   : > { %3545 = vrot.lane.b32.xlu0 %v11219_v8, %s7723_s26  ;;  %v11226_v8 = vld [vmem:[#allocation44_spill] sm:$0xff] }
 0x8e3   : > { %3686 = vrot.lane.b32.xlu1 %v11220_v45, %s7724_s14  ;;  %v11227_v45 = vld [vmem:[#allocation57_spill] sm:$0xff] }
 0x8e6   : > { %3682 = vrot.lane.b32.xlu0 %v11221_v38, %s7724_s14  ;;  %v11228_v38 = vld [vmem:[#allocation32_spill] sm:$0xff] }
 0x8e7   : > { %3557 = vrot.lane.b32.xlu1 %v11222_v33, %s7723_s26  ;;  %v11229_v33 = vld [vmem:[#allocation59_spill] sm:$0xff] }
 0x8ea   : > { %3549 = vrot.lane.b32.xlu0 %v11223_v59, %s7723_s26  ;;  %v11230_v59 = vld [vmem:[#allocation48_spill] sm:$0xff] }
 0x8eb   : > { %3688 = vrot.lane.b32.xlu1 %v11224_v19, %s7724_s14  ;;  %v11231_v19 = vld [vmem:[#allocation30_spill] sm:$0xff] }
 0x8ee   : > { %3684 = vrot.lane.b32.xlu0 %v11225_v58, %s7724_s14  ;;  %v11232_v58 = vld [vmem:[#allocation54_spill] sm:$0xff] }
 0x8ef   : > { %3859 = vrot.lane.b32.xlu1 %v11226_v8, %s7724_s14  ;;  %v11233_v8 = vld [vmem:[#allocation34_spill] sm:$0xff] }
 0x8f2   : > { %3553 = vrot.lane.b32.xlu0 %v11227_v45, %s7723_s26 }
 0x8f3   : > { %3692 = vrot.lane.b32.xlu1 %v11228_v38, %s7724_s14 }
 0x8f6   : > { %3559 = vrot.lane.b32.xlu0 %v11229_v33, %s7723_s26 }
 0x8f7   : > { %3861 = vrot.lane.b32.xlu1 %v11230_v59, %s7724_s14  ;;  %v3123_v59 = vpop.xlane.xlu1 %3122 }
 0x8f8   : > { %v3185_v38 = vsub.f32 %v9329_v55, %v3123_v59 }
 0x8fa   : > { %3690 = vrot.lane.b32.xlu0 %v11231_v19, %s7724_s14  ;;  %v3218_v19 = vmul.f32 1.442695, %v3185_v38 }
 0x8fb   : > { %3863 = vrot.lane.b32.xlu1 %v11232_v58, %s7724_s14 }
 0x8fe   : > { %3694 = vrot.lane.b32.xlu0 %v11233_v8, %s7724_s14 }
 0x8ff   : > { %3865 = vrot.lane.b32.xlu1 %v11154_v6, %s7724_s14  ;;  %v3121_v6 = vpop.xlane.xlu0 %3120 }
 0x902   : > { %3696 = vrot.lane.b32.xlu0 %v11155_v23, %s7724_s14  ;;  %v3184_v23 = vsub.f32 %v9324_v36, %v3121_v6 }
 0x903   : > { %3668 = vrot.lane.b32.xlu1 %v11157_v5, %s7724_s14 }
 0x904   : > { %v3216_v5 = vmul.f32 1.442695, %v3184_v23 }
 0x906   : > { %3666 = vrot.lane.b32.xlu0 %v11156_v53, %s7724_s14  ;;  %v3125_v53 = vpop.xlane.xlu0 %3124  ;;  %7217 = vpow2.f32 %v3216_v5 }
 0x907   : > { %3867 = vrot.lane.b32.xlu1 %v11158_v9, %s7724_s14  ;;  %v3186_v9 = vsub.f32 %v9335_v43, %v3125_v53  ;;  %7219 = vpow2.f32 %v3218_v19 }
 0x90a   : > { %3672 = vrot.lane.b32.xlu0 %v11165_v21, %s7724_s14  ;;  %v3127_v58 = vpop.xlane.xlu0 %3126  ;;  %v3220_v21 = vmul.f32 1.442695, %v3186_v9 }
 0x90b   : > { %3670 = vrot.lane.b32.xlu1 %v11162_v61, %s7724_s14  ;;  %v3187_v61 = vsub.f32 %v9342_v32, %v3127_v58 }
 0x90c   : > { %7221 = vpow2.f32 %v3220_v21 }
 0x90f   : > { %3869 = vrot.lane.b32.xlu1 %v8030_v7, %s7724_s14  ;;  %v3222_v7 = vmul.f32 1.442695, %v3187_v61 }
 0x910   : > { %v9569_v8 = vpop.eup %7217 }
 0x911   : > { %v9572_v36 = vpop.eup %7219  ;;  %7223 = vpow2.f32 %v3222_v7 }
 0x916   : > { %v9575_v6 = vpop.eup %7221 }
 0x91b   : > { %v9580_v5 = vpop.eup %7223 }
 0x929   : > { %3280 = vadd.xlane.f32.xlu0 %v9569_v8 }
 0x92d   : > { %3282 = vadd.xlane.f32.xlu0 %v9572_v36 }
 0x931   : > { %v3129_v55 = vpop.xlane.xlu0 %3128 }
 0x932   : > { %v3188_v32 = vsub.f32 %v9384_v2, %v3129_v55 }
 0x933   : > { %v3131_v43 = vpop.xlane.xlu1 %3130  ;;  %3284 = vadd.xlane.f32.xlu1 %v9575_v6 }
 0x934   : > { %v3189_v23 = vsub.f32 %v9389_v20, %v3131_v43  ;;  %v3224_v58 = vmul.f32 1.442695, %v3188_v32 }
 0x935   : > { %v3133_v59 = vpop.xlane.xlu0 %3132 }
 0x936   : > { %v3226_v38 = vmul.f32 1.442695, %v3189_v23  ;;  %v3190_v53 = vsub.f32 %v9399_v52, %v3133_v59 }
 0x937   : > { %v3135_v19 = vpop.xlane.xlu1 %3134  ;;  %3286 = vadd.xlane.f32.xlu1 %v9580_v5 }
 0x938   : > { %7225 = vpow2.f32 %v3226_v38  ;;  %v3228_v9 = vmul.f32 1.442695, %v3190_v53  ;;  %v3191_v61 = vsub.f32 %v9411_v13, %v3135_v19 }
 0x939   : > { %v3137_v21 = vpop.xlane.xlu0 %3136 }
 0x93a   : > { %7227 = vpow2.f32 %v3228_v9  ;;  %v3192_v20 = vsub.f32 %v9419_v12, %v3137_v21  ;;  %v3230_v43 = vmul.f32 1.442695, %v3191_v61 }
 0x93b   : > { %v3139_v7 = vpop.xlane.xlu1 %3138  ;;  %7229 = vpow2.f32 %v3224_v58 }
 0x93c   : > { %v3232_v2 = vmul.f32 1.442695, %v3192_v20  ;;  %v3193_v9 = vsub.f32 %v9425_v56, %v3139_v7 }
 0x93d   : > { %v3141_v55 = vpop.xlane.xlu0 %3140 }
 0x93e   : > { %7231 = vpow2.f32 %v3232_v2  ;;  %v3194_v52 = vsub.f32 %v9435_v25, %v3141_v55  ;;  %v3234_v20 = vmul.f32 1.442695, %v3193_v9 }
 0x93f   : > { %v3143_v23 = vpop.xlane.xlu1 %3142  ;;  %7233 = vpow2.f32 %v3230_v43 }
 0x940   : > { %v3236_v59 = vmul.f32 1.442695, %v3194_v52  ;;  %v3195_v32 = vsub.f32 %v9445_v62, %v3143_v23 }
 0x941   : > { %v3145_v33 = vpop.xlane.xlu0 %3144 }
 0x942   : > { %v9587_v38 = vpop.eup %7225  ;;  %v3196_v13 = vsub.f32 %v9451_v63, %v3145_v33  ;;  %7235 = vpow2.f32 %v3236_v59  ;;  %v3238_v58 = vmul.f32 1.442695, %v3195_v32 }
 0x943   : > { %v3147_v53 = vpop.xlane.xlu1 %3146  ;;  %3290 = vadd.xlane.f32.xlu1 %v9587_v38 }
 0x944   : > { %v9592_v12 = vpop.eup %7227  ;;  %v3240_v19 = vmul.f32 1.442695, %v3196_v13  ;;  %v3197_v43 = vsub.f32 %v9457_v26, %v3147_v53 }
 0x945   : > { %3292 = vadd.xlane.f32.xlu0 %v9592_v12  ;;  %v3149_v25 = vpop.xlane.xlu0 %3148  ;;  %v9596_v21 = vpop.eup %7229 }
 0x946   : > { %7237 = vpow2.f32 %v3240_v19  ;;  %v3198_v2 = vsub.f32 %v9467_v30, %v3149_v25  ;;  %v3242_v13 = vmul.f32 1.442695, %v3197_v43 }
 0x947   : > { %v3151_v61 = vpop.xlane.xlu1 %3150  ;;  %7239 = vpow2.f32 %v3238_v58 }
 0x948   : > { %v9598_v62 = vpop.eup %7231  ;;  %v3199_v33 = vsub.f32 %v9477_v15, %v3151_v61  ;;  %v3244_v52 = vmul.f32 1.442695, %v3198_v2  ;;  %v9624_v61 = vadd.f32 %v9339_v41, %v9437_v22  ;;  %v9640_v22 = vadd.f32 %v9408_v18, %v9470_v50 }
 0x949   : > { %3288 = vadd.xlane.f32.xlu0 %v9596_v21  ;;  %3296 = vadd.xlane.f32.xlu1 %v9598_v62  ;;  %v3425_v63 = vpop.permute.xlu0 %3424  ;;  %v9604_v7 = vpop.eup %7233  ;;  %v9657_v18 = vadd.f32 %v9321_v10, %v9430_v29  ;;  %v9673_v10 = vadd.f32 %v9396_v14, %v9460_v16  ;;  %v9683_v29 = vadd.f32 %v9381_v0, %v9462_v31 }
 0x94a   : > { %v3246_v55 = vmul.f32 1.442695, %v3199_v33  ;;  %6256 = vmatprep.subr.bf16.mxu0 %v3425_v63  ;;  %v9688_v14 = vadd.f32 %v9422_v27, %v9487_v39  ;;  %v9698_v31 = vadd.f32 %v9464_v35, %v9489_v34  ;;  %v9705_v39 = vadd.f32 %v9448_v54, %v9491_v49 }
 0x94b   : > { %v3427_v56 = vpop.permute.xlu1 %3426  ;;  %6257 = vmatpush3.bf16.msra.mxu0 %v3425_v63 }
 0x94c   : > { %7241 = vpow2.f32 %v3246_v55  ;;  %6258 = vmatprep.subr.bf16.mxu0 %v3427_v56  ;;  %v9608_v23 = vpop.eup %7235 }
 0x94d   : > { %3294 = vadd.xlane.f32.xlu0 %v9604_v7  ;;  %v3429_v15 = vpop.permute.xlu0 %3428  ;;  %7243 = vpow2.f32 %v3234_v20  ;;  %v9632_v20 = vadd.f32 %v9326_v57, %v9440_v48  ;;  %v9647_v48 = vadd.f32 %v9332_v37, %v9427_v11  ;;  %v9664_v37 = vadd.f32 %v9432_v17, %v9481_v4 }
 0x94e   : > { %7245 = vpow2.f32 %v3244_v52  ;;  %v11234_v52 = vld [vmem:[#allocation117_spill] sm:$0xff] }
 0x94f   : > { %v3431_v59 = vpop.permute.xlu1 %3430  ;;  %6259 = vmatpush3.bf16.msra.mxu0 %v3427_v56  ;;  %7247 = vpow2.f32 %v3242_v13 }
 0x950   : > { %v9610_v30 = vpop.eup %7237  ;;  %6260 = vmatprep.subr.bf16.mxu0 %v3429_v15 }
 0x951   : > { %3300 = vadd.xlane.f32.xlu0 %v9608_v23  ;;  %3304 = vadd.xlane.f32.xlu1 %v9610_v30  ;;  %v3433_v32 = vpop.permute.xlu0 %3432  ;;  %v9614_v25 = vpop.eup %7239 }
 0x953   : > { %v3439_v19 = vpop.permute.xlu1 %3438  ;;  %6261 = vmatpush3.bf16.msra.mxu0 %v3429_v15  ;;  %v9652_v15 = vadd.f32 %v9386_v1, %v9472_v47  ;;  %v9678_v1 = vadd.f32 %v9442_v40, %v9485_v51  ;;  %v9693_v40 = vadd.f32 %v9416_v60, %v9483_v28 }
 0x954   : > { %6262 = vmatprep.subr.bf16.mxu0 %v3431_v59 }
 0x955   : > { %3302 = vadd.xlane.f32.xlu0 %v9614_v25  ;;  %v3435_v26 = vpop.permute.xlu0 %3434 }
 0x956   : > { %v9617_v53 = vpop.eup %7241 }
 0x957   : > { %3310 = vadd.xlane.f32.xlu1 %v9617_v53  ;;  %6263 = vmatpush3.bf16.msra.mxu0 %v3431_v59  ;;  %v9620_v9 = vpop.eup %7243  ;;  %v3548_v58 = vpop.permute.xlu1 %3547  ;;  %v9742_v59 = vadd.f32 %v11234_v52, %v9495_v24 }
 0x958   : > { %6264 = vmatprep.subr.bf16.mxu0 %v3433_v32  ;;  %v9628_v63 = vpop.eup %7245 }
 0x959   : > { %3298 = vadd.xlane.f32.xlu0 %v9620_v9  ;;  %v3437_v33 = vpop.permute.xlu0 %3436  ;;  %v9636_v41 = vpop.eup %7247 }
 0x95b   : > { %3158 = vmax.xlane.f32.xlu1 %v9624_v61  ;;  %6265 = vmatpush3.bf16.msra.mxu0 %v3433_v32  ;;  %v3552_v55 = vpop.permute.xlu1 %3551 }
 0x95c   : > { %6266 = vmatprep.subr.bf16.mxu0 %v3435_v26 }
 0x95d   : > { %3308 = vadd.xlane.f32.xlu0 %v9628_v63  ;;  %v3546_v2 = vpop.permute.xlu0 %3545 }
 0x95e   : > { %6288 = vmatprep.subr.bf16.mxu1 %v3546_v2 }
 0x95f   : > { %3154 = vmax.xlane.f32.xlu1 %v9632_v20  ;;  %6267 = vmatpush3.bf16.msra.mxu0 %v3435_v26  ;;  %v3556_v56 = vpop.permute.xlu1 %3555 }
 0x960   : > { %6289 = vmatpush3.bf16.msra.mxu1 %v3546_v2  ;;  %6268 = vmatprep.subr.bf16.mxu0 %v3437_v33 }
 0x961   : > { %6290 = vmatprep.subr.bf16.mxu1 %v3548_v58  ;;  %3306 = vadd.xlane.f32.xlu0 %v9636_v41  ;;  %v9643_v57 = vpop.permute.xlu0 %3682 }
 0x963   : > { %3166 = vmax.xlane.f32.xlu1 %v9640_v22  ;;  %6269 = vmatpush3.bf16.msra.mxu0 %v3437_v33  ;;  %v9669_v11 = vpop.permute.xlu1 %3686 }
 0x964   : > { %6291 = vmatpush3.bf16.msra.mxu1 %v3548_v58  ;;  %6270 = vmatprep.subr.bf16.mxu0 %v3439_v19 }
 0x965   : > { %3156 = vmax.xlane.f32.xlu0 %v9647_v48  ;;  %v3550_v50 = vpop.permute.xlu0 %3549 }
 0x966   : > { %6292 = vmatprep.subr.bf16.mxu1 %v3550_v50 }
 0x967   : > { %3162 = vmax.xlane.f32.xlu1 %v9652_v15  ;;  %6271 = vmatpush3.bf16.msra.mxu0 %v3439_v19  ;;  %v3558_v17 = vpop.permute.xlu1 %3557 }
 0x968   : > { %6293 = vmatpush3.bf16.msra.mxu1 %v3550_v50  ;;  %6560 = vmatprep.subr.msk.bf16.mxu0 %vm1029_vm0, %v9643_v57 }
 0x969   : > { %6294 = vmatprep.subr.bf16.mxu1 %v3552_v55  ;;  %3152 = vmax.xlane.f32.xlu0 %v9657_v18  ;;  %v9667_v47 = vpop.permute.xlu0 %3684 }
 0x96b   : > { %3172 = vmax.xlane.f32.xlu1 %v9664_v37  ;;  %v9701_v0 = vpop.permute.xlu1 %3688 }
 0x96c   : > { %6295 = vmatpush3.bf16.msra.mxu1 %v3552_v55 }
 0x96d   : > { %3164 = vmax.xlane.f32.xlu0 %v9673_v10  ;;  %v3554_v4 = vpop.permute.xlu0 %3553 }
 0x96e   : > { %6296 = vmatprep.subr.bf16.mxu1 %v3554_v4 }
 0x96f   : > { %3174 = vmax.xlane.f32.xlu1 %v9678_v1  ;;  %v9709_v60 = vpop.permute.xlu1 %3859 }
 0x970   : > { %6297 = vmatpush3.bf16.msra.mxu1 %v3554_v4 }
 0x971   : > { %6298 = vmatprep.subr.bf16.mxu1 %v3556_v56  ;;  %3160 = vmax.xlane.f32.xlu0 %v9683_v29  ;;  %v3560_v28 = vpop.permute.xlu0 %3559 }
 0x973   : > { %3170 = vmax.xlane.f32.xlu1 %v9688_v14  ;;  %v9717_v49 = vpop.permute.xlu1 %3692 }
 0x974   : > { %6299 = vmatpush3.bf16.msra.mxu1 %v3556_v56 }
 0x975   : > { %6300 = vmatprep.subr.bf16.mxu1 %v3558_v17  ;;  %3168 = vmax.xlane.f32.xlu0 %v9693_v40  ;;  %v9721_v35 = vpop.permute.xlu0 %3690 }
 0x977   : > { %3180 = vmax.xlane.f32.xlu1 %v9698_v31  ;;  %v9719_v34 = vpop.permute.xlu1 %3861 }
 0x978   : > { %6301 = vmatpush3.bf16.msra.mxu1 %v3558_v17 }
 0x979   : > { %6302 = vmatprep.subr.bf16.mxu1 %v3560_v28  ;;  %3176 = vmax.xlane.f32.xlu0 %v9705_v39  ;;  %v9725_v27 = vpop.permute.xlu0 %3694 }
 0x97b   : > { %v9723_v54 = vpop.permute.xlu1 %3863 }
 0x97c   : > { %6303 = vmatpush3.bf16.msra.mxu1 %v3560_v28 }
 0x97d   : > { %6568 = vmatprep.subr.msk.bf16.mxu1 %vm1029_vm0, %v9709_v60  ;;  %v9729_v51 = vpop.permute.xlu0 %3696 }
 0x97f   : > { %v9727_v16 = vpop.permute.xlu1 %3865 }
 0x983   : > { %v9735_v43 = vpop.permute.xlu1 %3668 }
 0x987   : > { %v9744_v32 = vpop.permute.xlu1 %3867 }
 0x988   : > { %3676 = vrot.lane.b32.xlu1 %v11167_v42, %s7724_s14  ;;  %v9733_v42 = vadd.f32 %v9474_v46, %v9493_v44 }
 0x98b   : > { %v9749_v19 = vpop.permute.xlu1 %3670 }
 0x98f   : > { %3674 = vrot.lane.b32.xlu0 %v11164_v3, %s7724_s14  ;;  %v9737_v3 = vpop.permute.xlu0 %3666  ;;  %v9751_v26 = vpop.permute.xlu1 %3869 }
 0x993   : > { %v9747_v13 = vpop.permute.xlu0 %3672 }
 0x9ac   : > { %3182 = vmax.xlane.f32.xlu1 %v9733_v42 }
 0x9b0   : > { %3178 = vmax.xlane.f32.xlu1 %v9742_v59 }
 0x9b6   : > { %v3281_v44 = vpop.xlane.xlu0 %3280 }
 0x9b7   : > { %7249 = vrcp.f32 %v3281_v44 }
 0x9ba   : > { %v3283_v46 = vpop.xlane.xlu0 %3282 }
 0x9bb   : > { %7251 = vrcp.f32 %v3283_v46 }
 0x9c0   : > { %v3285_v58 = vpop.xlane.xlu1 %3284 }
 0x9c1   : > { %v7250_v33 = vpop.eup %7249  ;;  %7253 = vrcp.f32 %v3285_v58  ;;  %v3723_v58 = vsel %vm1029_vm0, %v9643_v57, 0 }
 0x9c2   : > { %v3376_v55 = vmul.f32 %v7250_v33, %v9569_v8 }
 0x9c4   : > { %v3287_v2 = vpop.xlane.xlu1 %3286 }
 0x9c5   : > { %v7252_v24 = vpop.eup %7251  ;;  %7255 = vrcp.f32 %v3287_v2 }
 0x9c6   : > { %v3377_v56 = vmul.f32 %v7252_v24, %v9572_v36 }
 0x9c8   : > { %v3408_v50 = vpack.c.bf16 %v3377_v56, %v3376_v55 }
 0x9ca   : > { %6272 = vmatprep.mubr.bf16.mxu0 %v3408_v50 }
 0x9cb   : > { %v7254_v4 = vpop.eup %7253 }
 0x9cc   : > { %v3378_v28 = vmul.f32 %v7254_v4, %v9575_v6 }
 0x9cf   : > { %v7256_v17 = vpop.eup %7255 }
 0x9d0   : > { %v3379_v52 = vmul.f32 %v7256_v17, %v9580_v5  ;;  %v3291_v45 = vpop.xlane.xlu1 %3290  ;;  %v3726_v5 = vsel %vm1029_vm0, %v9667_v47, 0  ;;  %v3729_v17 = vsel %vm1029_vm0, %v9669_v11, 0 }
 0x9d1   : > { %7257 = vrcp.f32 %v3291_v45 }
 0x9d2   : > { %v3293_v44 = vpop.xlane.xlu0 %3292  ;;  %v3409_v46 = vpack.c.bf16 %v3379_v52, %v3378_v28 }
 0x9d4   : > { %6273 = vmatmul.mubr.bf16.vlgmr.msra.gmra.mrb[112].mxu0 %v3409_v46 }
 0x9d5   : > { %6321 = vmatpush3.bf16.xpose.msra.mxu0 %v3723_v58 }
 0x9d6   : > { %6561 = vmatprep.subr.msk.bf16.mxu0 %vm1029_vm0, %v9667_v47  ;;  %v3289_v8 = vpop.xlane.xlu0 %3288  ;;  %v3297_v6 = vpop.xlane.xlu1 %3296 }
 0x9d7   : > { %7259 = vrcp.f32 %v3289_v8  ;;  %v3732_v8 = vsel %vm1029_vm0, %v9701_v0, 0 }
 0x9d8   : > { %7261 = vrcp.f32 %v3293_v44 }
 0x9da   : > { %v3295_v36 = vpop.xlane.xlu0 %3294 }
 0x9db   : > { %7263 = vrcp.f32 %v3295_v36  ;;  %v7258_v57 = vpop.eup %7257 }
 0x9dc   : > { %v3381_v50 = vmul.f32 %v7258_v57, %v9587_v38 }
 0x9dd   : > { %6323 = vmatpush3.bf16.xpose.msra.mxu0 %v3726_v5 }
 0x9de   : > { %6562 = vmatprep.subr.msk.bf16.mxu0 %vm1029_vm0, %v9669_v11  ;;  %v3301_v33 = vpop.xlane.xlu0 %3300  ;;  %v3305_v2 = vpop.xlane.xlu1 %3304 }
 0x9e1   : > { %v7260_v45 = vpop.eup %7259 }
 0x9e2   : > { %v3303_v24 = vpop.xlane.xlu0 %3302  ;;  %v7262_v55 = vpop.eup %7261  ;;  %v3380_v56 = vmul.f32 %v7260_v45, %v9596_v21 }
 0x9e3   : > { %7265 = vrcp.f32 %v3303_v24  ;;  %v3382_v44 = vmul.f32 %v7262_v55, %v9592_v12 }
 0x9e4   : > { %v3311_v4 = vpop.xlane.xlu1 %3310  ;;  %7267 = vrcp.f32 %v3297_v6  ;;  %v3410_v28 = vpack.c.bf16 %v3381_v50, %v3380_v56  ;;  %v3735_v56 = vsel %vm1029_vm0, %v9721_v35, 0 }
 0x9e5   : > { %v7264_v47 = vpop.eup %7263  ;;  %6325 = vmatpush3.bf16.xpose.msra.mxu0 %v3729_v17  ;;  %7269 = vrcp.f32 %v3301_v33 }
 0x9e6   : > { %6563 = vmatprep.subr.msk.bf16.mxu0 %vm1029_vm0, %v9701_v0  ;;  %v3299_v52 = vpop.xlane.xlu0 %3298  ;;  %v3383_v21 = vmul.f32 %v7264_v47, %v9604_v7  ;;  %6276 = vmatprep.mubr.bf16.mxu0 %v3410_v28 }
 0x9e7   : > { %7271 = vrcp.f32 %v3299_v52 }
 0x9e8   : > { %v3159_v38 = vpop.xlane.xlu1 %3158  ;;  %v3411_v46 = vpack.c.bf16 %v3383_v21, %v3382_v44 }
 0x9ea   : > { %6277 = vmatmul.mubr.bf16.gmra.mrb[116].mxu0 %v3411_v46  ;;  %v3309_v58 = vpop.xlane.xlu0 %3308 }
 0x9eb   : > { %7273 = vrcp.f32 %v3309_v58 }
 0x9ec   : > { %v3155_v11 = vpop.xlane.xlu1 %3154  ;;  %7275 = vrcp.f32 %v3305_v2 }
 0x9ed   : > { %v3201_v36 = vsub.f32 %v9632_v20, %v3155_v11  ;;  %6327 = vmatpush3.bf16.xpose.msra.mxu0 %v3732_v8  ;;  %v7266_v6 = vpop.eup %7265  ;;  %7277 = vrcp.f32 %v3311_v4 }
 0x9ee   : > { %6564 = vmatprep.subr.msk.bf16.mxu0 %vm1029_vm0, %v9721_v35  ;;  %v3307_v12 = vpop.xlane.xlu0 %3306  ;;  %v7268_v7 = vpop.eup %7267  ;;  %v3387_v45 = vmul.f32 %v7266_v6, %v9614_v25 }
 0x9ef   : > { %v3250_v5 = vmul.f32 1.442695, %v3201_v36  ;;  %7279 = vrcp.f32 %v3307_v12  ;;  %v7270_v33 = vpop.eup %7269  ;;  %v3384_v0 = vmul.f32 %v7268_v7, %v9598_v62  ;;  %v3744_v12 = vsel %vm1029_vm0, %v9729_v51, 0 }
 0x9f0   : > { %v3386_v55 = vmul.f32 %v7270_v33, %v9608_v23 }
 0x9f1   : > { %v7272_v57 = vpop.eup %7271  ;;  %7281 = vpow2.f32 %v3250_v5  ;;  %v11235_v5 = vld [vmem:[#allocation23_spill] sm:$0xff] }
 0x9f2   : > { %v3157_v24 = vpop.xlane.xlu0 %3156  ;;  %v3385_v20 = vmul.f32 %v7272_v57, %v9620_v9  ;;  %v3413_v17 = vpack.c.bf16 %v3387_v45, %v3386_v55  ;;  %v3203_v9 = vsub.f32 %v9624_v61, %v3159_v38  ;;  %v3738_v61 = vsel %vm1029_vm0, %v9717_v49, 0  ;;  %v11236_v45 = vld [vmem:[#allocation35_spill] sm:$0xff] }
 0x9f3   : > { %v3202_v2 = vsub.f32 %v9647_v48, %v3157_v24 }
 0x9f4   : > { %v3412_v50 = vpack.c.bf16 %v3385_v20, %v3384_v0  ;;  %v3254_v58 = vmul.f32 1.442695, %v3203_v9 }
 0x9f5   : > { %v3252_v4 = vmul.f32 1.442695, %v3202_v2  ;;  %6329 = vmatpush3.bf16.xpose.msra.mxu0 %v3735_v56  ;;  %v7274_v47 = vpop.eup %7273 }
 0x9f6   : > { %6565 = vmatprep.subr.msk.bf16.mxu0 %vm1029_vm0, %v9717_v49  ;;  %6280 = vmatprep.mubr.bf16.mxu0 %v3412_v50  ;;  %v3153_v25 = vpop.xlane.xlu0 %3152  ;;  %v7276_v62 = vpop.eup %7275  ;;  %v3390_v52 = vmul.f32 %v7274_v47, %v9628_v63 }
 0x9f7   : > { %7283 = vpow2.f32 %v3252_v4  ;;  %v3200_v48 = vsub.f32 %v9657_v18, %v3153_v25  ;;  %6281 = vmatmul.mubr.bf16.gmra.mrb[120].mxu0 %v3413_v17  ;;  %v7278_v23 = vpop.eup %7277  ;;  %v3388_v44 = vmul.f32 %v7276_v62, %v9610_v30  ;;  %v3167_v30 = vpop.xlane.xlu1 %3166 }
 0x9f8   : > { %v3391_v11 = vmul.f32 %v7278_v23, %v9617_v53 }
 0x9f9   : > { %v7280_v28 = vpop.eup %7279  ;;  %v3248_v35 = vmul.f32 1.442695, %v3200_v48 }
 0x9fa   : > { %v3389_v21 = vmul.f32 %v7280_v28, %v9636_v41  ;;  %v3415_v38 = vpack.c.bf16 %v3391_v11, %v3390_v52  ;;  %v3165_v53 = vpop.xlane.xlu0 %3164  ;;  %v3741_v41 = vsel %vm1029_vm0, %v9725_v27, 0 }
 0x9fb   : > { %v9792_v46 = vpop.eup %7281  ;;  %7285 = vpow2.f32 %v3248_v35  ;;  %v3163_v8 = vpop.xlane.xlu1 %3162  ;;  %v3206_v0 = vsub.f32 %v9673_v10, %v3165_v53  ;;  %v11238_v53 = vld [vmem:[#allocation39_spill] sm:$0xff] }
 0x9fc   : > { %3314 = vadd.xlane.f32.xlu0 %v9792_v46  ;;  %v3414_v18 = vpack.c.bf16 %v3389_v21, %v3388_v44  ;;  %7287 = vpow2.f32 %v3254_v58 }
 0x9fd   : > { %6331 = vmatpush3.bf16.xpose.msra.mxu0 %v3738_v61  ;;  %v3260_v20 = vmul.f32 1.442695, %v3206_v0 }
 0x9fe   : > { %6566 = vmatprep.subr.msk.bf16.mxu0 %vm1029_vm0, %v9725_v27  ;;  %6284 = vmatprep.mubr.bf16.mxu0 %v3414_v18 }
 0x9ff   : > { %6285 = vmatmul.mubr.bf16.gmra.mrb[124].mxu0 %v3415_v38  ;;  %v3173_v6 = vpop.xlane.xlu1 %3172  ;;  %7289 = vpow2.f32 %v3260_v20 }
 0xa00   : > { %6336 = vmatprep.mubr.msk.bf16.mxu0 %vm1029_vm0, %v9737_v3  ;;  %v3161_v3 = vpop.xlane.xlu0 %3160  ;;  %v3210_v50 = vsub.f32 %v9664_v37, %v3173_v6  ;;  %v11242_v6 = vld [vmem:[#allocation55_spill] sm:$0xff] }
 0xa01   : > { %v9802_v63 = vpop.eup %7283 }
 0xa02   : > { %3316 = vadd.xlane.f32.xlu1 %v9802_v63  ;;  %v3268_v4 = vmul.f32 1.442695, %v3210_v50 }
 0xa03   : > { %v3175_v7 = vpop.xlane.xlu1 %3174 }
 0xa04   : > { %v3169_v27 = vpop.xlane.xlu0 %3168 }
 0xa05   : > { %v9807_v49 = vpop.eup %7285  ;;  %6333 = vmatpush3.bf16.xpose.msra.mxu0 %v3741_v41  ;;  %v3208_v47 = vsub.f32 %v9693_v40, %v3169_v27  ;;  %v11239_v41 = vld [vmem:[#allocation49_spill] sm:$0xff]  ;;  %v11244_v27 = vld [vmem:[#allocation18_spill] sm:$0xff] }
 0xa06   : > { %6567 = vmatprep.subr.msk.bf16.mxu0 %vm1029_vm0, %v9729_v51  ;;  %3312 = vadd.xlane.f32.xlu1 %v9807_v49  ;;  %v9812_v36 = vpop.eup %7287 }
 0xa07   : > { %v3171_v57 = vpop.xlane.xlu1 %3170  ;;  %v3264_v37 = vmul.f32 1.442695, %v3208_v47 }
 0xa08   : > { %v3177_v33 = vpop.xlane.xlu0 %3176  ;;  %v3209_v10 = vsub.f32 %v9688_v14, %v3171_v57 }
 0xa09   : > { %v9835_v17 = vpop.eup %7289  ;;  %v3212_v40 = vsub.f32 %v9705_v39, %v3177_v33 }
 0xa0a   : > { %3318 = vadd.xlane.f32.xlu1 %v9812_v36 }
 0xa0b   : > { %v3181_v51 = vpop.xlane.xlu1 %3180  ;;  %v3272_v28 = vmul.f32 1.442695, %v3212_v40 }
 0xa0c   : > { %v3675_v24 = vpop.permute.xlu0 %3674  ;;  %v3214_v25 = vsub.f32 %v9698_v31, %v3181_v51 }
 0xa0d   : > { %6335 = vmatpush3.bf16.xpose.msra.mxu0 %v3744_v12  ;;  %v11243_v12 = vld [vmem:[#allocation21_spill] sm:$0xff] }
 0xa0e   : > { %v3276_v14 = vmul.f32 1.442695, %v3214_v25 }
 0xa0f   : > { %v3677_v2 = vpop.permute.xlu1 %3676 }
 0xa12   : > { %3871 = vrot.lane.b32.xlu0 %v11235_v5, %s7724_s14  ;;  %v11246_v5 = vld [vmem:[#allocation25_spill] sm:$0xff] }
 0xa14   : > { %6337 = vmatmul.mubr.msk.bf16.vlgmr.msra.gmra.mrb[128].mxu0 %vm1029_vm0, %v9735_v43  ;;  %v3204_v43 = vsub.f32 %v9683_v29, %v3161_v3  ;;  %v11241_v3 = vld [vmem:[#allocation60_spill] sm:$0xff] }
 0xa15   : > { %6340 = vmatprep.mubr.msk.bf16.mxu0 %vm1029_vm0, %v9749_v19  ;;  %v3207_v19 = vsub.f32 %v9640_v22, %v3167_v30  ;;  %v3266_v22 = vmul.f32 1.442695, %v3209_v10  ;;  %v11237_v30 = vld [vmem:[#allocation27_spill] sm:$0xff] }
 0xa16   : > { %v3256_v55 = vmul.f32 1.442695, %v3204_v43 }
 0xa17   : > { %v3262_v56 = vmul.f32 1.442695, %v3207_v19 }
 0xa18   : > { %7291 = vpow2.f32 %v3256_v55 }
 0xa19   : > { %7293 = vpow2.f32 %v3262_v56 }
 0xa1a   : > { %7295 = vpow2.f32 %v3268_v4 }
 0xa1b   : > { %3678 = vrot.lane.b32.xlu1 %v11236_v45, %s7724_s14 }
 0xa1c   : > { %6341 = vmatmul.mubr.msk.bf16.gmra.mrb[132].mxu0 %vm1029_vm0, %v9747_v13  ;;  %v3205_v13 = vsub.f32 %v9652_v15, %v3163_v8  ;;  %v3211_v15 = vsub.f32 %v9678_v1, %v3175_v7  ;;  %v11240_v8 = vld [vmem:[#allocation45_spill] sm:$0xff] }
 0xa1d   : > { %6344 = vmatprep.mubr.msk.bf16.mxu0 %vm1029_vm0, %v3675_v24  ;;  %v11245_v7 = vld [vmem:[#allocation29_spill] sm:$0xff] }
 0xa1e   : > { %v3258_v29 = vmul.f32 1.442695, %v3205_v13  ;;  %v3270_v48 = vmul.f32 1.442695, %v3211_v15 }
 0xa20   : > { %7297 = vpow2.f32 %v3258_v29  ;;  %v3900_v29 = vsel %vm1029_vm0, %v9709_v60, 0  ;;  %v3906_v60 = vsel %vm1029_vm0, %v9723_v54, 0 }
 0xa21   : > { %7299 = vpow2.f32 %v3266_v22  ;;  %v3903_v22 = vsel %vm1029_vm0, %v9719_v34, 0 }
 0xa22   : > { %v9840_v62 = vpop.eup %7291  ;;  %7301 = vpow2.f32 %v3264_v37 }
 0xa23   : > { %v9844_v9 = vpop.eup %7293  ;;  %7303 = vpow2.f32 %v3276_v14 }
 0xa24   : > { %6345 = vmatmul.mubr.msk.bf16.gmra.mrb[136].mxu0 %vm1029_vm0, %v3677_v2  ;;  %v9848_v31 = vpop.eup %7295  ;;  %7305 = vpow2.f32 %v3270_v48 }
 0xa25   : > { %7307 = vpow2.f32 %v3272_v28 }
 0xa2a   : > { %v9852_v52 = vpop.eup %7297 }
 0xa2b   : > { %v9856_v39 = vpop.eup %7299 }
 0xa2c   : > { %v9859_v11 = vpop.eup %7301 }
 0xa31   : > { %3324 = vadd.xlane.f32.xlu0 %v9835_v17 }
 0xa35   : > { %3320 = vadd.xlane.f32.xlu0 %v9840_v62 }
 0xa39   : > { %v3183_v23 = vpop.xlane.xlu1 %3182  ;;  %3326 = vadd.xlane.f32.xlu0 %v9844_v9 }
 0xa3a   : > { %v3215_v1 = vsub.f32 %v9733_v42, %v3183_v23  ;;  %v9862_v42 = vpop.eup %7303 }
 0xa3c   : > { %v3278_v21 = vmul.f32 1.442695, %v3215_v1 }
 0xa3d   : > { %v3179_v35 = vpop.xlane.xlu1 %3178  ;;  %3332 = vadd.xlane.f32.xlu0 %v9848_v31 }
 0xa3e   : > { %v3213_v44 = vsub.f32 %v9742_v59, %v3179_v35  ;;  %v9865_v59 = vpop.eup %7305  ;;  %v3912_v35 = vsel %vm1029_vm0, %v9744_v32, 0 }
 0xa3f   : > { %3322 = vadd.xlane.f32.xlu1 %v9852_v52  ;;  %v9868_v61 = vpop.eup %7307 }
 0xa40   : > { %v3274_v58 = vmul.f32 1.442695, %v3213_v44 }
 0xa41   : > { %3330 = vadd.xlane.f32.xlu0 %v9856_v39 }
 0xa42   : > { %7309 = vpow2.f32 %v3274_v58 }
 0xa43   : > { %3328 = vadd.xlane.f32.xlu1 %v9859_v11  ;;  %7311 = vpow2.f32 %v3278_v21 }
 0xa45   : > { %3340 = vadd.xlane.f32.xlu0 %v9862_v42 }
 0xa47   : > { %3334 = vadd.xlane.f32.xlu1 %v9865_v59 }
 0xa4b   : > { %3336 = vadd.xlane.f32.xlu1 %v9868_v61 }
 0xa4c   : > { %v9871_v18 = vpop.eup %7309 }
 0xa4d   : > { %3338 = vadd.xlane.f32.xlu0 %v9871_v18  ;;  %v9874_v38 = vpop.eup %7311 }
 0xa4f   : > { %3342 = vadd.xlane.f32.xlu1 %v9874_v38 }
 0xa60   : > { %3873 = vrot.lane.b32.xlu1 %v11237_v30, %s7724_s14 }
 0xa63   : > { %3680 = vrot.lane.b32.xlu0 %v11238_v53, %s7724_s14  ;;  %v10114_v53 = vld [vmem:[#allocation8 + $0x78] sm:$0xff] }
 0xa64   : > { %3845 = vrot.lane.b32.xlu1 %v11239_v41, %s7724_s14 }
 0xa67   : > { %3843 = vrot.lane.b32.xlu0 %v11240_v8, %s7724_s14 }
 0xa68   : > { %3849 = vrot.lane.b32.xlu1 %v11241_v3, %s7724_s14  ;;  %v3915_v3 = vsel %vm1029_vm0, %v9751_v26, 0 }
 0xa6b   : > { %3847 = vrot.lane.b32.xlu0 %v11242_v6, %s7724_s14 }
 0xa6c   : > { %3853 = vrot.lane.b32.xlu1 %v11243_v12, %s7724_s14 }
 0xa6f   : > { %3851 = vrot.lane.b32.xlu0 %v11244_v27, %s7724_s14 }
 0xa70   : > { %3857 = vrot.lane.b32.xlu1 %v11245_v7, %s7724_s14 }
 0xa73   : > { %3855 = vrot.lane.b32.xlu0 %v11246_v5, %s7724_s14 }
 0xa89   : > { %v3315_v33 = vpop.xlane.xlu0 %3314 }
 0xa8a   : > { %7313 = vrcp.f32 %v3315_v33 }
 0xa8d   : > { %v3872_v25 = vpop.permute.xlu0 %3871 }
 0xa8f   : > { %v3317_v57 = vpop.xlane.xlu1 %3316 }
 0xa93   : > { %v3313_v45 = vpop.xlane.xlu1 %3312 }
 0xa94   : > { %7315 = vrcp.f32 %v3313_v45  ;;  %v7314_v0 = vpop.eup %7313 }
 0xa95   : > { %7317 = vrcp.f32 %v3317_v57  ;;  %v3393_v2 = vmul.f32 %v7314_v0, %v9792_v46  ;;  %v10098_v0 = vld [vmem:[#allocation8 + $0x68] sm:$0xff] }
 0xa96   : > { %11272 = vst [vmem:[#allocation120_spill] sm:$0xff] %v10098_v0 }
 0xa97   : > { %v3319_v24 = vpop.xlane.xlu1 %3318 }
 0xa98   : > { %7319 = vrcp.f32 %v3319_v24 }
 0xa9b   : > { %v3679_v51 = vpop.permute.xlu1 %3678 }
 0xa9c   : > { %6348 = vmatprep.mubr.msk.bf16.mxu0 %vm1029_vm0, %v3679_v51 }
 0xa9e   : > { %v7316_v20 = vpop.eup %7315 }
 0xa9f   : > { %v3392_v43 = vmul.f32 %v7316_v20, %v9807_v49  ;;  %v7318_v19 = vpop.eup %7317 }
 0xaa0   : > { %v3394_v50 = vmul.f32 %v7318_v19, %v9802_v63 }
 0xaa1   : > { %v3416_v55 = vpack.c.bf16 %v3393_v2, %v3392_v43  ;;  %v3918_v43 = vsel %vm1029_vm0, %v3872_v25, 0 }
 0xaa2   : > { %v7320_v56 = vpop.eup %7319 }
 0xaa3   : > { %v3395_v13 = vmul.f32 %v7320_v56, %v9812_v36  ;;  %6304 = vmatprep.mubr.bf16.mxu1 %v3416_v55 }
 0xaa5   : > { %v3417_v4 = vpack.c.bf16 %v3395_v13, %v3394_v50 }
 0xaa7   : > { %v9902_v10 = vpop.f32.mrb[112].mxu0  ;;  %6305 = vmatmul.mubr.bf16.vlgmr.msra.gmra.mrb[144].mxu1 %v3417_v4 }
 0xaa8   : > { %11247 = vst [vmem:[#allocation22_spill] sm:$0xff] %v9902_v10  ;;  %6353 = vmatpush3.bf16.xpose.msra.mxu1 %v3900_v29  ;;  %v9906_v47 = vpop.f32.mrb[113].mxu0 }
 0xaa9   : > { %11248 = vst [vmem:[#allocation15_spill] sm:$0xff] %v9906_v47  ;;  %6569 = vmatprep.subr.msk.bf16.mxu1 %vm1029_vm0, %v9719_v34  ;;  %v9910_v46 = vpop.f32.mrb[114].mxu0  ;;  %v3909_v34 = vsel %vm1029_vm0, %v9727_v16, 0 }
 0xaaa   : > { %11249 = vst [vmem:[#allocation26_spill] sm:$0xff] %v9910_v46  ;;  %v9914_v49 = vpop.f32.mrb[115].mxu0 }
 0xaab   : > { %11250 = vst [vmem:[#allocation19_spill] sm:$0xff] %v9914_v49 }
 0xab0   : > { %6355 = vmatpush3.bf16.xpose.msra.mxu1 %v3903_v22 }
 0xab1   : > { %6570 = vmatprep.subr.msk.bf16.mxu1 %vm1029_vm0, %v9723_v54 }
 0xab8   : > { %6357 = vmatpush3.bf16.xpose.msra.mxu1 %v3906_v60 }
 0xab9   : > { %6571 = vmatprep.subr.msk.bf16.mxu1 %vm1029_vm0, %v9727_v16 }
 0xabd   : > { %v9926_v15 = vpop.f32.mrb[116].mxu0 }
 0xabe   : > { %11251 = vst [vmem:[#allocation44_spill] sm:$0xff] %v9926_v15  ;;  %v9928_v37 = vpop.f32.mrb[117].mxu0  ;;  %v3325_v14 = vpop.xlane.xlu0 %3324 }
 0xabf   : > { %11252 = vst [vmem:[#allocation32_spill] sm:$0xff] %v9928_v37  ;;  %v9930_v48 = vpop.f32.mrb[118].mxu0 }
 0xac0   : > { %11253 = vst [vmem:[#allocation48_spill] sm:$0xff] %v9930_v48  ;;  %6359 = vmatpush3.bf16.xpose.msra.mxu1 %v3909_v34  ;;  %v9936_v54 = vpop.f32.mrb[119].mxu0 }
 0xac1   : > { %11254 = vst [vmem:[#allocation30_spill] sm:$0xff] %v9936_v54  ;;  %6572 = vmatprep.subr.msk.bf16.mxu1 %vm1029_vm0, %v9744_v32 }
 0xac2   : > { %v3321_v28 = vpop.xlane.xlu0 %3320 }
 0xac6   : > { %v3327_v1 = vpop.xlane.xlu0 %3326 }
 0xac7   : > { %7321 = vrcp.f32 %v3327_v1 }
 0xac8   : > { %6361 = vmatpush3.bf16.xpose.msra.mxu1 %v3912_v35  ;;  %7323 = vrcp.f32 %v3321_v28 }
 0xac9   : > { %6573 = vmatprep.subr.msk.bf16.mxu1 %vm1029_vm0, %v9751_v26  ;;  %7325 = vrcp.f32 %v3325_v14 }
 0xaca   : > { %v9946_v16 = vpop.f32.mrb[120].mxu0  ;;  %v3333_v44 = vpop.xlane.xlu0 %3332 }
 0xacb   : > { %11255 = vst [vmem:[#allocation54_spill] sm:$0xff] %v9946_v16  ;;  %v9948_v21 = vpop.f32.mrb[121].mxu0 }
 0xacc   : > { %11256 = vst [vmem:[#allocation34_spill] sm:$0xff] %v9948_v21  ;;  %v9950_v58 = vpop.f32.mrb[122].mxu0  ;;  %v3323_v30 = vpop.xlane.xlu1 %3322 }
 0xacd   : > { %11257 = vst [vmem:[#allocation117_spill] sm:$0xff] %v9950_v58  ;;  %7327 = vrcp.f32 %v3323_v30  ;;  %v9954_v32 = vpop.f32.mrb[123].mxu0 }
 0xace   : > { %11258 = vst [vmem:[#allocation23_spill] sm:$0xff] %v9954_v32  ;;  %v3331_v8 = vpop.xlane.xlu0 %3330 }
 0xacf   : > { %7329 = vrcp.f32 %v3331_v8 }
 0xad0   : > { %6363 = vmatpush3.bf16.xpose.msra.mxu1 %v3915_v3  ;;  %v3329_v6 = vpop.xlane.xlu1 %3328 }
 0xad1   : > { %7331 = vrcp.f32 %v3329_v6  ;;  %6574 = vmatprep.subr.msk.bf16.mxu1 %vm1029_vm0, %v3872_v25  ;;  %v7322_v7 = vpop.eup %7321 }
 0xad2   : > { %v9961_v12 = vpop.f32.mrb[124].mxu0  ;;  %7333 = vrcp.f32 %v3333_v44  ;;  %v7324_v57 = vpop.eup %7323  ;;  %v3399_v2 = vmul.f32 %v7322_v7, %v9844_v9 }
 0xad3   : > { %11259 = vst [vmem:[#allocation35_spill] sm:$0xff] %v9961_v12  ;;  %v9963_v27 = vpop.f32.mrb[125].mxu0  ;;  %v7326_v24 = vpop.eup %7325  ;;  %v3396_v55 = vmul.f32 %v7324_v57, %v9840_v62 }
 0xad4   : > { %11260 = vst [vmem:[#allocation27_spill] sm:$0xff] %v9963_v27  ;;  %v9965_v5 = vpop.f32.mrb[126].mxu0  ;;  %v3335_v33 = vpop.xlane.xlu1 %3334  ;;  %v3398_v13 = vmul.f32 %v7326_v24, %v9835_v17 }
 0xad5   : > { %11261 = vst [vmem:[#allocation39_spill] sm:$0xff] %v9965_v5  ;;  %7335 = vrcp.f32 %v3335_v33  ;;  %v9969_v26 = vpop.f32.mrb[127].mxu0  ;;  %v3341_v51 = vpop.xlane.xlu0 %3340 }
 0xad6   : > { %11262 = vst [vmem:[#allocation49_spill] sm:$0xff] %v9969_v26  ;;  %v3419_v60 = vpack.c.bf16 %v3399_v2, %v3398_v13  ;;  %v10008_v13 = vld [vmem:[#allocation8 + $0x18] sm:$0xff] }
 0xad7   : > { %v7328_v20 = vpop.eup %7327 }
 0xad8   : > { %6365 = vmatpush3.bf16.xpose.msra.mxu1 %v3918_v43  ;;  %v3337_v19 = vpop.xlane.xlu1 %3336  ;;  %v3397_v56 = vmul.f32 %v7328_v20, %v9852_v52 }
 0xad9   : > { %v7330_v50 = vpop.eup %7329  ;;  %7337 = vrcp.f32 %v3337_v19 }
 0xada   : > { %7339 = vrcp.f32 %v3341_v51  ;;  %v3339_v4 = vpop.xlane.xlu0 %3338  ;;  %v3418_v29 = vpack.c.bf16 %v3397_v56, %v3396_v55  ;;  %v3401_v25 = vmul.f32 %v7330_v50, %v9856_v39  ;;  %v9989_v51 = vld [vmem:[#allocation8] sm:$0xff] }
 0xadb   : > { %v7332_v22 = vpop.eup %7331  ;;  %7341 = vrcp.f32 %v3339_v4 }
 0xadc   : > { %v3343_v14 = vpop.xlane.xlu1 %3342  ;;  %6308 = vmatprep.mubr.bf16.mxu1 %v3418_v29  ;;  %v3400_v9 = vmul.f32 %v7332_v22, %v9859_v11  ;;  %v7334_v34 = vpop.eup %7333 }
 0xadd   : > { %7343 = vrcp.f32 %v3343_v14  ;;  %6309 = vmatmul.mubr.bf16.gmra.mrb[148].mxu1 %v3419_v60  ;;  %v3402_v1 = vmul.f32 %v7334_v34, %v9848_v31  ;;  %v10013_v60 = vld [vmem:[#allocation8 + $0x28] sm:$0xff]  ;;  %v10019_v34 = vld [vmem:[#allocation8 + $0x20] sm:$0xff] }
 0xade   : > { %v3681_v62 = vpop.permute.xlu0 %3680  ;;  %v3420_v52 = vpack.c.bf16 %v3401_v25, %v3400_v9 }
 0xadf   : > { %v7336_v28 = vpop.eup %7335  ;;  %6349 = vmatmul.mubr.msk.bf16.gmra.mrb[140].mxu0 %vm1029_vm0, %v3681_v62 }
 0xae0   : > { %v3874_v17 = vpop.permute.xlu1 %3873  ;;  %6312 = vmatprep.mubr.bf16.mxu1 %v3420_v52  ;;  %v3403_v35 = vmul.f32 %v7336_v28, %v9865_v59  ;;  %v10027_v52 = vld [vmem:[#allocation8 + $0x38] sm:$0xff] }
 0xae1   : > { %6575 = vmatprep.subr.msk.bf16.mxu1 %vm1029_vm0, %v3874_v17  ;;  %v3921_v11 = vsel %vm1029_vm0, %v3874_v17, 0 }
 0xae2   : > { %6367 = vmatpush3.bf16.xpose.msra.mxu1 %v3921_v11  ;;  %v3421_v39 = vpack.c.bf16 %v3403_v35, %v3402_v1  ;;  %v3844_v55 = vpop.permute.xlu0 %3843  ;;  %v10033_v35 = vld [vmem:[#allocation8 + $0x30] sm:$0xff] }
 0xae3   : > { %v7338_v44 = vpop.eup %7337 }
 0xae4   : > { %v7340_v30 = vpop.eup %7339  ;;  %v3404_v3 = vmul.f32 %v7338_v44, %v9868_v61  ;;  %v9994_v61 = vld [vmem:[#allocation8 + $0x8] sm:$0xff]  ;;  %v3846_v9 = vpop.permute.xlu1 %3845 }
 0xae5   : > { %v7342_v8 = vpop.eup %7341  ;;  %6313 = vmatmul.mubr.bf16.gmra.mrb[152].mxu1 %v3421_v39  ;;  %v3406_v59 = vmul.f32 %v7340_v30, %v9862_v42  ;;  %v10000_v42 = vld [vmem:[#allocation8 + $0x10] sm:$0xff]  ;;  %v10039_v30 = vld [vmem:[#allocation8 + $0x48] sm:$0xff] }
 0xae6   : > { %v3405_v6 = vmul.f32 %v7342_v8, %v9871_v18  ;;  %v3848_v25 = vpop.permute.xlu0 %3847 }
 0xae7   : > { %v7344_v7 = vpop.eup %7343  ;;  %v6338_v33 = vpop.f32.mrb[128].mxu0 }
 0xae8   : > { %v3780_v57 = vpop.f32.mrb[129].mxu0  ;;  %v3422_v31 = vpack.c.bf16 %v3405_v6, %v3404_v3  ;;  %v3407_v24 = vmul.f32 %v7344_v7, %v9874_v38  ;;  %v10003_v38 = vadd.f32 %v10000_v42, %v6338_v33  ;;  %v3850_v3 = vpop.permute.xlu1 %3849  ;;  %v10045_v7 = vld [vmem:[#allocation8 + $0x40] sm:$0xff] }
 0xae9   : > { %v9992_v20 = vadd.f32 %v9989_v51, %v3780_v57  ;;  %v6339_v43 = vpop.f32.mrb[130].mxu0  ;;  %v10053_v57 = vld [vmem:[#allocation8 + $0x58] sm:$0xff] }
 0xaea   : > { %v3783_v2 = vpop.f32.mrb[131].mxu0  ;;  %6316 = vmatprep.mubr.bf16.mxu1 %v3422_v31  ;;  %v3423_v19 = vpack.c.bf16 %v3407_v24, %v3406_v59  ;;  %v10011_v4 = vadd.f32 %v10008_v13, %v6339_v43  ;;  %v3852_v6 = vpop.permute.xlu0 %3851  ;;  %v10059_v59 = vld [vmem:[#allocation8 + $0x50] sm:$0xff] }
 0xaeb   : > { %v9997_v18 = vadd.f32 %v9994_v61, %v3783_v2  ;;  %4020 = vmax.xlane.f32.xlu0 %v9992_v20 }
 0xaec   : > { %v3854_v43 = vpop.permute.xlu1 %3853 }
 0xaed   : > { %4022 = vmax.xlane.f32.xlu1 %v9997_v18  ;;  %6317 = vmatmul.mubr.bf16.gmra.mrb[156].mxu1 %v3423_v19 }
 0xaee   : > { %6368 = vmatprep.mubr.msk.bf16.mxu1 %vm1029_vm0, %v3844_v55  ;;  %v3856_v2 = vpop.permute.xlu0 %3855 }
 0xaef   : > { %v6342_v56 = vpop.f32.mrb[132].mxu0  ;;  %4024 = vmax.xlane.f32.xlu0 %v10003_v38 }
 0xaf0   : > { %v3796_v50 = vpop.f32.mrb[133].mxu0  ;;  %v10036_v11 = vadd.f32 %v10033_v35, %v6342_v56  ;;  %v3858_v19 = vpop.permute.xlu1 %3857 }
 0xaf1   : > { %v6343_v29 = vpop.f32.mrb[134].mxu0  ;;  %v10022_v62 = vadd.f32 %v10019_v34, %v3796_v50 }
 0xaf2   : > { %v3799_v22 = vpop.f32.mrb[135].mxu0  ;;  %v10030_v28 = vadd.f32 %v10027_v52, %v6343_v29 }
 0xaf3   : > { %v10016_v14 = vadd.f32 %v10013_v60, %v3799_v22  ;;  %4026 = vmax.xlane.f32.xlu0 %v10011_v4 }
 0xaf5   : > { %4030 = vmax.xlane.f32.xlu1 %v10016_v14  ;;  %6369 = vmatmul.mubr.msk.bf16.vlgmr.msra.gmra.mrb[160].mxu1 %vm1029_vm0, %v3846_v9 }
 0xaf6   : > { %6372 = vmatprep.mubr.msk.bf16.mxu1 %vm1029_vm0, %v3848_v25 }
 0xaf7   : > { %4028 = vmax.xlane.f32.xlu0 %v10022_v62  ;;  %v6346_v17 = vpop.f32.mrb[136].mxu0 }
 0xaf8   : > { %v3812_v1 = vpop.f32.mrb[137].mxu0  ;;  %v10062_v24 = vadd.f32 %v10059_v59, %v6346_v17 }
 0xaf9   : > { %4034 = vmax.xlane.f32.xlu1 %v10030_v28  ;;  %v6347_v39 = vpop.f32.mrb[138].mxu0  ;;  %v10048_v33 = vadd.f32 %v10045_v7, %v3812_v1 }
 0xafa   : > { %v3815_v44 = vpop.f32.mrb[139].mxu0  ;;  %v10056_v31 = vadd.f32 %v10053_v57, %v6347_v39 }
 0xafb   : > { %v10042_v8 = vadd.f32 %v10039_v30, %v3815_v44  ;;  %4032 = vmax.xlane.f32.xlu0 %v10036_v11  ;;  %v10104_v44 = vld [vmem:[#allocation8 + $0x70] sm:$0xff] }
 0xafd   : > { %4038 = vmax.xlane.f32.xlu1 %v10042_v8  ;;  %6373 = vmatmul.mubr.msk.bf16.gmra.mrb[164].mxu1 %vm1029_vm0, %v3850_v3 }
 0xafe   : > { %6376 = vmatprep.mubr.msk.bf16.mxu1 %vm1029_vm0, %v3852_v6 }
 0xaff   : > { %4036 = vmax.xlane.f32.xlu0 %v10048_v33 }
 0xb01   : > { %4042 = vmax.xlane.f32.xlu1 %v10056_v31 }
 0xb03   : > { %4040 = vmax.xlane.f32.xlu0 %v10062_v24 }
 0xb05   : > { %6377 = vmatmul.mubr.msk.bf16.gmra.mrb[168].mxu1 %vm1029_vm0, %v3854_v43 }
 0xb06   : > { %6380 = vmatprep.mubr.msk.bf16.mxu1 %vm1029_vm0, %v3856_v2  ;;  %v10093_v2 = vld [vmem:[#allocation8 + $0x60] sm:$0xff] }
 0xb07   : > { %11271 = vst [vmem:[#allocation119_spill] sm:$0xff] %v10093_v2 }
 0xb0d   : > { %6381 = vmatmul.mubr.msk.bf16.gmra.mrb[172].mxu1 %vm1029_vm0, %v3858_v19 }
 0xb7a   : > { %v10069_v55 = vpop.f32.mrb[144].mxu1  ;;  %v4023_v58 = vpop.xlane.xlu1 %4022 }
 0xb7b   : > { %11263 = vst [vmem:[#allocation45_spill] sm:$0xff] %v10069_v55  ;;  %v10071_v56 = vpop.f32.mrb[145].mxu1 }
 0xb7c   : > { %11264 = vst [vmem:[#allocation60_spill] sm:$0xff] %v10071_v56  ;;  %v10073_v50 = vpop.f32.mrb[146].mxu1  ;;  %v4021_v56 = vpop.xlane.xlu0 %4020 }
 0xb7d   : > { %11265 = vst [vmem:[#allocation55_spill] sm:$0xff] %v10073_v50  ;;  %v10077_v22 = vpop.f32.mrb[147].mxu1  ;;  %v4084_v47 = vsub.f32 %v9992_v20, %v4021_v56 }
 0xb7e   : > { %11266 = vst [vmem:[#allocation21_spill] sm:$0xff] %v10077_v22 }
 0xb80   : > { %v4025_v27 = vpop.xlane.xlu0 %4024 }
 0xb81   : > { %v4086_v48 = vsub.f32 %v10003_v38, %v4025_v27 }
 0xb82   : > { %v4031_v37 = vpop.xlane.xlu1 %4030 }
 0xb83   : > { %v4120_v49 = vmul.f32 1.442695, %v4086_v48 }
 0xb84   : > { %v4027_v5 = vpop.xlane.xlu0 %4026 }
 0xb86   : > { %v4035_v15 = vpop.xlane.xlu1 %4034 }
 0xbb0   : > { %v10081_v25 = vpop.f32.mrb[148].mxu1 }
 0xbb1   : > { %11267 = vst [vmem:[#allocation18_spill] sm:$0xff] %v10081_v25  ;;  %v10083_v17 = vpop.f32.mrb[149].mxu1 }
 0xbb2   : > { %11268 = vst [vmem:[#allocation29_spill] sm:$0xff] %v10083_v17  ;;  %v10085_v1 = vpop.f32.mrb[150].mxu1  ;;  %v6350_v39 = vpop.f32.mrb[140].mxu0 }
 0xbb3   : > { %11269 = vst [vmem:[#allocation25_spill] sm:$0xff] %v10085_v1  ;;  %v10089_v3 = vpop.f32.mrb[151].mxu1  ;;  %v3828_v6 = vpop.f32.mrb[141].mxu0  ;;  %v10107_v41 = vadd.f32 %v10104_v44, %v6350_v39  ;;  %v11282_v1 = vld [vmem:[#allocation37_spill] sm:$0xff] }
 0xbb4   : > { %11270 = vst [vmem:[#allocation118_spill] sm:$0xff] %v10089_v3  ;;  %v10096_v19 = vadd.f32 %v10093_v2, %v3828_v6  ;;  %v6351_v9 = vpop.f32.mrb[142].mxu0  ;;  %v4039_v2 = vpop.xlane.xlu1 %4038 }
 0xbb5   : > { %v3831_v29 = vpop.f32.mrb[143].mxu0  ;;  %v10117_v23 = vadd.f32 %v10114_v53, %v6351_v9 }
 0xbb6   : > { %v10101_v45 = vadd.f32 %v10098_v0, %v3831_v29  ;;  %4044 = vmax.xlane.f32.xlu0 %v10096_v19 }
 0xbb8   : > { %v10109_v43 = vpop.f32.mrb[152].mxu1  ;;  %4046 = vmax.xlane.f32.xlu1 %v10101_v45  ;;  %v4043_v38 = vpop.xlane.xlu1 %4042 }
 0xbb9   : > { %11273 = vst [vmem:[#allocation121_spill] sm:$0xff] %v10109_v43  ;;  %v10112_v6 = vpop.f32.mrb[153].mxu1  ;;  %v4095_v48 = vsub.f32 %v10056_v31, %v4043_v38 }
 0xbba   : > { %11274 = vst [vmem:[#allocation122_spill] sm:$0xff] %v10112_v6  ;;  %v10119_v29 = vpop.f32.mrb[154].mxu1  ;;  %4048 = vmax.xlane.f32.xlu0 %v10107_v41 }
 0xbbb   : > { %11275 = vst [vmem:[#allocation123_spill] sm:$0xff] %v10119_v29  ;;  %v10124_v39 = vpop.f32.mrb[155].mxu1 }
 0xbbc   : > { %11276 = vst [vmem:[#allocation124_spill] sm:$0xff] %v10124_v39  ;;  %4050 = vmax.xlane.f32.xlu1 %v10117_v23  ;;  %v11281_v39 = vld [vmem:[#allocation36_spill] sm:$0xff] }
 0xbc0   : > { %v10129_v36 = vpop.f32.mrb[156].mxu1 }
 0xbc1   : > { %11277 = vst [vmem:[#allocation125_spill] sm:$0xff] %v10129_v36  ;;  %v10131_v17 = vpop.f32.mrb[157].mxu1  ;;  %v11283_v36 = vld [vmem:[#allocation43_spill] sm:$0xff] }
 0xbc2   : > { %11278 = vst [vmem:[#allocation126_spill] sm:$0xff] %v10131_v17  ;;  %v10133_v9 = vpop.f32.mrb[158].mxu1 }
 0xbc3   : > { %11279 = vst [vmem:[#allocation127_spill] sm:$0xff] %v10133_v9  ;;  %v10137_v25 = vpop.f32.mrb[159].mxu1  ;;  %v11284_v9 = vld [vmem:[#allocation41_spill] sm:$0xff] }
 0xbc4   : > { %11280 = vst [vmem:[#allocation128_spill] sm:$0xff] %v10137_v25 }
 0xbc8   : > { %v10141_v43 = vpop.f32.mrb[160].mxu1 }
 0xbc9   : > { %v10143_v29 = vpop.f32.mrb[161].mxu1 }
 0xbca   : > { %v10145_v63 = vpop.f32.mrb[162].mxu1 }
 0xbcb   : > { %v10147_v6 = vpop.f32.mrb[163].mxu1 }
 0xbcd   : > { %4326 = vrot.lane.b32.xlu1 %v11281_v39, %s7724_s14  ;;  %v11285_v39 = vld [vmem:[#allocation42_spill] sm:$0xff] }
 0xbd0   : > { %4324 = vrot.lane.b32.xlu0 %v11282_v1, %s7724_s14  ;;  %v10153_v3 = vpop.f32.mrb[164].mxu1  ;;  %v11286_v1 = vld [vmem:[#allocation40_spill] sm:$0xff] }
 0xbd1   : > { %4332 = vrot.lane.b32.xlu1 %v11283_v36, %s7724_s14  ;;  %v10157_v40 = vpop.f32.mrb[165].mxu1  ;;  %v11287_v36 = vld [vmem:[#allocation46_spill] sm:$0xff] }
 0xbd2   : > { %v10159_v17 = vpop.f32.mrb[166].mxu1 }
 0xbd3   : > { %v10161_v25 = vpop.f32.mrb[167].mxu1 }
 0xbd4   : > { %4328 = vrot.lane.b32.xlu0 %v11284_v9, %s7724_s14  ;;  %v11288_v9 = vld [vmem:[#allocation47_spill] sm:$0xff] }
 0xbd5   : > { %4334 = vrot.lane.b32.xlu1 %v11285_v39, %s7724_s14  ;;  %v11289_v39 = vld [vmem:[#allocation50_spill] sm:$0xff] }
 0xbd8   : > { %4330 = vrot.lane.b32.xlu0 %v11286_v1, %s7724_s14  ;;  %v10169_v22 = vpop.f32.mrb[168].mxu1  ;;  %v11290_v1 = vld [vmem:[#allocation51_spill] sm:$0xff] }
 0xbd9   : > { %4338 = vrot.lane.b32.xlu1 %v11287_v36, %s7724_s14  ;;  %v10173_v55 = vpop.f32.mrb[169].mxu1  ;;  %v11291_v36 = vld [vmem:[#allocation52_spill] sm:$0xff] }
 0xbda   : > { %v10175_v50 = vpop.f32.mrb[170].mxu1 }
 0xbdb   : > { %v10177_v26 = vpop.f32.mrb[171].mxu1 }
 0xbdc   : > { %4336 = vrot.lane.b32.xlu0 %v11288_v9, %s7724_s14  ;;  %v11294_v9 = vld [vmem:[#allocation53_spill] sm:$0xff] }
 0xbdd   : > { %4447 = vrot.lane.b32.xlu1 %v11289_v39, %s7724_s14  ;;  %v4029_v39 = vpop.xlane.xlu0 %4028 }
 0xbe0   : > { %4445 = vrot.lane.b32.xlu0 %v11290_v1, %s7724_s14  ;;  %v10185_v12 = vpop.f32.mrb[172].mxu1 }
 0xbe1   : > { %4451 = vrot.lane.b32.xlu1 %v11291_v36, %s7724_s14  ;;  %v10189_v21 = vpop.f32.mrb[173].mxu1  ;;  %v4033_v54 = vpop.xlane.xlu0 %4032  ;;  %v4088_v36 = vsub.f32 %v10022_v62, %v4029_v39  ;;  %v4085_v62 = vsub.f32 %v9997_v18, %v4023_v58 }
 0xbe2   : > { %11292 = vst [vmem:[#allocation36_spill] sm:$0xff] %v10189_v21  ;;  %v10191_v32 = vpop.f32.mrb[174].mxu1  ;;  %v4090_v1 = vsub.f32 %v10036_v11, %v4033_v54  ;;  %v4087_v54 = vsub.f32 %v10011_v4, %v4027_v5 }
 0xbe3   : > { %v10193_v16 = vpop.f32.mrb[175].mxu1  ;;  %v4124_v21 = vmul.f32 1.442695, %v4088_v36 }
 0xbe4   : > { %11293 = vst [vmem:[#allocation37_spill] sm:$0xff] %v10193_v16  ;;  %4449 = vrot.lane.b32.xlu0 %v11294_v9, %s7724_s14  ;;  %v4128_v46 = vmul.f32 1.442695, %v4090_v1  ;;  %v4091_v9 = vsub.f32 %v10030_v28, %v4035_v15  ;;  %v4116_v16 = vmul.f32 1.442695, %v4084_v47  ;;  %v4089_v47 = vsub.f32 %v10016_v14, %v4031_v37 }
 0xbe5   : > { %v4037_v10 = vpop.xlane.xlu0 %4036  ;;  %v4122_v20 = vmul.f32 1.442695, %v4087_v54 }
 0xbe6   : > { %7345 = vpow2.f32 %v4128_v46  ;;  %v4130_v11 = vmul.f32 1.442695, %v4091_v9  ;;  %v4118_v46 = vmul.f32 1.442695, %v4085_v62  ;;  %v4126_v5 = vmul.f32 1.442695, %v4089_v47 }
 0xbe7   : > { %7347 = vpow2.f32 %v4120_v49 }
 0xbe8   : > { %7349 = vpow2.f32 %v4124_v21  ;;  %v4093_v21 = vsub.f32 %v10042_v8, %v4039_v2 }
 0xbe9   : > { %v4041_v0 = vpop.xlane.xlu0 %4040  ;;  %7351 = vpow2.f32 %v4116_v16  ;;  %v4138_v16 = vmul.f32 1.442695, %v4095_v48 }
 0xbea   : > { %v4094_v27 = vsub.f32 %v10062_v24, %v4041_v0  ;;  %7353 = vpow2.f32 %v4130_v11  ;;  %v4092_v0 = vsub.f32 %v10048_v33, %v4037_v10  ;;  %v4134_v37 = vmul.f32 1.442695, %v4093_v21 }
 0xbeb   : > { %7355 = vpow2.f32 %v4122_v20 }
 0xbec   : > { %v4136_v56 = vmul.f32 1.442695, %v4094_v27  ;;  %v4132_v14 = vmul.f32 1.442695, %v4092_v0 }
 0xbee   : > { %7357 = vpow2.f32 %v4136_v56 }
 0xbef   : > { %7359 = vpow2.f32 %v4118_v46 }
 0xbf0   : > { %v10206_v15 = vpop.eup %7345  ;;  %7361 = vpow2.f32 %v4138_v16 }
 0xbf1   : > { %v10210_v49 = vpop.eup %7347  ;;  %7363 = vpow2.f32 %v4126_v5 }
 0xbf2   : > { %v10214_v58 = vpop.eup %7349  ;;  %7365 = vpow2.f32 %v4134_v37 }
 0xbf3   : > { %v10218_v18 = vpop.eup %7351  ;;  %7367 = vpow2.f32 %v4132_v14 }
 0xbf4   : > { %v10221_v4 = vpop.eup %7353 }
 0xbf5   : > { %v10224_v28 = vpop.eup %7355 }
 0xbf8   : > { %v10227_v10 = vpop.eup %7357 }
 0xbf9   : > { %v10230_v8 = vpop.eup %7359 }
 0xbfa   : > { %v10233_v33 = vpop.eup %7361 }
 0xbfb   : > { %v10236_v31 = vpop.eup %7363 }
 0xbfc   : > { %v10239_v24 = vpop.eup %7365 }
 0xbfd   : > { %v10242_v2 = vpop.eup %7367 }
 0xc03   : > { %4192 = vadd.xlane.f32.xlu0 %v10206_v15 }
 0xc05   : > { %4184 = vadd.xlane.f32.xlu1 %v10210_v49 }
 0xc07   : > { %4188 = vadd.xlane.f32.xlu0 %v10214_v58 }
 0xc09   : > { %4180 = vadd.xlane.f32.xlu1 %v10218_v18 }
 0xc0b   : > { %4194 = vadd.xlane.f32.xlu0 %v10221_v4 }
 0xc0d   : > { %4186 = vadd.xlane.f32.xlu1 %v10224_v28 }
 0xc0f   : > { %4200 = vadd.xlane.f32.xlu0 %v10227_v10 }
 0xc11   : > { %4182 = vadd.xlane.f32.xlu1 %v10230_v8 }
 0xc13   : > { %4202 = vadd.xlane.f32.xlu0 %v10233_v33 }
 0xc15   : > { %4190 = vadd.xlane.f32.xlu1 %v10236_v31 }
 0xc17   : > { %4198 = vadd.xlane.f32.xlu0 %v10239_v24 }
 0xc19   : > { %4196 = vadd.xlane.f32.xlu1 %v10242_v2 }
 0xc43   : > { %v4045_v39 = vpop.xlane.xlu0 %4044 }
 0xc44   : > { %v4096_v9 = vsub.f32 %v10096_v19, %v4045_v39 }
 0xc45   : > { %v4047_v1 = vpop.xlane.xlu1 %4046 }
 0xc46   : > { %v4097_v27 = vsub.f32 %v10101_v45, %v4047_v1  ;;  %v4140_v48 = vmul.f32 1.442695, %v4096_v9  ;;  %v10262_v1 = vadd.f32 %v10008_v13, %v10145_v63  ;;  %v10267_v9 = vadd.f32 %v10000_v42, %v10141_v43 }
 0xc47   : > { %v4049_v36 = vpop.xlane.xlu0 %4048  ;;  %v10277_v13 = vadd.f32 %v9989_v51, %v10143_v29  ;;  %v10282_v42 = vadd.f32 %v10027_v52, %v10159_v17  ;;  %v10287_v43 = vadd.f32 %v10033_v35, %v10153_v3  ;;  %v10292_v51 = vadd.f32 %v10013_v60, %v10161_v25 }
 0xc48   : > { %v4098_v54 = vsub.f32 %v10107_v41, %v4049_v36  ;;  %v4142_v47 = vmul.f32 1.442695, %v4097_v27  ;;  %v10297_v52 = vadd.f32 %v10019_v34, %v10157_v40  ;;  %v10302_v35 = vadd.f32 %v10053_v57, %v10175_v50 }
 0xc49   : > { %v4051_v11 = vpop.xlane.xlu1 %4050  ;;  %v10307_v60 = vadd.f32 %v10059_v59, %v10169_v22  ;;  %v10312_v25 = vadd.f32 %v10039_v30, %v10177_v26  ;;  %v10317_v40 = vadd.f32 %v10045_v7, %v10173_v55  ;;  %v10322_v34 = vadd.f32 %v10114_v53, %v10191_v32  ;;  %v11295_v26 = vld [vmem:[#allocation37_spill] sm:$0xff]  ;;  %v11296_v30 = vld [vmem:[#allocation120_spill] sm:$0xff]  ;;  %v11298_v55 = vld [vmem:[#allocation119_spill] sm:$0xff] }
 0xc4a   : > { %v4144_v38 = vmul.f32 1.442695, %v4098_v54  ;;  %v4099_v62 = vsub.f32 %v10117_v23, %v4051_v11  ;;  %v10272_v54 = vadd.f32 %v9994_v61, %v10147_v6  ;;  %v10327_v57 = vadd.f32 %v10104_v44, %v10185_v12  ;;  %v11297_v7 = vld [vmem:[#allocation36_spill] sm:$0xff]  ;;  %v11300_v22 = vld [vmem:[#allocation57_spill] sm:$0xff] }
 0xc4b   : > { %v4325_v20 = vpop.permute.xlu0 %4324  ;;  %v10332_v59 = vadd.f32 %v11296_v30, %v11295_v26  ;;  %v10337_v50 = vadd.f32 %v11298_v55, %v11297_v7  ;;  %v11299_v53 = vld [vmem:[#allocation56_spill] sm:$0xff] }
 0xc4c   : > { %7369 = vpow2.f32 %v4144_v38  ;;  %v4146_v56 = vmul.f32 1.442695, %v4099_v62  ;;  %6384 = vmatprep.subr.bf16.mxu0 %v4325_v20 }
 0xc4d   : > { %v4327_v46 = vpop.permute.xlu1 %4326  ;;  %6385 = vmatpush3.bf16.msra.mxu0 %v4325_v20 }
 0xc4e   : > { %7371 = vpow2.f32 %v4146_v56  ;;  %6386 = vmatprep.subr.bf16.mxu0 %v4327_v46 }
 0xc4f   : > { %v4329_v21 = vpop.permute.xlu0 %4328  ;;  %7373 = vpow2.f32 %v4140_v48 }
 0xc50   : > { %7375 = vpow2.f32 %v4142_v47 }
 0xc51   : > { %v4333_v19 = vpop.permute.xlu1 %4332  ;;  %6387 = vmatpush3.bf16.msra.mxu0 %v4327_v46 }
 0xc52   : > { %6388 = vmatprep.subr.bf16.mxu0 %v4329_v21 }
 0xc53   : > { %v4331_v41 = vpop.permute.xlu0 %4330 }
 0xc55   : > { %v4335_v45 = vpop.permute.xlu1 %4334  ;;  %6389 = vmatpush3.bf16.msra.mxu0 %v4329_v21 }
 0xc56   : > { %v10249_v23 = vpop.eup %7369  ;;  %6390 = vmatprep.subr.bf16.mxu0 %v4331_v41 }
 0xc57   : > { %4208 = vadd.xlane.f32.xlu1 %v10249_v23  ;;  %v4337_v16 = vpop.permute.xlu0 %4336 }
 0xc58   : > { %v10252_v5 = vpop.eup %7371 }
 0xc59   : > { %v4339_v0 = vpop.permute.xlu1 %4338  ;;  %4210 = vadd.xlane.f32.xlu0 %v10252_v5  ;;  %6391 = vmatpush3.bf16.msra.mxu0 %v4331_v41  ;;  %v10255_v37 = vpop.eup %7373 }
 0xc5a   : > { %6392 = vmatprep.subr.bf16.mxu0 %v4333_v19  ;;  %v10258_v39 = vpop.eup %7375 }
 0xc5b   : > { %4204 = vadd.xlane.f32.xlu1 %v10255_v37  ;;  %v4446_v14 = vpop.permute.xlu0 %4445 }
 0xc5c   : > { %6416 = vmatprep.subr.bf16.mxu1 %v4446_v14 }
 0xc5d   : > { %v4448_v36 = vpop.permute.xlu1 %4447  ;;  %4206 = vadd.xlane.f32.xlu0 %v10258_v39  ;;  %6393 = vmatpush3.bf16.msra.mxu0 %v4333_v19 }
 0xc5e   : > { %6417 = vmatpush3.bf16.msra.mxu1 %v4446_v14  ;;  %6394 = vmatprep.subr.bf16.mxu0 %v4335_v45 }
 0xc5f   : > { %6418 = vmatprep.subr.bf16.mxu1 %v4448_v36  ;;  %4058 = vmax.xlane.f32.xlu1 %v10262_v1  ;;  %v4450_v63 = vpop.permute.xlu0 %4449 }
 0xc61   : > { %4056 = vmax.xlane.f32.xlu0 %v10267_v9  ;;  %6395 = vmatpush3.bf16.msra.mxu0 %v4335_v45  ;;  %v4452_v61 = vpop.permute.xlu1 %4451 }
 0xc62   : > { %6419 = vmatpush3.bf16.msra.mxu1 %v4448_v36  ;;  %6396 = vmatprep.subr.bf16.mxu0 %v4337_v16 }
 0xc63   : > { %6420 = vmatprep.subr.bf16.mxu1 %v4450_v63  ;;  %4054 = vmax.xlane.f32.xlu1 %v10272_v54 }
 0xc65   : > { %4052 = vmax.xlane.f32.xlu0 %v10277_v13  ;;  %6397 = vmatpush3.bf16.msra.mxu0 %v4337_v16 }
 0xc66   : > { %6421 = vmatpush3.bf16.msra.mxu1 %v4450_v63  ;;  %6398 = vmatprep.subr.bf16.mxu0 %v4339_v0 }
 0xc67   : > { %6422 = vmatprep.subr.bf16.mxu1 %v4452_v61  ;;  %4066 = vmax.xlane.f32.xlu1 %v10282_v42 }
 0xc69   : > { %4064 = vmax.xlane.f32.xlu0 %v10287_v43  ;;  %6399 = vmatpush3.bf16.msra.mxu0 %v4339_v0 }
 0xc6a   : > { %6423 = vmatpush3.bf16.msra.mxu1 %v4452_v61 }
 0xc6b   : > { %4062 = vmax.xlane.f32.xlu1 %v10292_v51 }
 0xc6d   : > { %4060 = vmax.xlane.f32.xlu0 %v10297_v52 }
 0xc6f   : > { %4074 = vmax.xlane.f32.xlu1 %v10302_v35 }
 0xc71   : > { %4072 = vmax.xlane.f32.xlu0 %v10307_v60 }
 0xc73   : > { %4070 = vmax.xlane.f32.xlu1 %v10312_v25 }
 0xc75   : > { %4068 = vmax.xlane.f32.xlu0 %v10317_v40 }
 0xc77   : > { %4082 = vmax.xlane.f32.xlu1 %v10322_v34 }
 0xc79   : > { %4080 = vmax.xlane.f32.xlu0 %v10327_v57 }
 0xc7b   : > { %4078 = vmax.xlane.f32.xlu1 %v10332_v59 }
 0xc7d   : > { %4076 = vmax.xlane.f32.xlu0 %v10337_v50 }
 0xc8c   : > { %4455 = vrot.lane.b32.xlu1 %v11299_v53, %s7724_s14 }
 0xc90   : > { %v4193_v32 = vpop.xlane.xlu0 %4192 }
 0xc92   : > { %v4185_v12 = vpop.xlane.xlu1 %4184 }
 0xc93   : > { %4453 = vrot.lane.b32.xlu0 %v11300_v22, %s7724_s14 }
 0xc94   : > { %v4189_v17 = vpop.xlane.xlu0 %4188 }
 0xc96   : > { %v4181_v44 = vpop.xlane.xlu1 %4180 }
 0xc98   : > { %v4195_v3 = vpop.xlane.xlu0 %4194 }
 0xc9a   : > { %v4187_v6 = vpop.xlane.xlu1 %4186 }
 0xc9b   : > { %7377 = vrcp.f32 %v4187_v6 }
 0xc9c   : > { %v4201_v29 = vpop.xlane.xlu0 %4200  ;;  %7379 = vrcp.f32 %v4181_v44 }
 0xc9d   : > { %7381 = vrcp.f32 %v4185_v12 }
 0xc9e   : > { %v4183_v11 = vpop.xlane.xlu1 %4182 }
 0xc9f   : > { %7383 = vrcp.f32 %v4183_v11 }
 0xca0   : > { %v4203_v27 = vpop.xlane.xlu0 %4202  ;;  %7385 = vrcp.f32 %v4189_v17 }
 0xca2   : > { %v4191_v38 = vpop.xlane.xlu1 %4190 }
 0xca3   : > { %7387 = vrcp.f32 %v4191_v38 }
 0xca4   : > { %7389 = vrcp.f32 %v4195_v3  ;;  %v4199_v62 = vpop.xlane.xlu0 %4198 }
 0xca5   : > { %7391 = vrcp.f32 %v4193_v32  ;;  %v7378_v20 = vpop.eup %7377 }
 0xca6   : > { %7393 = vrcp.f32 %v4199_v62  ;;  %v4197_v48 = vpop.xlane.xlu1 %4196  ;;  %v7380_v56 = vpop.eup %7379  ;;  %v4279_v21 = vmul.f32 %v7378_v20, %v10224_v28 }
 0xca7   : > { %7395 = vrcp.f32 %v4197_v48  ;;  %v7382_v46 = vpop.eup %7381  ;;  %v4276_v19 = vmul.f32 %v7380_v56, %v10218_v18 }
 0xca8   : > { %v4278_v16 = vmul.f32 %v7382_v46, %v10210_v49  ;;  %7397 = vrcp.f32 %v4203_v27 }
 0xca9   : > { %v7384_v47 = vpop.eup %7383  ;;  %7399 = vrcp.f32 %v4201_v29 }
 0xcaa   : > { %v4277_v41 = vmul.f32 %v7384_v47, %v10230_v8  ;;  %v7386_v45 = vpop.eup %7385  ;;  %v4309_v36 = vpack.c.bf16 %v4279_v21, %v4278_v16 }
 0xcab   : > { %v4280_v61 = vmul.f32 %v7386_v45, %v10214_v58 }
 0xcac   : > { %v4308_v0 = vpack.c.bf16 %v4277_v41, %v4276_v19 }
 0xcad   : > { %v7388_v14 = vpop.eup %7387 }
 0xcae   : > { %v7390_v63 = vpop.eup %7389  ;;  %6400 = vmatprep.mubr.bf16.mxu0 %v4308_v0  ;;  %v4281_v26 = vmul.f32 %v7388_v14, %v10236_v31 }
 0xcaf   : > { %v7392_v30 = vpop.eup %7391  ;;  %6401 = vmatmul.mubr.bf16.vlgmr.msra.gmra.mrb[144].mxu0 %v4309_v36  ;;  %v4283_v8 = vmul.f32 %v7390_v63, %v10221_v4 }
 0xcb0   : > { %v7394_v28 = vpop.eup %7393  ;;  %v4310_v18 = vpack.c.bf16 %v4281_v26, %v4280_v61  ;;  %v4282_v55 = vmul.f32 %v7392_v30, %v10206_v15 }
 0xcb1   : > { %v7396_v7 = vpop.eup %7395  ;;  %v4285_v53 = vmul.f32 %v7394_v28, %v10239_v24 }
 0xcb2   : > { %6404 = vmatprep.mubr.bf16.mxu0 %v4310_v18  ;;  %v4284_v49 = vmul.f32 %v7396_v7, %v10242_v2  ;;  %v4311_v32 = vpack.c.bf16 %v4283_v8, %v4282_v55  ;;  %v7398_v12 = vpop.eup %7397 }
 0xcb3   : > { %v7400_v58 = vpop.eup %7399  ;;  %v4287_v31 = vmul.f32 %v7398_v12, %v10233_v33 }
 0xcb4   : > { %v4312_v22 = vpack.c.bf16 %v4285_v53, %v4284_v49  ;;  %v4286_v17 = vmul.f32 %v7400_v58, %v10227_v10 }
 0xcb6   : > { %v4313_v44 = vpack.c.bf16 %v4287_v31, %v4286_v17 }
 0xcb7   : > { %6405 = vmatmul.mubr.bf16.gmra.mrb[148].mxu0 %v4311_v32 }
 0xcb8   : > { %6408 = vmatprep.mubr.bf16.mxu0 %v4312_v22 }
 0xcbf   : > { %6409 = vmatmul.mubr.bf16.gmra.mrb[152].mxu0 %v4313_v44 }
 0xce4   : > { %v4209_v4 = vpop.xlane.xlu1 %4208 }
 0xce6   : > { %v4211_v3 = vpop.xlane.xlu0 %4210 }
 0xce7   : > { %7401 = vrcp.f32 %v4211_v3 }
 0xce8   : > { %v4205_v2 = vpop.xlane.xlu1 %4204 }
 0xce9   : > { %7403 = vrcp.f32 %v4205_v2 }
 0xcea   : > { %7405 = vrcp.f32 %v4209_v4  ;;  %v4207_v15 = vpop.xlane.xlu0 %4206 }
 0xceb   : > { %7407 = vrcp.f32 %v4207_v15 }
 0xcec   : > { %v4059_v24 = vpop.xlane.xlu1 %4058 }
 0xced   : > { %v4103_v6 = vsub.f32 %v10262_v1, %v4059_v24 }
 0xcee   : > { %v4057_v29 = vpop.xlane.xlu0 %4056 }
 0xcef   : > { %v4154_v11 = vmul.f32 1.442695, %v4103_v6  ;;  %v4102_v27 = vsub.f32 %v10267_v9, %v4057_v29 }
 0xcf0   : > { %v4055_v33 = vpop.xlane.xlu1 %4054 }
 0xcf1   : > { %7409 = vpow2.f32 %v4154_v11  ;;  %v4152_v10 = vmul.f32 1.442695, %v4102_v27  ;;  %v4101_v38 = vsub.f32 %v10272_v54, %v4055_v33  ;;  %v7402_v62 = vpop.eup %7401 }
 0xcf2   : > { %v4053_v20 = vpop.xlane.xlu0 %4052  ;;  %v4291_v9 = vmul.f32 %v7402_v62, %v10252_v5  ;;  %v11301_v62 = vld [vmem:[#allocation61_spill] sm:$0xff] }
 0xcf3   : > { %v7404_v48 = vpop.eup %7403  ;;  %7411 = vpow2.f32 %v4152_v10  ;;  %v4150_v56 = vmul.f32 1.442695, %v4101_v38  ;;  %v4100_v46 = vsub.f32 %v10277_v13, %v4053_v20  ;;  %v11302_v20 = vld [vmem:[#allocation59_spill] sm:$0xff] }
 0xcf4   : > { %v7406_v47 = vpop.eup %7405  ;;  %v4067_v21 = vpop.xlane.xlu1 %4066  ;;  %v4288_v16 = vmul.f32 %v7404_v48, %v10255_v37  ;;  %v11303_v48 = vld [vmem:[#allocation17_spill] sm:$0xff] }
 0xcf5   : > { %v7408_v19 = vpop.eup %7407  ;;  %7413 = vpow2.f32 %v4150_v56  ;;  %v4148_v1 = vmul.f32 1.442695, %v4100_v46  ;;  %v4107_v41 = vsub.f32 %v10282_v42, %v4067_v21  ;;  %v4290_v13 = vmul.f32 %v7406_v47, %v10249_v23  ;;  %v11304_v56 = vld [vmem:[#allocation58_spill] sm:$0xff]  ;;  %v11306_v21 = vld [vmem:[#allocation19_spill] sm:$0xff] }
 0xcf6   : > { %v4065_v45 = vpop.xlane.xlu0 %4064  ;;  %v4289_v54 = vmul.f32 %v7408_v19, %v10258_v39  ;;  %v11305_v46 = vpack.i.bf16 %v11303_v48, %v11304_v56  ;;  %v11307_v19 = vld [vmem:[#allocation15_spill] sm:$0xff]  ;;  %v11324_v56 = vld [vmem:[#allocation30_spill] sm:$0xff] }
 0xcf7   : > { %7415 = vpow2.f32 %v4148_v1  ;;  %v4162_v0 = vmul.f32 1.442695, %v4107_v41  ;;  %v4106_v14 = vsub.f32 %v10287_v43, %v4065_v45  ;;  %v4315_v42 = vpack.c.bf16 %v4291_v9, %v4290_v13  ;;  %v11309_v45 = vld [vmem:[#allocation26_spill] sm:$0xff]  ;;  %v11312_v13 = vld [vmem:[#allocation20_spill] sm:$0xff] }
 0xcf8   : > { %v4063_v36 = vpop.xlane.xlu1 %4062  ;;  %v4314_v63 = vpack.c.bf16 %v4289_v54, %v4288_v16  ;;  %v11308_v1 = vpack.i.bf16 %v11306_v21, %v11307_v19  ;;  %v11310_v16 = vld [vmem:[#allocation22_spill] sm:$0xff] }
 0xcf9   : > { %7417 = vpow2.f32 %v4162_v0  ;;  %v4160_v61 = vmul.f32 1.442695, %v4106_v14  ;;  %v4105_v26 = vsub.f32 %v10292_v51, %v4063_v36  ;;  %v11311_v54 = vpack.i.bf16 %v11309_v45, %v11310_v16 }
 0xcfa   : > { %6412 = vmatprep.mubr.bf16.mxu0 %v4314_v63  ;;  %v4061_v5 = vpop.xlane.xlu0 %4060  ;;  %v6953_v63 = vld [vmem:[#allocation7] sm:$0xff]  }
 0xcfb   : > { %v10368_v30 = vpop.eup %7409  ;;  %7419 = vpow2.f32 %v4160_v61  ;;  %v4158_v37 = vmul.f32 1.442695, %v4105_v26  ;;  %v4104_v39 = vsub.f32 %v10297_v52, %v4061_v5  ;;  %6413 = vmatmul.mubr.bf16.gmra.mrb[156].mxu0 %v4315_v42  ;;  %6448 = vmatprep.subr.bf16.mxu0 %v6953_v63  ;;  %v6954_v61 = vld [vmem:[#allocation7 + $0x8] sm:$0xff]   ;;  %v6955_v26 = vld [vmem:[#allocation7 + $0x10] sm:$0xff]   ;;  %v6956_v42 = vld [vmem:[#allocation7 + $0x18] sm:$0xff]  }
 0xcfc   : > { %4218 = vadd.xlane.f32.xlu0 %v10368_v30  ;;  %v4075_v43 = vpop.xlane.xlu1 %4074  ;;  %6449 = vmatpush3.bf16.msra.mxu0 %v6953_v63  ;;  %v6957_v5 = vld [vmem:[#allocation7 + $0x20] sm:$0xff]  }
 0xcfd   : > { %v10372_v23 = vpop.eup %7411  ;;  %7421 = vpow2.f32 %v4158_v37  ;;  %v4156_v28 = vmul.f32 1.442695, %v4104_v39  ;;  %v4111_v18 = vsub.f32 %v10302_v35, %v4075_v43  ;;  %6450 = vmatprep.subr.bf16.mxu0 %v6954_v61  ;;  %v6958_v37 = vld [vmem:[#allocation7 + $0x28] sm:$0xff]   ;;  %v6959_v39 = vld [vmem:[#allocation7 + $0x30] sm:$0xff]   ;;  %v6960_v43 = vld [vmem:[#allocation7 + $0x38] sm:$0xff]  }
 0xcfe   : > { %4216 = vadd.xlane.f32.xlu1 %v10372_v23  ;;  %v4073_v51 = vpop.xlane.xlu0 %4072 }
 0xcff   : > { %v10376_v7 = vpop.eup %7413  ;;  %7423 = vpow2.f32 %v4156_v28  ;;  %v4170_v8 = vmul.f32 1.442695, %v4111_v18  ;;  %v4110_v49 = vsub.f32 %v10307_v60, %v4073_v51 }
 0xd00   : > { %4214 = vadd.xlane.f32.xlu0 %v10376_v7  ;;  %v4071_v52 = vpop.xlane.xlu1 %4070  ;;  %6451 = vmatpush3.bf16.msra.mxu0 %v6954_v61 }
 0xd01   : > { %v10380_v55 = vpop.eup %7415  ;;  %7425 = vpow2.f32 %v4170_v8  ;;  %v4168_v53 = vmul.f32 1.442695, %v4110_v49  ;;  %v4109_v32 = vsub.f32 %v10312_v25, %v4071_v52  ;;  %6452 = vmatprep.subr.bf16.mxu0 %v6955_v26 }
 0xd02   : > { %4212 = vadd.xlane.f32.xlu1 %v10380_v55  ;;  %v4069_v35 = vpop.xlane.xlu0 %4068 }
 0xd03   : > { %v10384_v12 = vpop.eup %7417  ;;  %7427 = vpow2.f32 %v4168_v53  ;;  %v4166_v22 = vmul.f32 1.442695, %v4109_v32  ;;  %v4108_v58 = vsub.f32 %v10317_v40, %v4069_v35 }
 0xd04   : > { %4226 = vadd.xlane.f32.xlu0 %v10384_v12  ;;  %v4083_v60 = vpop.xlane.xlu1 %4082  ;;  %6453 = vmatpush3.bf16.msra.mxu0 %v6955_v26  ;;  %v11330_v26 = vld [vmem:[#allocation96_spill] sm:$0xff] }
 0xd05   : > { %v10388_v31 = vpop.eup %7419  ;;  %7429 = vpow2.f32 %v4166_v22  ;;  %v4164_v17 = vmul.f32 1.442695, %v4108_v58  ;;  %v4115_v41 = vsub.f32 %v10322_v34, %v4083_v60  ;;  %v11313_v34 = vld [vmem:[#allocation38_spill] sm:$0xff]  ;;  %6454 = vmatprep.subr.bf16.mxu0 %v6956_v42  ;;  %v11315_v58 = vld [vmem:[#allocation31_spill] sm:$0xff]  ;;  %v11316_v60 = vld [vmem:[#allocation16_spill] sm:$0xff] }
 0xd06   : > { %4224 = vadd.xlane.f32.xlu1 %v10388_v31  ;;  %v4081_v44 = vpop.xlane.xlu0 %4080  ;;  %v11314_v36 = vpack.i.bf16 %v11312_v13, %v11313_v34  ;;  %v11327_v34 = vld [vmem:[#allocation95_spill] sm:$0xff] }
 0xd07   : > { %v10391_v25 = vpop.eup %7421  ;;  %7431 = vpow2.f32 %v4164_v17  ;;  %v4114_v4 = vsub.f32 %v10327_v57, %v4081_v44  ;;  %v4178_v0 = vmul.f32 1.442695, %v4115_v41  ;;  %v11317_v17 = vpack.i.bf16 %v11315_v58, %v11316_v60  ;;  %v11318_v44 = vld [vmem:[#allocation28_spill] sm:$0xff] }
 0xd08   : > { %4222 = vadd.xlane.f32.xlu0 %v10391_v25  ;;  %v4079_v2 = vpop.xlane.xlu1 %4078  ;;  %6455 = vmatpush3.bf16.msra.mxu0 %v6956_v42  ;;  %v11331_v42 = vld [vmem:[#allocation94_spill] sm:$0xff] }
 0xd09   : > { %v10395_v3 = vpop.eup %7423  ;;  %v4176_v40 = vmul.f32 1.442695, %v4114_v4  ;;  %v4113_v47 = vsub.f32 %v10332_v59, %v4079_v2  ;;  %6456 = vmatprep.subr.bf16.mxu0 %v6957_v5  ;;  %v11319_v4 = vld [vmem:[#allocation24_spill] sm:$0xff] }
 0xd0a   : > { %4220 = vadd.xlane.f32.xlu1 %v10395_v3  ;;  %v4077_v15 = vpop.xlane.xlu0 %4076 }
 0xd0b   : > { %v10398_v24 = vpop.eup %7425  ;;  %7433 = vpow2.f32 %v4176_v40  ;;  %v4112_v6 = vsub.f32 %v10337_v50, %v4077_v15  ;;  %v4174_v9 = vmul.f32 1.442695, %v4113_v47  ;;  %v11320_v40 = vpack.i.bf16 %v11318_v44, %v11319_v4  ;;  %v11339_v44 = vld [vmem:[#allocation99_spill] sm:$0xff]  ;;  %v11340_v4 = vld [vmem:[#allocation97_spill] sm:$0xff] }
 0xd0c   : > { %4234 = vadd.xlane.f32.xlu0 %v10398_v24  ;;  %v4456_v33 = vpop.permute.xlu1 %4455  ;;  %6457 = vmatpush3.bf16.msra.mxu0 %v6957_v5  ;;  %v11332_v5 = vpack.i.bf16 %v11330_v26, %v11331_v42 }
 0xd0d   : > { %v10402_v29 = vpop.eup %7427  ;;  %v4172_v11 = vmul.f32 1.442695, %v4112_v6  ;;  %6458 = vmatprep.subr.bf16.mxu0 %v6958_v37 }
 0xd0e   : > { %4232 = vadd.xlane.f32.xlu1 %v10402_v29  ;;  %v4454_v57 = vpop.permute.xlu0 %4453 }
 0xd0f   : > { %v10405_v27 = vpop.eup %7429  ;;  %7435 = vpow2.f32 %v4172_v11  ;;  %6424 = vmatprep.subr.bf16.mxu1 %v4454_v57 }
 0xd10   : > { %4230 = vadd.xlane.f32.xlu0 %v10405_v27  ;;  %6425 = vmatpush3.bf16.msra.mxu1 %v4454_v57  ;;  %7437 = vpow2.f32 %v4174_v9 }
 0xd11   : > { %v10408_v10 = vpop.eup %7431  ;;  %6426 = vmatprep.subr.bf16.mxu1 %v4456_v33  ;;  %7439 = vpow2.f32 %v4178_v0  ;;  %6459 = vmatpush3.bf16.msra.mxu0 %v6958_v37 }
 0xd12   : > { %4228 = vadd.xlane.f32.xlu1 %v10408_v10  ;;  %6460 = vmatprep.subr.bf16.mxu0 %v6959_v39 }
 0xd14   : > { %6427 = vmatpush3.bf16.msra.mxu1 %v4456_v33 }
 0xd15   : > { %v10411_v50 = vpop.eup %7433  ;;  %6461 = vmatpush3.bf16.msra.mxu0 %v6959_v39 }
 0xd16   : > { %4240 = vadd.xlane.f32.xlu1 %v10411_v50  ;;  %6462 = vmatprep.subr.bf16.mxu0 %v6960_v43 }
 0xd19   : > { %v10414_v38 = vpop.eup %7435  ;;  %6463 = vmatpush3.bf16.msra.mxu0 %v6960_v43 }
 0xd1a   : > { %4236 = vadd.xlane.f32.xlu1 %v10414_v38  ;;  %v10435_v14 = vpop.eup %7437 }
 0xd1b   : > { %v10438_v59 = vpop.eup %7439 }
 0xd26   : > { %4457 = vrot.lane.b32.xlu0 %v11301_v62, %s7724_s14  ;;  %v11321_v62 = vld [vmem:[#allocation48_spill] sm:$0xff] }
 0xd2b   : > { %4459 = vrot.lane.b32.xlu1 %v11302_v20, %s7724_s14  ;;  %v11322_v20 = vld [vmem:[#allocation44_spill] sm:$0xff] }
 0xd2c   : > { %v11323_v48 = vpack.i.bf16 %v11321_v62, %v11322_v20  ;;  %v11348_v20 = vld [vmem:[#allocation49_spill] sm:$0xff] }
 0xd2f   : > { %6671 = vrot.lane.b32.xlu1 %v11305_v46, %s7724_s14  ;;  %v11325_v46 = vld [vmem:[#allocation32_spill] sm:$0xff] }
 0xd30   : > { %v11326_v47 = vpack.i.bf16 %v11324_v56, %v11325_v46 }
 0xd33   : > { %6676 = vrot.lane.b32.xlu1 %v11308_v1, %s7723_s26 }
 0xd37   : > { %6681 = vrot.lane.b32.xlu1 %v11311_v54, %s7723_s26 }
 0xd45   : > { %4238 = vadd.xlane.f32.xlu0 %v10435_v14 }
 0xd49   : > { %4242 = vadd.xlane.f32.xlu0 %v10438_v59 }
 0xd5f   : > { %6666 = vrot.lane.b32.xlu0 %v11314_v36, %s7724_s14  ;;  %v11328_v36 = vld [vmem:[#allocation33_spill] sm:$0xff] }
 0xd60   : > { %v11329_v63 = vpack.i.bf16 %v11327_v34, %v11328_v36 }
 0xd82   : > { %v6402_v28 = vpop.f32.mrb[144].mxu0 }
 0xd83   : > { %v4382_v18 = vpop.f32.mrb[145].mxu0 }
 0xd84   : > { %v6403_v51 = vpop.f32.mrb[146].mxu0 }
 0xd85   : > { %v6690_v8 = vpack.i.bf16 %v6403_v51, %v6402_v28  ;;  %v4385_v49 = vpop.f32.mrb[147].mxu0  ;;  %v11333_v28 = vld [vmem:[#allocation117_spill] sm:$0xff] }
 0xd86   : > { %v6685_v52 = vpack.i.bf16 %v4385_v49, %v4382_v18  ;;  %v11334_v18 = vld [vmem:[#allocation54_spill] sm:$0xff] }
 0xd87   : > { %6691 = vrot.lane.b32.xlu1 %v6690_v8, %s7722_s24  ;;  %v11335_v51 = vpack.i.bf16 %v11333_v28, %v11334_v18 }
 0xd88   : > { %6686 = vrot.lane.b32.xlu0 %v6685_v52, %s7722_s24  ;;  %v11336_v52 = vld [vmem:[#allocation23_spill] sm:$0xff] }
 0xd89   : > { %v4219_v53 = vpop.xlane.xlu0 %4218 }
 0xd8a   : > { %v6406_v32 = vpop.f32.mrb[148].mxu0 }
 0xd8b   : > { %v4398_v35 = vpop.f32.mrb[149].mxu0  ;;  %v4217_v22 = vpop.xlane.xlu1 %4216  ;;  %6701 = vrot.lane.b32.xlu1 %v11317_v17, %s7724_s14 }
 0xd8c   : > { %6696 = vrot.lane.b32.xlu0 %v11320_v40, %s7724_s14  ;;  %v6407_v2 = vpop.f32.mrb[150].mxu0  ;;  %v11341_v40 = vpack.i.bf16 %v11339_v44, %v11340_v4 }
 0xd8d   : > { %v6720_v15 = vpack.i.bf16 %v6407_v2, %v6406_v32  ;;  %v4401_v6 = vpop.f32.mrb[151].mxu0  ;;  %v4215_v11 = vpop.xlane.xlu0 %4214  ;;  %v11337_v32 = vld [vmem:[#allocation34_spill] sm:$0xff] }
 0xd8e   : > { %v6715_v57 = vpack.i.bf16 %v4401_v6, %v4398_v35  ;;  %7441 = vrcp.f32 %v4215_v11  ;;  %v11338_v35 = vpack.i.bf16 %v11336_v52, %v11337_v32  ;;  %v11343_v2 = vld [vmem:[#allocation98_spill] sm:$0xff]  ;;  %v11345_v6 = vld [vmem:[#allocation39_spill] sm:$0xff] }
 0xd8f   : > { %v4213_v33 = vpop.xlane.xlu1 %4212  ;;  %6711 = vrot.lane.b32.xlu1 %v11323_v48, %s7723_s26  ;;  %v11346_v11 = vld [vmem:[#allocation35_spill] sm:$0xff] }
 0xd90   : > { %7443 = vrcp.f32 %v4213_v33  ;;  %6706 = vrot.lane.b32.xlu0 %v11326_v47, %s7723_s26  ;;  %v11349_v48 = vld [vmem:[#allocation27_spill] sm:$0xff] }
 0xd91   : > { %v4227_v21 = vpop.xlane.xlu0 %4226  ;;  %7445 = vrcp.f32 %v4217_v22  ;;  %v11342_v22 = vld [vmem:[#allocation100_spill] sm:$0xff]  ;;  %v11350_v56 = vpack.i.bf16 %v11348_v20, %v11349_v48  ;;  %v11370_v48 = vld [vmem:[#allocation18_spill] sm:$0xff] }
 0xd92   : > { %v6410_v19 = vpop.f32.mrb[152].mxu0 }
 0xd93   : > { %v4414_v1 = vpop.f32.mrb[153].mxu0  ;;  %v4225_v41 = vpop.xlane.xlu1 %4224  ;;  %6721 = vrot.lane.b32.xlu1 %v6720_v15, %s7722_s24 }
 0xd94   : > { %6716 = vrot.lane.b32.xlu0 %v6715_v57, %s7722_s24  ;;  %v6411_v9 = vpop.f32.mrb[154].mxu0  ;;  %v11347_v57 = vpack.i.bf16 %v11345_v6, %v11346_v11  ;;  %v11366_v6 = vld [vmem:[#allocation108_spill] sm:$0xff]  ;;  %v11367_v11 = vld [vmem:[#allocation106_spill] sm:$0xff] }
 0xd95   : > { %v6750_v45 = vpack.i.bf16 %v6411_v9, %v6410_v19  ;;  %v4417_v16 = vpop.f32.mrb[155].mxu0  ;;  %v4223_v54 = vpop.xlane.xlu0 %4222 }
 0xd96   : > { %v6745_v0 = vpack.i.bf16 %v4417_v16, %v4414_v1 }
 0xd97   : > { %v4221_v13 = vpop.xlane.xlu1 %4220  ;;  %6731 = vrot.lane.b32.xlu1 %v11329_v63, %s7724_s14 }
 0xd98   : > { %v7442_v61 = vpop.eup %7441  ;;  %6726 = vrot.lane.b32.xlu0 %v11332_v5, %s7724_s14  ;;  %7447 = vrcp.f32 %v4221_v13 }
 0xd99   : > { %v4235_v37 = vpop.xlane.xlu0 %4234  ;;  %v4293_v49 = vmul.f32 %v7442_v61, %v10376_v7  ;;  %7449 = vrcp.f32 %v4219_v53  ;;  %v11344_v53 = vpack.i.bf16 %v11342_v22, %v11343_v2  ;;  %v11363_v2 = vld [vmem:[#allocation107_spill] sm:$0xff] }
 0xd9a   : > { %v7444_v39 = vpop.eup %7443  ;;  %7451 = vrcp.f32 %v4223_v54 }
 0xd9b   : > { %v4233_v43 = vpop.xlane.xlu1 %4232  ;;  %6741 = vrot.lane.b32.xlu1 %v11335_v51, %s7723_s26  ;;  %v4292_v8 = vmul.f32 %v7444_v39, %v10380_v55  ;;  %7453 = vrcp.f32 %v4225_v41  ;;  %v7446_v15 = vpop.eup %7445 }
 0xd9c   : > { %6736 = vrot.lane.b32.xlu0 %v11338_v35, %s7723_s26  ;;  %v4294_v19 = vmul.f32 %v7446_v15, %v10372_v23  ;;  %v11357_v35 = vld [vmem:[#allocation55_spill] sm:$0xff] }
 0xd9d   : > { %v4231_v58 = vpop.xlane.xlu0 %4230  ;;  %v4316_v60 = vpack.c.bf16 %v4293_v49, %v4292_v8  ;;  %v11354_v8 = vld [vmem:[#allocation104_spill] sm:$0xff]  ;;  %v11355_v49 = vld [vmem:[#allocation102_spill] sm:$0xff] }
 0xd9e   : > { %v11356_v52 = vpack.i.bf16 %v11354_v8, %v11355_v49 }
 0xd9f   : > { %v4229_v17 = vpop.xlane.xlu1 %4228  ;;  %6751 = vrot.lane.b32.xlu1 %v6750_v45, %s7722_s24  ;;  %6432 = vmatprep.mubr.bf16.mxu1 %v4316_v60 }
 0xda0   : > { %6746 = vrot.lane.b32.xlu0 %v6745_v0, %s7722_s24  ;;  %7455 = vrcp.f32 %v4229_v17  ;;  %v11360_v17 = vld [vmem:[#allocation21_spill] sm:$0xff] }
 0xda1   : > { %v4458_v55 = vpop.permute.xlu0 %4457  ;;  %7457 = vrcp.f32 %v4227_v21 }
 0xda2   : > { %6428 = vmatprep.subr.bf16.mxu1 %v4458_v55  ;;  %v7448_v62 = vpop.eup %7447  ;;  %7459 = vrcp.f32 %v4231_v58  ;;  %v11358_v58 = vld [vmem:[#allocation45_spill] sm:$0xff] }
 0xda3   : > { %v4241_v7 = vpop.xlane.xlu1 %4240  ;;  %6761 = vrot.lane.b32.xlu1 %v11341_v40, %s7724_s14  ;;  %6429 = vmatpush3.bf16.msra.mxu1 %v4458_v55  ;;  %v7450_v46 = vpop.eup %7449  ;;  %v4296_v21 = vmul.f32 %v7448_v62, %v10395_v3  ;;  %7461 = vrcp.f32 %v4233_v43  ;;  %v11359_v60 = vpack.i.bf16 %v11357_v35, %v11358_v58  ;;  %v11361_v55 = vld [vmem:[#allocation60_spill] sm:$0xff] }
 0xda4   : > { %6756 = vrot.lane.b32.xlu0 %v11344_v53, %s7724_s14  ;;  %v7452_v47 = vpop.eup %7451  ;;  %v4295_v41 = vmul.f32 %v7450_v46, %v10368_v30  ;;  %7463 = vrcp.f32 %v4235_v37  ;;  %v11364_v53 = vld [vmem:[#allocation105_spill] sm:$0xff]  ;;  %v11372_v46 = vld [vmem:[#allocation118_spill] sm:$0xff] }
 0xda5   : > { %v4297_v9 = vmul.f32 %v7452_v47, %v10391_v25  ;;  %v7454_v16 = vpop.eup %7453  ;;  %v11365_v15 = vpack.i.bf16 %v11363_v2, %v11364_v53  ;;  %v11373_v47 = vld [vmem:[#allocation29_spill] sm:$0xff] }
 0xda6   : > { %v4317_v45 = vpack.c.bf16 %v4295_v41, %v4294_v19  ;;  %v4298_v23 = vmul.f32 %v7454_v16, %v10388_v31  ;;  %v11374_v19 = vpack.i.bf16 %v11372_v46, %v11373_v47  ;;  %v11376_v41 = vld [vmem:[#allocation109_spill] sm:$0xff]  ;;  %v11388_v47 = vld [vmem:[#allocation67_spill] sm:$0xff] }
 0xda7   : > { %6771 = vrot.lane.b32.xlu1 %v11347_v57, %s7723_s26  ;;  %v4237_v33 = vpop.xlane.xlu1 %4236  ;;  %v4318_v54 = vpack.c.bf16 %v4297_v9, %v4296_v21  ;;  %v11368_v57 = vpack.i.bf16 %v11366_v6, %v11367_v11  ;;  %v11375_v21 = vld [vmem:[#allocation111_spill] sm:$0xff] }
 0xda8   : > { %6766 = vrot.lane.b32.xlu0 %v11350_v56, %s7723_s26  ;;  %7465 = vrcp.f32 %v4237_v33  ;;  %v11377_v9 = vpack.i.bf16 %v11375_v21, %v11376_v41 }
 0xdaa   : > { %v7456_v0 = vpop.eup %7455 }
 0xdab   : > { %v4460_v1 = vpop.permute.xlu1 %4459  ;;  %v7458_v13 = vpop.eup %7457  ;;  %v4300_v3 = vmul.f32 %v7456_v0, %v10408_v10 }
 0xdac   : > { %6430 = vmatprep.subr.bf16.mxu1 %v4460_v1  ;;  %v7460_v34 = vpop.eup %7459  ;;  %v4299_v30 = vmul.f32 %v7458_v13, %v10384_v12 }
 0xdad   : > { %6431 = vmatpush3.bf16.msra.mxu1 %v4460_v1  ;;  %v4301_v36 = vmul.f32 %v7460_v34, %v10405_v27  ;;  %v7462_v61 = vpop.eup %7461 }
 0xdae   : > { %v4319_v63 = vpack.c.bf16 %v4299_v30, %v4298_v23  ;;  %v7464_v26 = vpop.eup %7463  ;;  %v4302_v42 = vmul.f32 %v7462_v61, %v10402_v29  ;;  %v11352_v29 = vld [vmem:[#allocation101_spill] sm:$0xff]  ;;  %v11381_v61 = vld [vmem:[#allocation64_spill] sm:$0xff] }
 0xdaf   : > { %v4320_v25 = vpack.c.bf16 %v4301_v36, %v4300_v3  ;;  %v4303_v5 = vmul.f32 %v7464_v26, %v10398_v24  ;;  %v11351_v24 = vld [vmem:[#allocation103_spill] sm:$0xff]  ;;  %v11382_v26 = vld [vmem:[#allocation62_spill] sm:$0xff] }
 0xdb0   : > { %6433 = vmatmul.mubr.bf16.vlgmr.msra.gmra.mrb[176].mxu1 %v4317_v45  ;;  %v11353_v51 = vpack.i.bf16 %v11351_v24, %v11352_v29  ;;  %v11379_v45 = vld [vmem:[#allocation110_spill] sm:$0xff] }
 0xdb1   : > { %6436 = vmatprep.mubr.bf16.mxu1 %v4318_v54  ;;  %v4321_v37 = vpack.c.bf16 %v4303_v5, %v4302_v42  ;;  %v11383_v5 = vld [vmem:[#allocation65_spill] sm:$0xff] }
 0xdb2   : > { %v7466_v32 = vpop.eup %7465 }
 0xdb3   : > { %v4304_v4 = vmul.f32 %v7466_v32, %v10414_v38 }
 0xdb8   : > { %6437 = vmatmul.mubr.bf16.gmra.mrb[180].mxu1 %v4319_v63 }
 0xdb9   : > { %6440 = vmatprep.mubr.bf16.mxu1 %v4320_v25 }
 0xdc0   : > { %6441 = vmatmul.mubr.bf16.gmra.mrb[184].mxu1 %v4321_v37 }
 0xdce   : > { %v6414_v39 = vpop.f32.mrb[156].mxu0 }
 0xdcf   : > { %v4430_v31 = vpop.f32.mrb[157].mxu0 }
 0xdd0   : > { %v6415_v43 = vpop.f32.mrb[158].mxu0 }
 0xdd1   : > { %v6780_v10 = vpack.i.bf16 %v6415_v43, %v6414_v39  ;;  %v4433_v12 = vpop.f32.mrb[159].mxu0  ;;  %v11384_v39 = vld [vmem:[#allocation63_spill] sm:$0xff] }
 0xdd2   : > { %v6775_v28 = vpack.i.bf16 %v4433_v12, %v4430_v31  ;;  %v4239_v27 = vpop.xlane.xlu0 %4238 }
 0xdd3   : > { %7467 = vrcp.f32 %v4239_v27  ;;  %6781 = vrot.lane.b32.xlu1 %v6780_v10, %s7722_s24 }
 0xdd4   : > { %6776 = vrot.lane.b32.xlu0 %v6775_v28, %s7722_s24  ;;  %7469 = vrcp.f32 %v4241_v7  ;;  %v11362_v7 = vpack.i.bf16 %v11360_v17, %v11361_v55 }
 0xdd6   : > { %v4243_v18 = vpop.xlane.xlu0 %4242 }
 0xdd7   : > { %7471 = vrcp.f32 %v4243_v18  ;;  %6791 = vrot.lane.b32.xlu1 %v11353_v51, %s7724_s14 }
 0xdd8   : > { %6786 = vrot.lane.b32.xlu0 %v11356_v52, %s7724_s14 }
 0xdda   : > { %v6667_v0 = vpop.permute.xlu0 %6666 }
 0xddb   : > { %6801 = vrot.lane.b32.xlu1 %v11359_v60, %s7723_s26  ;;  %v6669_v3 = vunpack.i.h.bf16 %v6667_v0  ;;  %v6668_v30 = vunpack.i.l.bf16 %v6667_v0 }
 0xddc   : > { %6796 = vrot.lane.b32.xlu0 %v11362_v7, %s7723_s26 }
 0xddd   : > { %v7468_v44 = vpop.eup %7467  ;;  %v4951_v37 = vsel %vm1029_vm0, %v11383_v5, %v6669_v3  ;;  %v4950_v31 = vsel %vm1029_vm0, %v11384_v39, %v6668_v30 }
 0xdde   : > { %v4305_v40 = vmul.f32 %v7468_v44, %v10435_v14  ;;  %v7470_v22 = vpop.eup %7469  ;;  %v11369_v14 = vld [vmem:[#allocation25_spill] sm:$0xff] }
 0xddf   : > { %6811 = vrot.lane.b32.xlu1 %v11365_v15, %s7724_s14  ;;  %v4306_v20 = vmul.f32 %v7470_v22, %v10411_v50  ;;  %v11371_v56 = vpack.i.bf16 %v11369_v14, %v11370_v48  ;;  %v6672_v50 = vpop.permute.xlu1 %6671 }
 0xde0   : > { %6806 = vrot.lane.b32.xlu0 %v11368_v57, %s7724_s14  ;;  %v4322_v33 = vpack.c.bf16 %v4305_v40, %v4304_v4  ;;  %v6674_v34 = vunpack.i.h.bf16 %v6672_v50  ;;  %v6673_v23 = vunpack.i.l.bf16 %v6672_v50 }
 0xde1   : > { %v7472_v62 = vpop.eup %7471 }
 0xde2   : > { %6444 = vmatprep.mubr.bf16.mxu1 %v4322_v33  ;;  %v4307_v38 = vmul.f32 %v7472_v62, %v10438_v59  ;;  %v11378_v59 = vld [vmem:[#allocation112_spill] sm:$0xff]  ;;  %v4953_v25 = vsel %vm1029_vm0, %v11381_v61, %v6674_v34  ;;  %v4952_v42 = vsel %vm1029_vm0, %v11382_v26, %v6673_v23 }
 0xde3   : > { %6821 = vrot.lane.b32.xlu1 %v11371_v56, %s7723_s26  ;;  %v11380_v16 = vpack.i.bf16 %v11378_v59, %v11379_v45  ;;  %v6677_v54 = vpop.permute.xlu1 %6676  ;;  %v11385_v62 = vld [vmem:[#allocation68_spill] sm:$0xff]  ;;  %v11387_v56 = vld [vmem:[#allocation69_spill] sm:$0xff] }
 0xde4   : > { %6816 = vrot.lane.b32.xlu0 %v11374_v19, %s7723_s26  ;;  %v4323_v1 = vpack.c.bf16 %v4307_v38, %v4306_v20  ;;  %v6679_v10 = vunpack.i.h.bf16 %v6677_v54  ;;  %v6678_v12 = vunpack.i.l.bf16 %v6677_v54  ;;  %v11386_v38 = vld [vmem:[#allocation66_spill] sm:$0xff] }
 0xde6   : > { %6445 = vmatmul.mubr.bf16.gmra.mrb[188].mxu1 %v4323_v1  ;;  %v4983_v32 = vsel %vm4982_vm1, %v4950_v31, %v6678_v12  ;;  %v4984_v35 = vsel %vm4982_vm1, %v4951_v37, %v6679_v10  ;;  %v11389_v12 = vld [vmem:[#allocation72_spill] sm:$0xff] }
 0xde7   : > { %6831 = vrot.lane.b32.xlu1 %v11377_v9, %s7724_s14  ;;  %v6682_v13 = vpop.permute.xlu1 %6681 }
 0xde8   : > { %6826 = vrot.lane.b32.xlu0 %v11380_v16, %s7724_s14  ;;  %v6684_v36 = vunpack.i.h.bf16 %v6682_v13  ;;  %v6683_v63 = vunpack.i.l.bf16 %v6682_v13 }
 0xdea   : > { %v4985_v24 = vsel %vm4982_vm1, %v4952_v42, %v6683_v63  ;;  %v4986_v29 = vsel %vm4982_vm1, %v4953_v25, %v6684_v36 }
 0xdf9   : > { %v6692_v43 = vpop.permute.xlu1 %6691 }
 0xdfa   : > { %v6694_v28 = vunpack.i.h.bf16 %v6692_v43  ;;  %v6693_v27 = vunpack.i.l.bf16 %v6692_v43  ;;  %v6687_v18 = vpop.permute.xlu0 %6686 }
 0xdfb   : > { %v6689_v51 = vunpack.i.h.bf16 %v6687_v18  ;;  %v6688_v8 = vunpack.i.l.bf16 %v6687_v18 }
 0xdfc   : > { %v5018_v49 = vsel %vm5015_vm2, %v4985_v24, %v6693_v27  ;;  %v5019_v52 = vsel %vm5015_vm2, %v4986_v29, %v6694_v28  ;;  %v11390_v27 = vld [vmem:[#allocation70_spill] sm:$0xff]  ;;  %v11391_v29 = vld [vmem:[#allocation73_spill] sm:$0xff] }
 0xdfd   : > { %v5049_v58 = vpack.c.bf16 %v5019_v52, %v5018_v49  ;;  %v6702_v60 = vpop.permute.xlu1 %6701  ;;  %v5016_v17 = vsel %vm5015_vm2, %v4983_v32, %v6688_v8  ;;  %v5017_v55 = vsel %vm5015_vm2, %v4984_v35, %v6689_v51  ;;  %v11392_v8 = vld [vmem:[#allocation71_spill] sm:$0xff] }
 0xdfe   : > { %v6697_v7 = vpop.permute.xlu0 %6696  ;;  %v5048_v44 = vpack.c.bf16 %v5017_v55, %v5016_v17  ;;  %v6704_v4 = vunpack.i.h.bf16 %v6702_v60  ;;  %v6703_v40 = vunpack.i.l.bf16 %v6702_v60 }
 0xdff   : > { %v6699_v2 = vunpack.i.h.bf16 %v6697_v7  ;;  %v6698_v53 = vunpack.i.l.bf16 %v6697_v7 }
 0xe00   : > { %6464 = vmatprep.mubr.bf16.mxu0 %v5048_v44  ;;  %v4957_v20 = vsel %vm1029_vm0, %v11385_v62, %v6704_v4  ;;  %v4956_v14 = vsel %vm1029_vm0, %v11386_v38, %v6703_v40 }
 0xe01   : > { %v6712_v22 = vpop.permute.xlu1 %6711  ;;  %6465 = vmatmul.mubr.bf16.vlgmr.msra.gmra.mrb[160].mxu0 %v5049_v58  ;;  %v4955_v46 = vsel %vm1029_vm0, %v11387_v56, %v6699_v2  ;;  %v4954_v19 = vsel %vm1029_vm0, %v11388_v47, %v6698_v53 }
 0xe02   : > { %v6707_v15 = vpop.permute.xlu0 %6706  ;;  %v6714_v6 = vunpack.i.h.bf16 %v6712_v22  ;;  %v6713_v11 = vunpack.i.l.bf16 %v6712_v22 }
 0xe03   : > { %v6709_v57 = vunpack.i.h.bf16 %v6707_v15  ;;  %v6708_v33 = vunpack.i.l.bf16 %v6707_v15 }
 0xe04   : > { %v4989_v9 = vsel %vm4982_vm1, %v4956_v14, %v6713_v11  ;;  %v4990_v50 = vsel %vm4982_vm1, %v4957_v20, %v6714_v6 }
 0xe05   : > { %v6722_v48 = vpop.permute.xlu1 %6721  ;;  %v4987_v16 = vsel %vm4982_vm1, %v4954_v19, %v6708_v33  ;;  %v4988_v54 = vsel %vm4982_vm1, %v4955_v46, %v6709_v57  ;;  %v11393_v19 = vld [vmem:[#allocation76_spill] sm:$0xff] }
 0xe06   : > { %v6724_v1 = vunpack.i.h.bf16 %v6722_v48  ;;  %v6723_v21 = vunpack.i.l.bf16 %v6722_v48  ;;  %v6717_v41 = vpop.permute.xlu0 %6716 }
 0xe07   : > { %v6719_v59 = vunpack.i.h.bf16 %v6717_v41  ;;  %v6718_v45 = vunpack.i.l.bf16 %v6717_v41 }
 0xe08   : > { %v5022_v0 = vsel %vm5015_vm2, %v4989_v9, %v6723_v21  ;;  %v5023_v13 = vsel %vm5015_vm2, %v4990_v50, %v6724_v1  ;;  %v11394_v21 = vld [vmem:[#allocation74_spill] sm:$0xff]  ;;  %v11395_v50 = vld [vmem:[#allocation77_spill] sm:$0xff] }
 0xe09   : > { %v6732_v34 = vpop.permute.xlu1 %6731  ;;  %v5020_v23 = vsel %vm5015_vm2, %v4987_v16, %v6718_v45  ;;  %v5021_v3 = vsel %vm5015_vm2, %v4988_v54, %v6719_v59  ;;  %v5051_v30 = vpack.c.bf16 %v5023_v13, %v5022_v0  ;;  %v11396_v45 = vld [vmem:[#allocation75_spill] sm:$0xff] }
 0xe0a   : > { %v6727_v36 = vpop.permute.xlu0 %6726  ;;  %v5050_v63 = vpack.c.bf16 %v5021_v3, %v5020_v23  ;;  %v6734_v61 = vunpack.i.h.bf16 %v6732_v34  ;;  %v6733_v25 = vunpack.i.l.bf16 %v6732_v34 }
 0xe0b   : > { %v6729_v42 = vunpack.i.h.bf16 %v6727_v36  ;;  %v6728_v5 = vunpack.i.l.bf16 %v6727_v36 }
 0xe0c   : > { %6468 = vmatprep.mubr.bf16.mxu0 %v5050_v63  ;;  %v4961_v28 = vsel %vm1029_vm0, %v11389_v12, %v6734_v61  ;;  %v4960_v18 = vsel %vm1029_vm0, %v11390_v27, %v6733_v25 }
 0xe0d   : > { %v6742_v26 = vpop.permute.xlu1 %6741  ;;  %6469 = vmatmul.mubr.bf16.gmra.mrb[164].mxu0 %v5051_v30  ;;  %v4959_v51 = vsel %vm1029_vm0, %v11391_v29, %v6729_v42  ;;  %v4958_v49 = vsel %vm1029_vm0, %v11392_v8, %v6728_v5  ;;  %v11400_v8 = vld [vmem:[#allocation124_spill] sm:$0xff] }
 0xe0e   : > { %v6737_v37 = vpop.permute.xlu0 %6736  ;;  %v6744_v39 = vunpack.i.h.bf16 %v6742_v26  ;;  %v6743_v31 = vunpack.i.l.bf16 %v6742_v26 }
 0xe0f   : > { %v6739_v43 = vunpack.i.h.bf16 %v6737_v37  ;;  %v6738_v10 = vunpack.i.l.bf16 %v6737_v37 }
 0xe10   : > { %v4993_v58 = vsel %vm4982_vm1, %v4960_v18, %v6743_v31  ;;  %v4994_v60 = vsel %vm4982_vm1, %v4961_v28, %v6744_v39  ;;  %v11397_v18 = vld [vmem:[#allocation123_spill] sm:$0xff] }
 0xe11   : > { %v6752_v24 = vpop.permute.xlu1 %6751  ;;  %v4991_v7 = vsel %vm4982_vm1, %v4958_v49, %v6738_v10  ;;  %v4992_v44 = vsel %vm4982_vm1, %v4959_v51, %v6739_v43  ;;  %v11401_v49 = vld [vmem:[#allocation122_spill] sm:$0xff] }
 0xe12   : > { %v6754_v52 = vunpack.i.h.bf16 %v6752_v24  ;;  %v6753_v32 = vunpack.i.l.bf16 %v6752_v24  ;;  %v6747_v35 = vpop.permute.xlu0 %6746  ;;  %v11398_v24 = vld [vmem:[#allocation121_spill] sm:$0xff] }
 0xe13   : > { %v6749_v17 = vunpack.i.h.bf16 %v6747_v35  ;;  %v6748_v55 = vunpack.i.l.bf16 %v6747_v35  ;;  %v11399_v29 = vpack.i.bf16 %v11397_v18, %v11398_v24 }
 0xe14   : > { %v5026_v4 = vsel %vm5015_vm2, %v4993_v58, %v6753_v32  ;;  %v5027_v40 = vsel %vm5015_vm2, %v4994_v60, %v6754_v52  ;;  %v11402_v52 = vpack.i.bf16 %v11400_v8, %v11401_v49 }
 0xe15   : > { %v5024_v22 = vsel %vm5015_vm2, %v4991_v7, %v6748_v55  ;;  %v5025_v2 = vsel %vm5015_vm2, %v4992_v44, %v6749_v17  ;;  %v5053_v53 = vpack.c.bf16 %v5027_v40, %v5026_v4  ;;  %v6762_v6 = vpop.permute.xlu1 %6761  ;;  %v11403_v55 = vld [vmem:[#allocation115_spill] sm:$0xff]  ;;  %v11404_v7 = vld [vmem:[#allocation113_spill] sm:$0xff]  ;;  %v11406_v40 = vld [vmem:[#allocation116_spill] sm:$0xff] }
 0xe16   : > { %v5052_v15 = vpack.c.bf16 %v5025_v2, %v5024_v22  ;;  %v6757_v11 = vpop.permute.xlu0 %6756  ;;  %v6764_v33 = vunpack.i.h.bf16 %v6762_v6  ;;  %v6763_v62 = vunpack.i.l.bf16 %v6762_v6  ;;  %v11405_v44 = vpack.i.bf16 %v11403_v55, %v11404_v7  ;;  %v11407_v22 = vld [vmem:[#allocation114_spill] sm:$0xff] }
 0xe17   : > { %v6759_v38 = vunpack.i.h.bf16 %v6757_v11  ;;  %v6758_v14 = vunpack.i.l.bf16 %v6757_v11  ;;  %v11408_v2 = vpack.i.bf16 %v11406_v40, %v11407_v22  ;;  %v11416_v40 = vld [vmem:[#allocation78_spill] sm:$0xff] }
 0xe18   : > { %6472 = vmatprep.mubr.bf16.mxu0 %v5052_v15  ;;  %v4965_v1 = vsel %vm1029_vm0, %v11393_v19, %v6764_v33  ;;  %v4964_v41 = vsel %vm1029_vm0, %v11394_v21, %v6763_v62  ;;  %v11410_v33 = vld [vmem:[#allocation125_spill] sm:$0xff]  ;;  %v10657_v21 = vld [vmem:[%s10855_s3] ss:$0 sm:$0xff] }
 0xe19   : > { %6473 = vmatmul.mubr.bf16.gmra.mrb[168].mxu0 %v5053_v53  ;;  %v6772_v57 = vpop.permute.xlu1 %6771  ;;  %v4963_v59 = vsel %vm1029_vm0, %v11395_v50, %v6759_v38  ;;  %v4962_v16 = vsel %vm1029_vm0, %v11396_v45, %v6758_v14  ;;  %v11413_v38 = vld [vmem:[#allocation126_spill] sm:$0xff] }
 0xe1a   : > { %v6767_v20 = vpop.permute.xlu0 %6766  ;;  %v6774_v48 = vunpack.i.h.bf16 %v6772_v57  ;;  %v6773_v56 = vunpack.i.l.bf16 %v6772_v57  ;;  %v11409_v57 = vld [vmem:[#allocation127_spill] sm:$0xff] }
 0xe1b   : > { %v6769_v46 = vunpack.i.h.bf16 %v6767_v20  ;;  %v6768_v47 = vunpack.i.l.bf16 %v6767_v20  ;;  %v11411_v62 = vpack.i.bf16 %v11409_v57, %v11410_v33  ;;  %v11412_v20 = vld [vmem:[#allocation128_spill] sm:$0xff] }
 0xe1c   : > { %v4997_v34 = vsel %vm4982_vm1, %v4964_v41, %v6773_v56  ;;  %v4998_v23 = vsel %vm4982_vm1, %v4965_v1, %v6774_v48  ;;  %v11414_v14 = vpack.i.bf16 %v11412_v20, %v11413_v38 }
 0xe1d   : > { %v4995_v36 = vsel %vm4982_vm1, %v4962_v16, %v6768_v47  ;;  %v4996_v63 = vsel %vm4982_vm1, %v4963_v59, %v6769_v46 }
 0xe45   : > { %v6782_v9 = vpop.permute.xlu1 %6781 }
 0xe46   : > { %v6784_v54 = vunpack.i.h.bf16 %v6782_v9  ;;  %v6783_v0 = vunpack.i.l.bf16 %v6782_v9  ;;  %v6777_v13 = vpop.permute.xlu0 %6776 }
 0xe47   : > { %v6779_v3 = vunpack.i.h.bf16 %v6777_v13  ;;  %v6778_v30 = vunpack.i.l.bf16 %v6777_v13 }
 0xe48   : > { %v5030_v61 = vsel %vm5015_vm2, %v4997_v34, %v6783_v0  ;;  %v5031_v25 = vsel %vm5015_vm2, %v4998_v23, %v6784_v54 }
 0xe49   : > { %v5028_v26 = vsel %vm5015_vm2, %v4995_v36, %v6778_v30  ;;  %v5029_v42 = vsel %vm5015_vm2, %v4996_v63, %v6779_v3  ;;  %v5055_v5 = vpack.c.bf16 %v5031_v25, %v5030_v61  ;;  %v6792_v13 = vpop.permute.xlu1 %6791 }
 0xe4a   : > { %v5054_v37 = vpack.c.bf16 %v5029_v42, %v5028_v26  ;;  %v6787_v34 = vpop.permute.xlu0 %6786  ;;  %v6794_v8 = vunpack.i.h.bf16 %v6792_v13  ;;  %v6793_v49 = vunpack.i.l.bf16 %v6792_v13 }
 0xe4c   : > { %6476 = vmatprep.mubr.bf16.mxu0 %v5054_v37  ;;  %v4968_v22 = vsel %vm1029_vm0, %v11416_v40, %v6793_v49 }
 0xe4d   : > { %6477 = vmatmul.mubr.bf16.gmra.mrb[172].mxu0 %v5055_v5  ;;  %v6802_v26 = vpop.permute.xlu1 %6801 }
 0xe4e   : > { %v6797_v5 = vpop.permute.xlu0 %6796 }
 0xe4f   : > { %v6799_v55 = vunpack.i.h.bf16 %v6797_v5  ;;  %v6798_v7 = vunpack.i.l.bf16 %v6797_v5 }
 0xe51   : > { %v6812_v37 = vpop.permute.xlu1 %6811 }
 0xe55   : > { %v6822_v24 = vpop.permute.xlu1 %6821 }
 0xe83   : > { %v6434_v39 = vpop.f32.mrb[176].mxu1 }
 0xe84   : > { %v4503_v31 = vpop.f32.mrb[177].mxu1 }
 0xe85   : > { %v6435_v43 = vpop.f32.mrb[178].mxu1 }
 0xe86   : > { %v6835_v10 = vpack.i.bf16 %v6435_v43, %v6434_v39  ;;  %v4506_v12 = vpop.f32.mrb[179].mxu1  ;;  %v10677_v39 = vpop.permute.xlu0 %6806 }
 0xe87   : > { %v6840_v28 = vpack.i.bf16 %v4506_v12, %v4503_v31 }
 0xe88   : > { %6836 = vrot.lane.b32.xlu1 %v6835_v10, %s7722_s24 }
 0xe89   : > { %6841 = vrot.lane.b32.xlu0 %v6840_v28, %s7722_s24 }
 0xe8b   : > { %v6438_v27 = vpop.f32.mrb[180].mxu1 }
 0xe8c   : > { %6851 = vrot.lane.b32.xlu1 %v11399_v29, %s7723_s26  ;;  %v4519_v51 = vpop.f32.mrb[181].mxu1 }
 0xe8d   : > { %6846 = vrot.lane.b32.xlu0 %v11402_v52, %s7723_s26  ;;  %v6439_v32 = vpop.f32.mrb[182].mxu1  ;;  %v6789_v52 = vunpack.i.h.bf16 %v6787_v34 }
 0xe8e   : > { %v6855_v35 = vpack.i.bf16 %v6439_v32, %v6438_v27  ;;  %v4522_v58 = vpop.f32.mrb[183].mxu1  ;;  %v6788_v32 = vunpack.i.l.bf16 %v6787_v34 }
 0xe8f   : > { %v6860_v60 = vpack.i.bf16 %v4522_v58, %v4519_v51  ;;  %v6817_v51 = vpop.permute.xlu0 %6816  ;;  %v6804_v58 = vunpack.i.h.bf16 %v6802_v26 }
 0xe90   : > { %6856 = vrot.lane.b32.xlu1 %v6855_v35, %s7722_s24  ;;  %v10687_v35 = vpop.permute.xlu1 %6831 }
 0xe91   : > { %6861 = vrot.lane.b32.xlu0 %v6860_v60, %s7722_s24  ;;  %v6803_v60 = vunpack.i.l.bf16 %v6802_v26  ;;  %v11421_v26 = vld [vmem:[#allocation85_spill] sm:$0xff] }
 0xe93   : > { %v6442_v17 = vpop.f32.mrb[184].mxu1  ;;  %v5001_v57 = vsel %vm4982_vm1, %v4968_v22, %v6803_v60 }
 0xe94   : > { %6871 = vrot.lane.b32.xlu1 %v11405_v44, %s7724_s14  ;;  %v4535_v4 = vpop.f32.mrb[185].mxu1  ;;  %v11415_v44 = vld [vmem:[#allocation80_spill] sm:$0xff] }
 0xe95   : > { %6866 = vrot.lane.b32.xlu0 %v11408_v2, %s7724_s14  ;;  %v6443_v53 = vpop.f32.mrb[186].mxu1  ;;  %v11417_v2 = vld [vmem:[#allocation81_spill] sm:$0xff] }
 0xe96   : > { %v6875_v15 = vpack.i.bf16 %v6443_v53, %v6442_v17  ;;  %v4538_v6 = vpop.f32.mrb[187].mxu1  ;;  %v10689_v17 = vpop.permute.xlu0 %6826  ;;  %v4967_v53 = vsel %vm1029_vm0, %v11417_v2, %v6789_v52  ;;  %v6833_v52 = vunpack.i.l.bf16 %v10687_v35 }
 0xe97   : > { %v6880_v11 = vpack.i.bf16 %v4538_v6, %v4535_v4  ;;  %v4969_v4 = vsel %vm1029_vm0, %v11415_v44, %v6794_v8  ;;  %v6828_v44 = vunpack.i.l.bf16 %v10689_v17 }
 0xe98   : > { %6876 = vrot.lane.b32.xlu1 %v6875_v15, %s7722_s24  ;;  %v11418_v15 = vld [vmem:[#allocation79_spill] sm:$0xff]  ;;  %v5002_v33 = vsel %vm4982_vm1, %v4969_v4, %v6804_v58 }
 0xe99   : > { %6881 = vrot.lane.b32.xlu0 %v6880_v11, %s7722_s24  ;;  %v4966_v6 = vsel %vm1029_vm0, %v11418_v15, %v6788_v32 }
 0xe9c   : > { %6891 = vrot.lane.b32.xlu1 %v11411_v62, %s7723_s26 }
 0xe9d   : > { %6886 = vrot.lane.b32.xlu0 %v11414_v14, %s7723_s26  ;;  %v4999_v14 = vsel %vm4982_vm1, %v4966_v6, %v6798_v7  ;;  %v6829_v7 = vunpack.i.h.bf16 %v10689_v17  ;;  %v11423_v6 = vld [vmem:[#allocation88_spill] sm:$0xff] }
 0xeb9   : > { %v6446_v48 = vpop.f32.mrb[188].mxu1 }
 0xeba   : > { %v4551_v56 = vpop.f32.mrb[189].mxu1 }
 0xebb   : > { %v6447_v46 = vpop.f32.mrb[190].mxu1 }
 0xebc   : > { %v6900_v47 = vpack.i.bf16 %v6447_v46, %v6446_v48  ;;  %v4554_v19 = vpop.f32.mrb[191].mxu1  ;;  %v5000_v48 = vsel %vm4982_vm1, %v4967_v53, %v6799_v55 }
 0xebd   : > { %v6895_v1 = vpack.i.bf16 %v4554_v19, %v4551_v56  ;;  %v6813_v19 = vunpack.i.l.bf16 %v6812_v37 }
 0xebe   : > { %6901 = vrot.lane.b32.xlu1 %v6900_v47, %s7722_s24  ;;  %v6814_v47 = vunpack.i.h.bf16 %v6812_v37  ;;  %v11422_v37 = vld [vmem:[#allocation83_spill] sm:$0xff] }
 0xebf   : > { %6896 = vrot.lane.b32.xlu0 %v6895_v1, %s7722_s24  ;;  %s7641_s24 = scalar_lea.vmem %s7640_s13, 8192 }
 0xec0   : > { %p7643_p2 = scmp.lt.s32.totalorder %s7641_s24, %s7635_s27 }
 0xec2   : > { %p7644_p1 = por %p7643_p2, %p7642_p12 }
 0xec4   : > { %p7645_p4 = pnand %p7644_p1, %p7638_p7 }
 0xed4   : > { %v6466_v41 = vpop.f32.mrb[160].mxu0 }
 0xed5   : > { %v5178_v9 = vadd.f32 %v6466_v41, %v10657_v21  ;;  %v5169_v50 = vpop.f32.mrb[161].mxu0 }
 0xed6   : > { %v5170_v59 = vadd.f32 %v10657_v21, %v5169_v50  ;;  %v6467_v45 = vpop.f32.mrb[162].mxu0 }
 0xed7   : > { %5298 = vst [vmem:[%s10661_s16 + $0x10] sm:$0xff] %v5178_v9  ;;  %v5181_v16 = vadd.f32 %v6467_v45, %v10657_v21  ;;  %v5172_v54 = vpop.f32.mrb[163].mxu0  ;;  %v6809_v9 = vunpack.i.h.bf16 %v10677_v39 }
 0xed8   : > { %5296 = vst [vmem:[%s10661_s16] sm:$0xff] %v5170_v59  ;;  %v5173_v0 = vadd.f32 %v10657_v21, %v5172_v54  ;;  %v6808_v54 = vunpack.i.l.bf16 %v10677_v39 }
 0xed9   : > { %5299 = vst [vmem:[%s10661_s16 + $0x18] sm:$0xff] %v5181_v16 }
 0xeda   : > { %5297 = vst [vmem:[%s10661_s16 + $0x8] sm:$0xff] %v5173_v0  ;;  %v6823_v0 = vunpack.i.l.bf16 %v6822_v24  ;;  %v4970_v39 = vsel %vm1029_vm0, %v11422_v37, %v6808_v54 }
 0xee0   : > { %v6470_v23 = vpop.f32.mrb[164].mxu0 }
 0xee1   : > { %v5194_v3 = vadd.f32 %v6470_v23, %v10657_v21  ;;  %v5185_v30 = vpop.f32.mrb[165].mxu0  ;;  %v6824_v23 = vunpack.i.h.bf16 %v6822_v24 }
 0xee2   : > { %v5186_v36 = vadd.f32 %v10657_v21, %v5185_v30  ;;  %v6471_v63 = vpop.f32.mrb[166].mxu0  ;;  %v6819_v30 = vunpack.i.h.bf16 %v6817_v51 }
 0xee3   : > { %5302 = vst [vmem:[%s10661_s16 + $0x30] sm:$0xff] %v5194_v3  ;;  %v5197_v61 = vadd.f32 %v6471_v63, %v10657_v21  ;;  %v5188_v25 = vpop.f32.mrb[167].mxu0  ;;  %v6818_v3 = vunpack.i.l.bf16 %v6817_v51  ;;  %v6834_v51 = vunpack.i.h.bf16 %v10687_v35 }
 0xee4   : > { %5300 = vst [vmem:[%s10661_s16 + $0x20] sm:$0xff] %v5186_v36  ;;  %v5189_v42 = vadd.f32 %v10657_v21, %v5188_v25  ;;  %v11419_v36 = vld [vmem:[#allocation84_spill] sm:$0xff] }
 0xee5   : > { %5303 = vst [vmem:[%s10661_s16 + $0x38] sm:$0xff] %v5197_v61  ;;  %v4973_v63 = vsel %vm1029_vm0, %v11419_v36, %v6814_v47  ;;  %v11420_v61 = vld [vmem:[#allocation82_spill] sm:$0xff]  ;;  %v4977_v35 = vsel %vm1029_vm0, %v11423_v6, %v6834_v51  ;;  %v11429_v51 = vld [vmem:[#allocation93_spill] sm:$0xff] }
 0xee6   : > { %5301 = vst [vmem:[%s10661_s16 + $0x28] sm:$0xff] %v5189_v42  ;;  %v4972_v25 = vsel %vm1029_vm0, %v11420_v61, %v6813_v19  ;;  %v4971_v42 = vsel %vm1029_vm0, %v11421_v26, %v6809_v9 }
 0xeec   : > { %v6474_v31 = vpop.f32.mrb[168].mxu0 }
 0xeed   : > { %v5210_v43 = vadd.f32 %v6474_v31, %v10657_v21  ;;  %v5201_v10 = vpop.f32.mrb[169].mxu0  ;;  %v5005_v31 = vsel %vm4982_vm1, %v4972_v25, %v6823_v0 }
 0xeee   : > { %v5202_v12 = vadd.f32 %v10657_v21, %v5201_v10  ;;  %v6475_v28 = vpop.f32.mrb[170].mxu0 }
 0xeef   : > { %5306 = vst [vmem:[%s10661_s16 + $0x50] sm:$0xff] %v5210_v43  ;;  %v5213_v27 = vadd.f32 %v6475_v28, %v10657_v21  ;;  %v5204_v18 = vpop.f32.mrb[171].mxu0  ;;  %v5006_v28 = vsel %vm4982_vm1, %v4973_v63, %v6824_v23 }
 0xef0   : > { %5304 = vst [vmem:[%s10661_s16 + $0x40] sm:$0xff] %v5202_v12  ;;  %v5205_v29 = vadd.f32 %v10657_v21, %v5204_v18 }
 0xef1   : > { %5307 = vst [vmem:[%s10661_s16 + $0x58] sm:$0xff] %v5213_v27  ;;  %v5003_v27 = vsel %vm4982_vm1, %v4970_v39, %v6818_v3 }
 0xef2   : > { %5305 = vst [vmem:[%s10661_s16 + $0x48] sm:$0xff] %v5205_v29  ;;  %v5004_v29 = vsel %vm4982_vm1, %v4971_v42, %v6819_v30 }
 0xefa   : > { %v6837_v11 = vpop.permute.xlu1 %6836 }
 0xefb   : > { %v6839_v62 = vunpack.i.h.bf16 %v6837_v11  ;;  %v6838_v20 = vunpack.i.l.bf16 %v6837_v11  ;;  %v6842_v38 = vpop.permute.xlu0 %6841  ;;  %v11424_v11 = vld [vmem:[#allocation86_spill] sm:$0xff] }
 0xefc   : > { %v6844_v56 = vunpack.i.h.bf16 %v6842_v38  ;;  %v6843_v46 = vunpack.i.l.bf16 %v6842_v38  ;;  %v11426_v38 = vld [vmem:[#allocation87_spill] sm:$0xff] }
 0xefd   : > { %v5034_v1 = vsel %vm5015_vm2, %v5001_v57, %v6838_v20  ;;  %v5035_v41 = vsel %vm5015_vm2, %v5002_v33, %v6839_v62  ;;  %v4976_v57 = vsel %vm1029_vm0, %v11424_v11, %v6833_v52  ;;  %v11425_v62 = vld [vmem:[#allocation89_spill] sm:$0xff]  ;;  %v4974_v17 = vsel %vm1029_vm0, %v11426_v38, %v6828_v44 }
 0xefe   : > { %v6852_v50 = vpop.permute.xlu1 %6851  ;;  %v5032_v59 = vsel %vm5015_vm2, %v4999_v14, %v6843_v46  ;;  %v5033_v45 = vsel %vm5015_vm2, %v5000_v48, %v6844_v56  ;;  %v5057_v16 = vpack.c.bf16 %v5035_v41, %v5034_v1  ;;  %v4975_v20 = vsel %vm1029_vm0, %v11425_v62, %v6829_v7 }
 0xeff   : > { %v6847_v13 = vpop.permute.xlu0 %6846  ;;  %v5056_v34 = vpack.c.bf16 %v5033_v45, %v5032_v59  ;;  %v6854_v22 = vunpack.i.h.bf16 %v6852_v50  ;;  %v6853_v2 = vunpack.i.l.bf16 %v6852_v50 }
 0xf00   : > { %v6849_v53 = vunpack.i.h.bf16 %v6847_v13  ;;  %v6848_v15 = vunpack.i.l.bf16 %v6847_v13 }
 0xf01   : > { %6480 = vmatprep.mubr.bf16.mxu0 %v5056_v34  ;;  %v5010_v46 = vsel %vm4982_vm1, %v4977_v35, %v6854_v22  ;;  %v5009_v47 = vsel %vm4982_vm1, %v4976_v57, %v6853_v2 }
 0xf02   : > { %v6857_v5 = vpop.permute.xlu1 %6856  ;;  %6481 = vmatmul.mubr.bf16.gmra.mrb[176].mxu0 %v5057_v16  ;;  %v5007_v41 = vsel %vm4982_vm1, %v4974_v17, %v6848_v15  ;;  %v5008_v9 = vsel %vm4982_vm1, %v4975_v20, %v6849_v53 }
 0xf03   : > { %v6859_v43 = vunpack.i.h.bf16 %v6857_v5  ;;  %v6858_v10 = vunpack.i.l.bf16 %v6857_v5  ;;  %v6862_v12 = vpop.permute.xlu0 %6861 }
 0xf04   : > { %v6864_v18 = vunpack.i.h.bf16 %v6862_v12  ;;  %v6863_v24 = vunpack.i.l.bf16 %v6862_v12 }
 0xf05   : > { %v5038_v8 = vsel %vm5015_vm2, %v5005_v31, %v6858_v10  ;;  %v5039_v49 = vsel %vm5015_vm2, %v5006_v28, %v6859_v43  ;;  %v11427_v28 = vld [vmem:[#allocation92_spill] sm:$0xff] }
 0xf06   : > { %v6872_v32 = vpop.permute.xlu1 %6871  ;;  %v5036_v58 = vsel %vm5015_vm2, %v5003_v27, %v6863_v24  ;;  %v5037_v60 = vsel %vm5015_vm2, %v5004_v29, %v6864_v18  ;;  %v5059_v55 = vpack.c.bf16 %v5039_v49, %v5038_v8  ;;  %v11428_v18 = vld [vmem:[#allocation90_spill] sm:$0xff]  ;;  %v11430_v49 = vld [vmem:[#allocation91_spill] sm:$0xff] }
 0xf07   : > { %v6867_v4 = vpop.permute.xlu0 %6866  ;;  %v5058_v40 = vpack.c.bf16 %v5037_v60, %v5036_v58  ;;  %v6874_v26 = vunpack.i.h.bf16 %v6872_v32  ;;  %v6873_v42 = vunpack.i.l.bf16 %v6872_v32 }
 0xf08   : > { %v6869_v37 = vunpack.i.h.bf16 %v6867_v4  ;;  %v6868_v39 = vunpack.i.l.bf16 %v6867_v4 }
 0xf09   : > { %6484 = vmatprep.mubr.bf16.mxu0 %v5058_v40  ;;  %v4981_v27 = vsel %vm1029_vm0, %v11427_v28, %v6874_v26  ;;  %v4980_v24 = vsel %vm1029_vm0, %v11428_v18, %v6873_v42 }
 0xf0a   : > { %v6877_v33 = vpop.permute.xlu1 %6876  ;;  %6485 = vmatmul.mubr.bf16.gmra.mrb[180].mxu0 %v5059_v55  ;;  %v4979_v8 = vsel %vm1029_vm0, %v11429_v51, %v6869_v37  ;;  %v4978_v52 = vsel %vm1029_vm0, %v11430_v49, %v6868_v39 }
 0xf0b   : > { %v6879_v14 = vunpack.i.h.bf16 %v6877_v33  ;;  %v6878_v48 = vunpack.i.l.bf16 %v6877_v33  ;;  %v6882_v56 = vpop.permute.xlu0 %6881 }
 0xf0c   : > { %v6884_v19 = vunpack.i.h.bf16 %v6882_v56  ;;  %v6883_v1 = vunpack.i.l.bf16 %v6882_v56 }
 0xf0d   : > { %v5042_v50 = vsel %vm5015_vm2, %v5009_v47, %v6878_v48  ;;  %v5043_v59 = vsel %vm5015_vm2, %v5010_v46, %v6879_v14 }
 0xf0e   : > { %v5040_v45 = vsel %vm5015_vm2, %v5007_v41, %v6883_v1  ;;  %v5041_v16 = vsel %vm5015_vm2, %v5008_v9, %v6884_v19  ;;  %v5061_v54 = vpack.c.bf16 %v5043_v59, %v5042_v50  ;;  %v6892_v25 = vpop.permute.xlu1 %6891 }
 0xf0f   : > { %v5060_v0 = vpack.c.bf16 %v5041_v16, %v5040_v45  ;;  %v6887_v5 = vpop.permute.xlu0 %6886  ;;  %v6894_v31 = vunpack.i.h.bf16 %v6892_v25  ;;  %v6893_v43 = vunpack.i.l.bf16 %v6892_v25 }
 0xf10   : > { %v6889_v10 = vunpack.i.h.bf16 %v6887_v5  ;;  %v6888_v12 = vunpack.i.l.bf16 %v6887_v5 }
 0xf11   : > { %6488 = vmatprep.mubr.bf16.mxu0 %v5060_v0  ;;  %v5014_v55 = vsel %vm4982_vm1, %v4981_v27, %v6894_v31  ;;  %v5013_v7 = vsel %vm4982_vm1, %v4980_v24, %v6893_v43 }
 0xf12   : > { %6489 = vmatmul.mubr.bf16.gmra.mrb[184].mxu0 %v5061_v54  ;;  %v5011_v40 = vsel %vm4982_vm1, %v4978_v52, %v6888_v12  ;;  %v5012_v22 = vsel %vm4982_vm1, %v4979_v8, %v6889_v10 }
 0xf20   : > { %v6478_v13 = vpop.f32.mrb[172].mxu0 }
 0xf21   : > { %v5226_v34 = vadd.f32 %v6478_v13, %v10657_v21  ;;  %v5217_v23 = vpop.f32.mrb[173].mxu0 }
 0xf22   : > { %v5218_v3 = vadd.f32 %v10657_v21, %v5217_v23  ;;  %v6479_v30 = vpop.f32.mrb[174].mxu0 }
 0xf23   : > { %5310 = vst [vmem:[%s10661_s16 + $0x70] sm:$0xff] %v5226_v34  ;;  %v5229_v36 = vadd.f32 %v6479_v30, %v10657_v21  ;;  %v5220_v63 = vpop.f32.mrb[175].mxu0 }
 0xf24   : > { %5308 = vst [vmem:[%s10661_s16 + $0x60] sm:$0xff] %v5218_v3  ;;  %v5221_v61 = vadd.f32 %v10657_v21, %v5220_v63 }
 0xf25   : > { %5311 = vst [vmem:[%s10661_s16 + $0x78] sm:$0xff] %v5229_v36 }
 0xf26   : > { %5309 = vst [vmem:[%s10661_s16 + $0x68] sm:$0xff] %v5221_v61 }
 0xf30   : > { %v6902_v29 = vpop.permute.xlu1 %6901 }
 0xf31   : > { %v6904_v32 = vunpack.i.h.bf16 %v6902_v29  ;;  %v6903_v58 = vunpack.i.l.bf16 %v6902_v29  ;;  %v6897_v60 = vpop.permute.xlu0 %6896 }
 0xf32   : > { %v6899_v44 = vunpack.i.h.bf16 %v6897_v60  ;;  %v6898_v4 = vunpack.i.l.bf16 %v6897_v60 }
 0xf33   : > { %v5046_v2 = vsel %vm5015_vm2, %v5013_v7, %v6903_v58  ;;  %v5047_v53 = vsel %vm5015_vm2, %v5014_v55, %v6904_v32 }
 0xf34   : > { %v5044_v15 = vsel %vm5015_vm2, %v5011_v40, %v6898_v4  ;;  %v5045_v6 = vsel %vm5015_vm2, %v5012_v22, %v6899_v44  ;;  %v5063_v35 = vpack.c.bf16 %v5047_v53, %v5046_v2 }
 0xf35   : > { %v5062_v11 = vpack.c.bf16 %v5045_v6, %v5044_v15 }
 0xf37   : > { %6492 = vmatprep.mubr.bf16.mxu0 %v5062_v11 }
 0xf38   : > { %6493 = vmatmul.mubr.bf16.gmra.mrb[188].mxu0 %v5063_v35 }
 0xfd5   : > { %v6482_v57 = vpop.f32.mrb[176].mxu0 }
 0xfd6   : > { %v5242_v33 = vadd.f32 %v6482_v57, %v10657_v21  ;;  %v5233_v62 = vpop.f32.mrb[177].mxu0 }
 0xfd7   : > { %v5234_v20 = vadd.f32 %v10657_v21, %v5233_v62  ;;  %v6483_v38 = vpop.f32.mrb[178].mxu0 }
 0xfd8   : > { %5314 = vst [vmem:[%s10661_s16 + $0x90] sm:$0xff] %v5242_v33  ;;  %v5245_v17 = vadd.f32 %v6483_v38, %v10657_v21  ;;  %v5236_v14 = vpop.f32.mrb[179].mxu0 }
 0xfd9   : > { %5312 = vst [vmem:[%s10661_s16 + $0x80] sm:$0xff] %v5234_v20  ;;  %v5237_v48 = vadd.f32 %v10657_v21, %v5236_v14 }
 0xfda   : > { %5315 = vst [vmem:[%s10661_s16 + $0x98] sm:$0xff] %v5245_v17 }
 0xfdb   : > { %5313 = vst [vmem:[%s10661_s16 + $0x88] sm:$0xff] %v5237_v48 }
 0xfdd   : > { %v6486_v56 = vpop.f32.mrb[180].mxu0 }
 0xfde   : > { %v5258_v46 = vadd.f32 %v6486_v56, %v10657_v21  ;;  %v5249_v47 = vpop.f32.mrb[181].mxu0 }
 0xfdf   : > { %v5250_v19 = vadd.f32 %v10657_v21, %v5249_v47  ;;  %v6487_v1 = vpop.f32.mrb[182].mxu0 }
 0xfe0   : > { %5318 = vst [vmem:[%s10661_s16 + $0xb0] sm:$0xff] %v5258_v46  ;;  %v5261_v41 = vadd.f32 %v6487_v1, %v10657_v21  ;;  %v5252_v9 = vpop.f32.mrb[183].mxu0 }
 0xfe1   : > { %5316 = vst [vmem:[%s10661_s16 + $0xa0] sm:$0xff] %v5250_v19  ;;  %v5253_v50 = vadd.f32 %v10657_v21, %v5252_v9 }
 0xfe2   : > { %5319 = vst [vmem:[%s10661_s16 + $0xb8] sm:$0xff] %v5261_v41 }
 0xfe3   : > { %5317 = vst [vmem:[%s10661_s16 + $0xa8] sm:$0xff] %v5253_v50 }
 0xfe5   : > { %v6490_v59 = vpop.f32.mrb[184].mxu0 }
 0xfe6   : > { %v5274_v45 = vadd.f32 %v6490_v59, %v10657_v21  ;;  %v5265_v16 = vpop.f32.mrb[185].mxu0 }
 0xfe7   : > { %v5266_v54 = vadd.f32 %v10657_v21, %v5265_v16  ;;  %v6491_v0 = vpop.f32.mrb[186].mxu0 }
 0xfe8   : > { %5322 = vst [vmem:[%s10661_s16 + $0xd0] sm:$0xff] %v5274_v45  ;;  %v5277_v13 = vadd.f32 %v6491_v0, %v10657_v21  ;;  %v5268_v34 = vpop.f32.mrb[187].mxu0 }
 0xfe9   : > { %5320 = vst [vmem:[%s10661_s16 + $0xc0] sm:$0xff] %v5266_v54  ;;  %v5269_v23 = vadd.f32 %v10657_v21, %v5268_v34 }
 0xfea   : > { %5323 = vst [vmem:[%s10661_s16 + $0xd8] sm:$0xff] %v5277_v13 }
 0xfeb   : > { %5321 = vst [vmem:[%s10661_s16 + $0xc8] sm:$0xff] %v5269_v23 }
0x100b   : > { %v6494_v3 = vpop.f32.mrb[188].mxu0 }
0x100c   : > { %v5290_v30 = vadd.f32 %v6494_v3, %v10657_v21  ;;  %v5281_v36 = vpop.f32.mrb[189].mxu0 }
0x100d   : > { %v5282_v63 = vadd.f32 %v10657_v21, %v5281_v36  ;;  %v6495_v61 = vpop.f32.mrb[190].mxu0 }
0x100e   : > { %5326 = vst [vmem:[%s10661_s16 + $0xf0] sm:$0xff] %v5290_v30  ;;  %v5293_v25 = vadd.f32 %v6495_v61, %v10657_v21  ;;  %v5284_v26 = vpop.f32.mrb[191].mxu0 }
0x100f   : > { %5324 = vst [vmem:[%s10661_s16 + $0xe0] sm:$0xff] %v5282_v63  ;;  %v5285_v42 = vadd.f32 %v10657_v21, %v5284_v26 }
0x1010   : > { %5327 = vst [vmem:[%s10661_s16 + $0xf8] sm:$0xff] %v5293_v25 }
0x1011   : > { %5325 = vst [vmem:[%s10661_s16 + $0xe8] sm:$0xff] %v5285_v42 }
0x1012   : > { %7648 = shalt.err (!%p7645_p4)
}
0x1013   : > { %s7649_s26 = scalar_lea.hbm %s10802_s10, 4096  ;;  %s7653_s6 = scalar_lea.hbm %s10857_s5, 8192 }
0x1014   : > { %p7650_p9 = scmp.ne.s32.totalorder %s10802_s10, %s7649_s26  ;;  %p7654_p8 = scmp.lt.u32.totalorder %s10802_s10, %s10857_s5 }
0x1015   : > { %p7655_p13 = scmp.lt.u32.totalorder %s7653_s6, %s7649_s26  ;;  %p7657_p10 = scmp.lt.u32.totalorder %s7649_s26, %s10802_s10 }
0x1016   : > { %p7651_p0 = pnand %p7650_p9, %p7903_p5 }
0x1017   : > { %p7656_p6 = por %p7655_p13, %p7654_p8 }
0x1018   : > { %p7652_p11 = pneg %p7651_p0 }
0x1019   : > { %p7658_p3 = por %p7657_p10, %p7656_p6 }
0x101b   : > { %p7659_p7 = pnand %p7658_p3, %p7652_p11 }
0x101d   : > { %7662 = shalt.err (!%p7659_p7)
}
0x101e   : > { %s7726_s17 = smov 128   ;;  %s7727_s28 = smov 8  }
0x101f   : > { %6590 = dma.vmem_to_hbm [thread:$0]  (%p7903_p5), %s10804_s29, 4096, %s10802_s10, %s5329_s22, %s7726_s17, %s7726_s17, %s7727_s28  }
0x1020 PF: > { %s5358_s7 = sand.u32 1, %s7697_s18   ;;  %p11431_p12 = scmp.ne.s32.totalorder %s11025_s25, 0 }
0x1021   : > { %p11432_p2 = scmp.ge.s32.totalorder %s7709_s21, 2  ;;  %s5359_s27 = scalar_lea.sflag [#allocation4], %s5358_s7 }
0x1023   : > { %p6607_p1 = pnand %p11432_p2, %p11431_p12 }
0x1025   : > { %7692 = dma.done.wait (!%p6607_p1), %s5359_s27, 4096  }
0x1026   : > { %7694 = vsyncadd (!%p6607_p1), %s5359_s27, 4294963200  ;;  %p20_p4 = scmp.ge.s32.totalorder %s7889_s23, 4   ;;  %s11433_s18 = smov %s7701_s19 }
0x1027   : > { %s11434_s19 = smov %s7705_s20  ;;  %s11435_s20 = smov %s7899_s8 }
0x1028   : > { %s11436_s21 = smov %s7889_s23  ;;  %22 = sbr.rel (!%p20_p4) target bundleno = 7 (0x7), region = 97 }
0x102f   :  { %5364 = vsyncpa [#allocation3], 1 }
0x1030   :  { %5366 = vsyncpa [#allocation3 + $0x1], 1 }
0x1031   :  { %5367 = vsyncpa [#allocation6], 1 }
0x1032   :  { %5368 = vsyncpa [#allocation9], 1 }
0x1033   :  { %5369 = vsyncpa [#allocation4], 1 }
0x1034   :  { %5371 = vsyncpa [#allocation4 + $0x1], 1 }

</bundles_post_ra>
